<compile_context>
chip_gen: v7x
topology: tpu7x:2x2x1
jax: 0.10.0
libtpu: 0.0.40
codegen_flags: <defaults>
</compile_context>

<pallas_src>
import jax
import jax.numpy as jnp
from jax import lax
from jax.experimental import pallas as pl
from jax.experimental.pallas import tpu as pltpu


# ------------------------------ Pallas kernel ------------------------------ #
def _downproj_kernel(x_ref, t1_ref, td_ref, t2_ref, b1_ref, bd_ref, b2_ref,
                     alpha_ref, o_ref):
    """Whole DownprojBlock for one batch tile, entirely in VMEM.

    x_ref     : (1, bt, Ci*H*W)   f32, lane order (ci, h, w)
    t1/td/t2  : folded conv_1 / deconv_1 / conv_2 operators (f32 or bf16)
    b1/bd/b2  : (1, cols) f32 bias rows, already broadcast over spatial
    alpha_ref : (3,) f32 PReLU slopes in SMEM
    o_ref     : (1, bt, Co*OH*OW) f32, lane order (co, oh, ow)
    """
    x = x_ref[0]                       # (bt, Ci*H*W) f32
    md = t1_ref.dtype                  # matmul operand dtype (f32 / bf16)
    a1 = alpha_ref[0]
    ad = alpha_ref[1]
    a2 = alpha_ref[2]

    # conv_1 + bias + PReLU -> L0  (bt, Co*OH*OW)
    l0 = jnp.dot(x.astype(md), t1_ref[...], preferred_element_type=jnp.float32)
    l0 = l0 + b1_ref[...]
    l0 = jnp.where(l0 >= 0.0, l0, a1 * l0)

    # deconv_1 + bias + PReLU, fused "- x" -> D = H0 - x  (bt, Co*H*W)
    h0 = jnp.dot(l0.astype(md), td_ref[...], preferred_element_type=jnp.float32)
    h0 = h0 + bd_ref[...]
    h0 = jnp.where(h0 >= 0.0, h0, ad * h0)
    d = h0 - x

    # conv_2 + bias + PReLU, fused "+ L0" -> out  (bt, Co*OH*OW)
    y = jnp.dot(d.astype(md), t2_ref[...], preferred_element_type=jnp.float32)
    y = y + b2_ref[...]
    y = jnp.where(y >= 0.0, y, a2 * y)
    o_ref[0] = (y + l0).astype(o_ref.dtype)


# ------------------------- weight folding (XLA glue) ------------------------ #
def _tap_coupling_1d(in_size, out_size, k, s, p):
    """M[t, i, o] = 1.0 iff i == s*o - p + t.

    Zero padding is handled implicitly: out-of-range source positions simply
    never match. Each (i, o) pair matches at most one tap t, so folding is
    exact (no accumulation).
    """
    t = jnp.arange(k)[:, None, None]
    i = jnp.arange(in_size)[None, :, None]
    o = jnp.arange(out_size)[None, None, :]
    return (i == s * o - p + t).astype(jnp.float32)


def _fold_conv(w, a_h, a_w):
    """Conv2d weight (Co, Ci, k, k) -> dense (Ci*H*W, Co*OH*OW) operator."""
    co, ci, _, _ = w.shape
    t = jnp.einsum('ocij,ihp,jwq->chwopq', w, a_h, a_w)
    return t.reshape(ci * a_h.shape[1] * a_w.shape[1],
                     co * a_h.shape[2] * a_w.shape[2])


def _fold_deconv(w, a_h, a_w):
    """ConvTranspose2d weight (Ci, Co, k, k) -> dense (Ci*OH*OW, Co*H*W)."""
    ci, co, _, _ = w.shape
    t = jnp.einsum('ioab,ahp,bwq->ipqohw', w, a_h, a_w)
    return t.reshape(ci * a_h.shape[2] * a_w.shape[2],
                     co * a_h.shape[1] * a_w.shape[1])


# ------------------------------- wrapper ----------------------------------- #
def downproj_block_pallas(x_nchw, params, k, s, p, *, mat_dtype=jnp.float32):
    N, Ci, H, W = x_nchw.shape
    Co = params["w1"].shape[0]
    assert Ci == Co, "DownprojBlock forward requires in_channel == out_channel"
    OH = (H + 2 * p - k) // s + 1
    OW = (W + 2 * p - k) // s + 1
    K_in = Ci * H * W          # 1024 at toy sizes
    K_lo = Co * OH * OW        # 256
    K_hi = Co * H * W          # 1024

    # Fold stride/padding gather + 6x6 kernels into dense operators.
    a_h = _tap_coupling_1d(H, OH, k, s, p)
    a_w = _tap_coupling_1d(W, OW, k, s, p)
    t1 = _fold_conv(params["w1"], a_h, a_w).astype(mat_dtype)
    td = _fold_deconv(params["wd"], a_h, a_w).astype(mat_dtype)
    t2 = _fold_conv(params["w2"], a_h, a_w).astype(mat_dtype)

    # Bias rows broadcast over spatial, matching the (c, h, w) lane order.
    b1r = jnp.broadcast_to(params["b1"][:, None], (Co, OH * OW)).reshape(1, K_lo)
    bdr = jnp.broadcast_to(params["bd"][:, None], (Co, H * W)).reshape(1, K_hi)
    b2r = jnp.broadcast_to(params["b2"][:, None], (Co, OH * OW)).reshape(1, K_lo)
    alphas = jnp.concatenate(
        [params["a1"], params["ad"], params["a2"]]).astype(jnp.float32)

    # Batch tiling: one grid step per batch tile, "parallel" so both v7x
    # TensorCores get work. bt equals the (full) middle dim of the 3-D row
    # array, so the (8,128) block-shape constraint is trivially satisfied.
    bt = 8 if N % 8 == 0 else 1
    nb = N // bt
    x_rows = x_nchw.astype(jnp.float32).reshape(nb, bt, K_in)

    out = pl.pallas_call(
        _downproj_kernel,
        out_shape=jax.ShapeDtypeStruct((nb, bt, K_lo), jnp.float32),
        grid=(nb,),
        in_specs=[
            pl.BlockSpec((1, bt, K_in), lambda i: (i, 0, 0)),      # x rows
            pl.BlockSpec((K_in, K_lo), lambda i: (0, 0)),          # conv_1 op
            pl.BlockSpec((K_lo, K_hi), lambda i: (0, 0)),          # deconv_1 op
            pl.BlockSpec((K_hi, K_lo), lambda i: (0, 0)),          # conv_2 op
            pl.BlockSpec((1, K_lo), lambda i: (0, 0)),             # bias conv_1
            pl.BlockSpec((1, K_hi), lambda i: (0, 0)),             # bias deconv_1
            pl.BlockSpec((1, K_lo), lambda i: (0, 0)),             # bias conv_2
            pl.BlockSpec(memory_space=pltpu.MemorySpace.SMEM),     # PReLU slopes
        ],
        out_specs=pl.BlockSpec((1, bt, K_lo), lambda i: (i, 0, 0)),
        compiler_params=pltpu.CompilerParams(
            dimension_semantics=("parallel",)),
    )(x_rows, t1, td, t2, b1r, bdr, b2r, alphas)

    # Lane order is already (co, oh, ow): this reshape is NCHW directly.
    return out.reshape(N, Co, OH, OW)


# ---------------------------- pure-JAX reference --------------------------- #
def _prelu(y, a):
    return jnp.where(y >= 0, y, a * y)


def ref_forward(x, params, k, s, p):
    dn = ("NCHW", "OIHW", "NCHW")

    def conv(inp, w, b):
        y = lax.conv_general_dilated(inp, w, (s, s), [(p, p), (p, p)],
                                     dimension_numbers=dn)
        return y + b[None, :, None, None]

    def deconv(inp, wt, b):
        w_hat = jnp.flip(wt, axis=(2, 3)).transpose(1, 0, 2, 3)  # (Co, Ci, k, k)
        q = k - 1 - p
        y = lax.conv_general_dilated(inp, w_hat, (1, 1), [(q, q), (q, q)],
                                     lhs_dilation=(s, s), dimension_numbers=dn)
        return y + b[None, :, None, None]

    L0 = _prelu(conv(x, params["w1"], params["b1"]), params["a1"])
    H0 = _prelu(deconv(L0, params["wd"], params["bd"]), params["ad"])
    L1 = _prelu(conv(H0 - x, params["w2"], params["b2"]), params["a2"])
    return L0 + L1


# ----------------------------------- main ----------------------------------- #
if __name__ == "__main__":
    N, Cin, H, W = 2, 4, 16, 16
    Cout = 4
    k, s, p = 6, 2, 2  # DownprojBlock(4, 4, 6, stride=2, padding=2, valid_padding=False)

    key = jax.random.PRNGKey(0)
    keys = jax.random.split(key, 8)
    params = {
        "w1": 0.1 * jax.random.normal(keys[0], (Cout, Cin, k, k), jnp.float32),
        "b1": 0.05 * jax.random.normal(keys[1], (Cout,), jnp.float32),
        "a1": jnp.array([0.2], jnp.float32),  # PReLU(num_parameters=1, init=0.2)
        "wd": 0.1 * jax.random.normal(keys[2], (Cout, Cout, k, k), jnp.float32),  # (Cin,Cout,k,k)
        "bd": 0.05 * jax.random.normal(keys[3], (Cout,), jnp.float32),
        "ad": jnp.array([0.2], jnp.float32),
        "w2": 0.1 * jax.random.normal(keys[4], (Cout, Cout, k, k), jnp.float32),
        "b2": 0.05 * jax.random.normal(keys[5], (Cout,), jnp.float32),
        "a2": jnp.array([0.2], jnp.float32),
    }
    x = jax.random.normal(keys[6], (N, Cin, H, W), jnp.float32)

    ref = ref_forward(x, params, k, s, p)

    # f32 MXU operands: tight check against the f32 reference.
    out_f32 = jax.block_until_ready(
        downproj_block_pallas(x, params, k, s, p, mat_dtype=jnp.float32))
    assert out_f32.shape == ref.shape == (N, Cout, H // s, W // s), \
        (out_f32.shape, ref.shape)
    err_f32 = float(jnp.max(jnp.abs(out_f32 - ref)))
    assert err_f32 < 1e-4, f"f32 path mismatch vs reference: {err_f32}"

    # bf16 MXU operands (f32 accumulation + f32 bias/PReLU/residual epilogue):
    # halves the folded-weight DMA bytes; bf16 operand rounding bounds the abs
    # error at O(1e-2) for these magnitudes, hence the looser tolerance.
    out_bf16 = jax.block_until_ready(
        downproj_block_pallas(x, params, k, s, p, mat_dtype=jnp.bfloat16))
    err_bf16 = float(jnp.max(jnp.abs(out_bf16 - ref)))
    assert err_bf16 < 1e-1, f"bf16 path mismatch vs reference: {err_bf16}"

    print("KERNEL_OK")
</pallas_src>

<mosaic_0001>
module attributes {stable_mosaic.version = 11 : i64} {
  func.func @_downproj_kernel(%arg0: i32, %arg1: memref<1x1x1024xf32, #tpu.memory_space<vmem>>, %arg2: memref<1024x256xf32, #tpu.memory_space<vmem>>, %arg3: memref<256x1024xf32, #tpu.memory_space<vmem>>, %arg4: memref<1024x256xf32, #tpu.memory_space<vmem>>, %arg5: memref<1x256xf32, #tpu.memory_space<vmem>>, %arg6: memref<1x1024xf32, #tpu.memory_space<vmem>>, %arg7: memref<1x256xf32, #tpu.memory_space<vmem>>, %arg8: memref<3xf32, #tpu.memory_space<smem>>, %arg9: memref<1x1x256xf32, #tpu.memory_space<vmem>>) attributes {dimension_semantics = [#tpu.dimension_semantics<parallel>], iteration_bounds = array<i64: 2>, scalar_prefetch = 0 : i64, scratch_operands = 0 : i64, tpu.core_type = #tpu.core_type<tc>, window_params = [{transform_indices = @transform_0, window_bounds = array<i64: 1, 1, 1024>}, {pipeline_mode = #tpu.pipeline_mode<synchronous>, transform_indices = @transform_1, window_bounds = array<i64: 1024, 256>}, {pipeline_mode = #tpu.pipeline_mode<synchronous>, transform_indices = @transform_2, window_bounds = array<i64: 256, 1024>}, {pipeline_mode = #tpu.pipeline_mode<synchronous>, transform_indices = @transform_3, window_bounds = array<i64: 1024, 256>}, {pipeline_mode = #tpu.pipeline_mode<synchronous>, transform_indices = @transform_4, window_bounds = array<i64: 1, 256>}, {pipeline_mode = #tpu.pipeline_mode<synchronous>, transform_indices = @transform_5, window_bounds = array<i64: 1, 1024>}, {pipeline_mode = #tpu.pipeline_mode<synchronous>, transform_indices = @transform_6, window_bounds = array<i64: 1, 256>}, {transform_indices = @transform_7, window_bounds = array<i64: 3>}, {transform_indices = @transform_8, window_bounds = array<i64: 1, 1, 256>}]} {
    %c0 = arith.constant 0 : index
    %c0_0 = arith.constant 0 : index
    %c0_1 = arith.constant 0 : index
    %0 = vector.load %arg1[%c0, %c0_0, %c0_1] : memref<1x1x1024xf32, #tpu.memory_space<vmem>>, vector<1x1x1024xf32>
    %1 = vector.shape_cast %0 : vector<1x1x1024xf32> to vector<1x1024xf32>
    %c0_2 = arith.constant 0 : index
    %2 = memref.load %arg8[%c0_2] : memref<3xf32, #tpu.memory_space<smem>>
    %c1 = arith.constant 1 : index
    %3 = memref.load %arg8[%c1] : memref<3xf32, #tpu.memory_space<smem>>
    %c2 = arith.constant 2 : index
    %4 = memref.load %arg8[%c2] : memref<3xf32, #tpu.memory_space<smem>>
    %c0_3 = arith.constant 0 : index
    %c0_4 = arith.constant 0 : index
    %5 = vector.load %arg2[%c0_3, %c0_4] : memref<1024x256xf32, #tpu.memory_space<vmem>>, vector<1024x256xf32>
    %cst = arith.constant dense<0.000000e+00> : vector<1x256xf32>
    %6 = tpu.matmul %1, %5, %cst {dimension_numbers = #tpu.dot_dimension_numbers<[1], [0], [0], [1], [0, 0, 1, 1], [], []>} : vector<1x1024xf32>, vector<1024x256xf32>, vector<1x256xf32> -> vector<1x256xf32>
    %c0_5 = arith.constant 0 : index
    %c0_6 = arith.constant 0 : index
    %7 = vector.load %arg5[%c0_5, %c0_6] : memref<1x256xf32, #tpu.memory_space<vmem>>, vector<1x256xf32>
    %8 = arith.addf %6, %7 : vector<1x256xf32>
    %cst_7 = arith.constant 0.000000e+00 : f32
    %9 = vector.broadcast %cst_7 : f32 to vector<1x256xf32>
    %10 = arith.cmpf oge, %8, %9 : vector<1x256xf32>
    %11 = vector.broadcast %2 : f32 to vector<1x256xf32>
    %12 = arith.mulf %11, %8 : vector<1x256xf32>
    %13 = arith.select %10, %8, %12 : vector<1x256xi1>, vector<1x256xf32>
    %c0_8 = arith.constant 0 : index
    %c0_9 = arith.constant 0 : index
    %14 = vector.load %arg3[%c0_8, %c0_9] : memref<256x1024xf32, #tpu.memory_space<vmem>>, vector<256x1024xf32>
    %cst_10 = arith.constant dense<0.000000e+00> : vector<1x1024xf32>
    %15 = tpu.matmul %13, %14, %cst_10 {dimension_numbers = #tpu.dot_dimension_numbers<[1], [0], [0], [1], [0, 0, 1, 1], [], []>} : vector<1x256xf32>, vector<256x1024xf32>, vector<1x1024xf32> -> vector<1x1024xf32>
    %c0_11 = arith.constant 0 : index
    %c0_12 = arith.constant 0 : index
    %16 = vector.load %arg6[%c0_11, %c0_12] : memref<1x1024xf32, #tpu.memory_space<vmem>>, vector<1x1024xf32>
    %17 = arith.addf %15, %16 : vector<1x1024xf32>
    %cst_13 = arith.constant 0.000000e+00 : f32
    %18 = vector.broadcast %cst_13 : f32 to vector<1x1024xf32>
    %19 = arith.cmpf oge, %17, %18 : vector<1x1024xf32>
    %20 = vector.broadcast %3 : f32 to vector<1x1024xf32>
    %21 = arith.mulf %20, %17 : vector<1x1024xf32>
    %22 = arith.select %19, %17, %21 : vector<1x1024xi1>, vector<1x1024xf32>
    %23 = arith.subf %22, %1 : vector<1x1024xf32>
    %c0_14 = arith.constant 0 : index
    %c0_15 = arith.constant 0 : index
    %24 = vector.load %arg4[%c0_14, %c0_15] : memref<1024x256xf32, #tpu.memory_space<vmem>>, vector<1024x256xf32>
    %cst_16 = arith.constant dense<0.000000e+00> : vector<1x256xf32>
    %25 = tpu.matmul %23, %24, %cst_16 {dimension_numbers = #tpu.dot_dimension_numbers<[1], [0], [0], [1], [0, 0, 1, 1], [], []>} : vector<1x1024xf32>, vector<1024x256xf32>, vector<1x256xf32> -> vector<1x256xf32>
    %c0_17 = arith.constant 0 : index
    %c0_18 = arith.constant 0 : index
    %26 = vector.load %arg7[%c0_17, %c0_18] : memref<1x256xf32, #tpu.memory_space<vmem>>, vector<1x256xf32>
    %27 = arith.addf %25, %26 : vector<1x256xf32>
    %cst_19 = arith.constant 0.000000e+00 : f32
    %28 = vector.broadcast %cst_19 : f32 to vector<1x256xf32>
    %29 = arith.cmpf oge, %27, %28 : vector<1x256xf32>
    %30 = vector.broadcast %4 : f32 to vector<1x256xf32>
    %31 = arith.mulf %30, %27 : vector<1x256xf32>
    %32 = arith.select %29, %27, %31 : vector<1x256xi1>, vector<1x256xf32>
    %33 = arith.addf %32, %13 : vector<1x256xf32>
    %c0_20 = arith.constant 0 : index
    %c0_21 = arith.constant 0 : index
    %c0_22 = arith.constant 0 : index
    %34 = vector.load %arg9[%c0_20, %c0_21, %c0_22] : memref<1x1x256xf32, #tpu.memory_space<vmem>>, vector<1x1x256xf32>
    %35 = vector.shape_cast %34 : vector<1x1x256xf32> to vector<1x256xf32>
    %36 = vector.shape_cast %33 : vector<1x256xf32> to vector<1x1x256xf32>
    tpu.vector_store %arg9[%c0_20, %c0_21, %c0_22], %36 {strides = array<i32>} : memref<1x1x256xf32, #tpu.memory_space<vmem>>, vector<1x1x256xf32>,
    return
  }
  func.func @transform_0(%arg0: i32) -> (i32, i32, i32) {
    %c0_i32 = arith.constant 0 : i32
    %c0_i32_0 = arith.constant 0 : i32
    %c0_i32_1 = arith.constant 0 : i32
    return %arg0, %c0_i32, %c0_i32_0 : i32, i32, i32
  }
  func.func @transform_1(%arg0: i32) -> (i32, i32) {
    %c0_i32 = arith.constant 0 : i32
    %c0_i32_0 = arith.constant 0 : i32
    %c0_i32_1 = arith.constant 0 : i32
    return %c0_i32, %c0_i32_0 : i32, i32
  }
  func.func @transform_2(%arg0: i32) -> (i32, i32) {
    %c0_i32 = arith.constant 0 : i32
    %c0_i32_0 = arith.constant 0 : i32
    %c0_i32_1 = arith.constant 0 : i32
    return %c0_i32, %c0_i32_0 : i32, i32
  }
  func.func @transform_3(%arg0: i32) -> (i32, i32) {
    %c0_i32 = arith.constant 0 : i32
    %c0_i32_0 = arith.constant 0 : i32
    %c0_i32_1 = arith.constant 0 : i32
    return %c0_i32, %c0_i32_0 : i32, i32
  }
  func.func @transform_4(%arg0: i32) -> (i32, i32) {
    %c0_i32 = arith.constant 0 : i32
    %c0_i32_0 = arith.constant 0 : i32
    %c0_i32_1 = arith.constant 0 : i32
    return %c0_i32, %c0_i32_0 : i32, i32
  }
  func.func @transform_5(%arg0: i32) -> (i32, i32) {
    %c0_i32 = arith.constant 0 : i32
    %c0_i32_0 = arith.constant 0 : i32
    %c0_i32_1 = arith.constant 0 : i32
    return %c0_i32, %c0_i32_0 : i32, i32
  }
  func.func @transform_6(%arg0: i32) -> (i32, i32) {
    %c0_i32 = arith.constant 0 : i32
    %c0_i32_0 = arith.constant 0 : i32
    %c0_i32_1 = arith.constant 0 : i32
    return %c0_i32, %c0_i32_0 : i32, i32
  }
  func.func @transform_7(%arg0: i32) -> i32 {
    %c0_i32 = arith.constant 0 : i32
    %c0_i32_0 = arith.constant 0 : i32
    return %c0_i32 : i32
  }
  func.func @transform_8(%arg0: i32) -> (i32, i32, i32) {
    %c0_i32 = arith.constant 0 : i32
    %c0_i32_0 = arith.constant 0 : i32
    %c0_i32_1 = arith.constant 0 : i32
    return %arg0, %c0_i32, %c0_i32_0 : i32, i32, i32
  }
}

</mosaic_0001>

<bundles_post_ra>
// kernel: tpu_custom_call.1
= control target key start
LH: loop header
LB: loop body
LE: loop exit
PB: predicated region body
PF: predicated region fallthrough
CT: control target
= control target key end

     0   :  { %s3889_s0 = inlined_call_operand.hbm [shape: f32[2,1,1024], index: 0, kind: input, shape index: {}]   ;;  %s3890_s1 = inlined_call_operand.hbm [shape: f32[1024,256], index: 1, kind: input, shape index: {}]   ;;  %s3891_s2 = inlined_call_operand.hbm [shape: f32[256,1024], index: 2, kind: input, shape index: {}]   ;;  %s3892_s3 = inlined_call_operand.hbm [shape: f32[1024,256], index: 3, kind: input, shape index: {}]   ;;  %s3893_s4 = inlined_call_operand.vmem [shape: f32[1,256], index: 4, kind: input, shape index: {}]   ;;  %s3894_s5 = inlined_call_operand.vmem [shape: f32[1,1024], index: 5, kind: input, shape index: {}]   ;;  %s3895_s6 = inlined_call_operand.vmem [shape: f32[1,256], index: 6, kind: input, shape index: {}]   ;;  %s3896_s7 = inlined_call_operand.vmem [shape: f32[3], index: 7, kind: input, shape index: {}]   ;;  %s3897_s8 = inlined_call_operand.hbm [shape: f32[2,1,256], index: 8, kind: output, shape index: {}]  }
   0x1   :  { %3904 = sst [smem:[#allocation18_spill]] %s3890_s1 }
   0x2   :  { %3905 = sst [smem:[#allocation19_spill]] %s3897_s8 }
   0x3   :  { %13 = vsyncpa [#allocation3], 0 }
   0x4   :  { %15 = vsyncpa [#allocation3 + $0x1], 0 }
   0x5   :  { %16 = vsyncpa [#allocation7], 0 }
   0x6   :  { %17 = vsyncpa [#allocation10], 0 }
   0x7   :  { %18 = vsyncpa [#allocation5], 0 }
   0x8   :  { %19 = vsyncpa [#allocation4], 0 }
   0x9   :  { %21 = vsyncpa [#allocation4 + $0x1], 0  ;;  %s3476_s27 = smov 0   ;;  %s3478_s28 = smov 0  }
   0xa   :  { %s3480_s29 = smov 0   ;;  %s3482_s30 = smov 0  }
   0xb LB: > { %s3420_s9 = smov [#allocation6]   ;;  %s3497_s11 = sadd.s32 4294967295, %s3418_s30   ;;  %s3418_s30 = sphi %s3482_s30, %s3932_s30   ;;  %s3414_s29 = sphi %s3480_s29, %s3931_s29   ;;  %s3410_s28 = sphi %s3478_s28, %s3930_s28   ;;  %s3406_s27 = sphi %s3476_s27, %s3929_s27  }
   0xc   : > { %s243_s10 = sshll.u32 %s3420_s9, 4  ;;  %p2310_p0 = scmp.ge.s32.totalorder %s3418_s30, 1  ;;  %s3502_s10 = int_to_ptr.vmem [resolvable:$true] %s243_s10 }
   0xd   : > { %p3901_p1 = scmp.eq.s32.totalorder %s3497_s11, 0  ;;  %p231_p2 = scmp.lt.s32.totalorder %s3418_s30, 3 }
   0xe   : > { %s3421_s13 = smov [#allocation8]   ;;  %s3422_s16 = smov [#allocation9]  }
   0xf   : > { %p3504_p3 = pnand %p2310_p0, %p231_p2  ;;  %s256_s14 = sshll.u32 %s3421_s13, 4  ;;  %s3517_s14 = int_to_ptr.vmem [resolvable:$true] %s256_s14 }
  0x10   : > { %s3519_s17 = sshll.u32 %s3422_s16, 4  ;;  %s3908_s1 = sld [smem:[#allocation18_spill]]  ;;  %s270_s17 = int_to_ptr.vmem [resolvable:$true] %s3519_s17 }
  0x11   : > { %s3906_s12 = scalar_select %p3504_p3, 1, 0 }
  0x12   : > { %p3139_p5 = pneg %p3504_p3 }
  0x14   : > { %p3513_p6 = pnand %p3139_p5, %p3901_p1 }
  0x16   : > { %s3211_s20 = scalar_lea.hbm %s3908_s1, 32768  ;;  %p3529_p8 = pneg %p3513_p6 }
  0x17   : > { %p3212_p7 = scmp.ne.s32.totalorder %s3908_s1, %s3211_s20  ;;  %p3218_p11 = scmp.lt.u32.totalorder %s3211_s20, %s3908_s1 }
  0x19   : > { %p3214_p9 = pnand %p3529_p8, %p3212_p7 }
  0x1b   : > { %p3215_p10 = pneg %p3214_p9 }
  0x1d   : > { %p3220_p12 = pnand %p3218_p11, %p3215_p10 }
  0x1f   : > { %3223 = shalt.err (!%p3220_p12)
}
  0x20   : > { %s3224_s26 = scalar_lea.vmem %s3502_s10, 32768  ;;  %p3232_p5 = scmp.lt.s32.totalorder %s3502_s10, %s3502_s10 }
  0x21   : > { %p3225_p13 = scmp.ne.s32.totalorder %s3502_s10, %s3224_s26  ;;  %p3233_p4 = scmp.lt.s32.totalorder %s3224_s26, %s3224_s26 }
  0x23   : > { %p3227_p0 = pnand %p3225_p13, %p3529_p8  ;;  %p3234_p7 = por %p3233_p4, %p3232_p5 }
  0x25   : > { %p3228_p2 = pneg %p3227_p0 }
  0x27   : > { %p3235_p9 = pnand %p3234_p7, %p3228_p2 }
  0x29   : > { %3238 = shalt.err (!%p3235_p9)
}
  0x2a   : > { %s3898_s9 = smov 256   ;;  %s3899_s13 = smov 16  }
  0x2b   : > { %3142 = dma.hbm_to_vmem [thread:$0]  (!%p3513_p6), %s3908_s1, 32768, %s3502_s10, [#allocation7], %s3898_s9, %s3898_s9, %s3899_s13  }
  0x2c   : > { %s3239_s21 = scalar_lea.hbm %s3891_s2, 32768 }
  0x2d   : > { %p3240_p4 = scmp.ne.s32.totalorder %s3891_s2, %s3239_s21  ;;  %p3246_p12 = scmp.lt.u32.totalorder %s3239_s21, %s3891_s2 }
  0x2f   : > { %p3242_p10 = pnand %p3240_p4, %p3529_p8 }
  0x31   : > { %p3243_p11 = pneg %p3242_p10 }
  0x33   : > { %p3248_p13 = pnand %p3246_p12, %p3243_p11 }
  0x35   : > { %3251 = shalt.err (!%p3248_p13)
}
  0x36   : > { %s3252_s10 = scalar_lea.vmem %s3517_s14, 32768  ;;  %p3260_p7 = scmp.lt.s32.totalorder %s3517_s14, %s3517_s14 }
  0x37   : > { %p3253_p0 = scmp.ne.s32.totalorder %s3517_s14, %s3252_s10  ;;  %p3261_p9 = scmp.lt.s32.totalorder %s3252_s10, %s3252_s10 }
  0x39   : > { %p3255_p2 = pnand %p3253_p0, %p3529_p8  ;;  %p3262_p4 = por %p3261_p9, %p3260_p7 }
  0x3b   : > { %p3256_p5 = pneg %p3255_p2 }
  0x3d   : > { %p3263_p10 = pnand %p3262_p4, %p3256_p5 }
  0x3f   : > { %3266 = shalt.err (!%p3263_p10)
}
  0x40   : > { %s3425_s16 = smov 1024   ;;  %s3426_s18 = smov 64  }
  0x41   : > { %3145 = dma.hbm_to_vmem [thread:$0]  (!%p3513_p6), %s3891_s2, 32768, %s3517_s14, [#allocation7], %s3425_s16, %s3425_s16, %s3426_s18  }
  0x42   : > { %s292_s24 = sshll.u32 %s3896_s7, 4  ;;  %s3267_s10 = scalar_lea.hbm %s3892_s3, 32768  ;;  %s293_s24 = int_to_ptr.vmem [resolvable:$true] %s292_s24 }
  0x43   : > { %p3268_p11 = scmp.ne.s32.totalorder %s3892_s3, %s3267_s10  ;;  %p3274_p0 = scmp.lt.u32.totalorder %s3267_s10, %s3892_s3 }
  0x45   : > { %p3270_p12 = pnand %p3268_p11, %p3529_p8 }
  0x47   : > { %p3271_p13 = pneg %p3270_p12 }
  0x49   : > { %p3276_p2 = pnand %p3274_p0, %p3271_p13 }
  0x4b   : > { %3279 = shalt.err (!%p3276_p2)
}
  0x4c   : > { %s3280_s14 = scalar_lea.vmem %s270_s17, 32768  ;;  %p3288_p4 = scmp.lt.s32.totalorder %s270_s17, %s270_s17 }
  0x4d   : > { %p3281_p5 = scmp.ne.s32.totalorder %s270_s17, %s3280_s14  ;;  %p3289_p10 = scmp.lt.s32.totalorder %s3280_s14, %s3280_s14 }
  0x4f   : > { %p3283_p7 = pnand %p3281_p5, %p3529_p8  ;;  %p3290_p1 = por %p3289_p10, %p3288_p4 }
  0x51   : > { %p3284_p9 = pneg %p3283_p7 }
  0x53   : > { %p3291_p3 = pnand %p3290_p1, %p3284_p9 }
  0x55   : > { %3294 = shalt.err (!%p3291_p3)
}
  0x56   : > { %s3910_s9 = smov 16   ;;  %s3911_s13 = smov 256  }
  0x57   : > { %3148 = dma.hbm_to_vmem [thread:$0]  (!%p3513_p6), %s3892_s3, 32768, %s270_s17, [#allocation10], %s3911_s13, %s3911_s13, %s3910_s9  }
  0x58   : > { %s3295_s16 = scalar_lea.vmem %s293_s24, 16  ;;  %p3303_p0 = scmp.lt.s32.totalorder %s293_s24, %s293_s24 }
  0x59   : > { %p3296_p11 = scmp.ne.s32.totalorder %s293_s24, %s3295_s16  ;;  %p3304_p2 = scmp.lt.s32.totalorder %s3295_s16, %s3295_s16 }
  0x5b   : > { %p3298_p12 = pnand %p3296_p11, %p3529_p8  ;;  %p3305_p1 = por %p3304_p2, %p3303_p0 }
  0x5d   : > { %p3299_p13 = pneg %p3298_p12 }
  0x5f   : > { %p3306_p3 = pnand %p3305_p1, %p3299_p13 }
  0x61   : > { %3309 = shalt.err (!%p3306_p3)
}
  0x62   : > { %s3427_s18 = smov [#allocation11]   ;;  %s2309_s17 = sadd.s32 4294967294, %s3418_s30  }
  0x63   : > { %3151 = dma.vmem_to_smem (!%p3513_p6), %s293_s24, 16, %s3427_s18, [#allocation5]  }
  0x64   : > { %s3607_s23 = sadd.s32 1, %s3418_s30   ;;  %s34_s19 = sadd.s32 1, %s3414_s29 }
  0x65   : > { %s31_s15 = ssub.s32 %s3418_s30, %s3607_s23  ;;  %p41_p5 = scmp.ne.s32.totalorder %s3414_s29, %s3410_s28 }
  0x66   : > { %p32_p8 = scmp.eq.s32.totalorder %s31_s15, 0  ;;  %p42_p7 = scmp.eq.s32.totalorder %s3418_s30, 0 }
  0x67   : > { %p47_p9 = scmp.ne.s32.totalorder %s3410_s28, %s3406_s27  ;;  %p3913_p10 = scmp.eq.s32.totalorder %s3497_s11, 0 }
  0x68   : > { %s3618_s20 = scalar_select %p32_p8, %s3414_s29, %s34_s19  }
  0x69   : > { %p3620_p4 = por %p42_p7, %p41_p5  ;;  %p3626_p6 = por %p3913_p10, %p47_p9 }
  0x6a   : > { %p218_p11 = scmp.eq.s32.totalorder %s3497_s11, 1  ;;  %p224_p12 = scmp.eq.s32.totalorder %s2309_s17, 1 }
  0x6b   : > { %p3164_p13 = scmp.lt.s32.totalorder %s3418_s30, 2  ;;  %s303_s24 = sand.u32 1, %s3414_s29  }
  0x6c   : > { %p3633_p0 = por %p218_p11, %p41_p5  ;;  %p3637_p2 = por %p224_p12, %p47_p9 }
  0x6d   : > { %s2316_s10 = sshll.u32 %s303_s24, 3  ;;  %s2333_s14 = sshll.u32 %s3418_s30, 7 }
  0x6e   : > { %s3915_s25 = scalar_select %p3633_p0, 1, 0 }
  0x6f   : > { %s3916_s26 = scalar_select %p3637_p2, 1, 0 }
  0x70   : > { %s3645_s1 = scalar_lea.hbm %s3889_s0, %s2333_s14  ;;  %s307_s8 = scalar_lea.vmem [#allocation2], %s2316_s10 }
  0x71   : > { %s315_s16 = sshll.u32 %s307_s8, 4  ;;  %p3651_p1 = pnand %p3164_p13, %p3620_p4  ;;  %s3647_s16 = int_to_ptr.vmem [resolvable:$true] %s315_s16 }
  0x72   : > { %s304_s17 = scalar_lea.sflag [#allocation3], %s303_s24  ;;  %s3310_s15 = scalar_lea.hbm %s3645_s1, 128 }
  0x73   : > { %p3311_p3 = scmp.ne.s32.totalorder %s3645_s1, %s3310_s15  ;;  %p3312_p8 = pneg %p3651_p1 }
  0x74   : > { %s3315_s14 = scalar_lea.hbm %s3889_s0, 256  ;;  %p3316_p9 = scmp.lt.u32.totalorder %s3645_s1, %s3889_s0 }
  0x75   : > { %p3313_p5 = pnand %p3312_p8, %p3311_p3  ;;  %p3317_p4 = scmp.lt.u32.totalorder %s3315_s14, %s3310_s15 }
  0x76   : > { %p3319_p11 = scmp.lt.u32.totalorder %s3310_s15, %s3645_s1 }
  0x77   : > { %p3314_p7 = pneg %p3313_p5  ;;  %p3318_p10 = por %p3317_p4, %p3316_p9 }
  0x79   : > { %p3320_p12 = por %p3319_p11, %p3318_p10 }
  0x7b   : > { %p3321_p13 = pnand %p3320_p12, %p3314_p7 }
  0x7d   : > { %3324 = shalt.err (!%p3321_p13)
}
  0x7e   : > { %s3325_s24 = scalar_lea.vmem %s3647_s16, 128  ;;  %s3428_s13 = smov [#allocation2]  }
  0x7f   : > { %p3326_p3 = scmp.ne.s32.totalorder %s3647_s16, %s3325_s24  ;;  %s3330_s8 = sshll.u32 %s3428_s13, 4  ;;  %s3331_s8 = int_to_ptr.vmem [resolvable:$false] %s3330_s8 }
  0x80   : > { %s3332_s19 = scalar_lea.vmem %s3331_s8, 256  ;;  %p3333_p0 = scmp.lt.s32.totalorder %s3647_s16, %s3331_s8 }
  0x81   : > { %p3328_p5 = pnand %p3326_p3, %p3312_p8  ;;  %p3334_p9 = scmp.lt.s32.totalorder %s3332_s19, %s3325_s24 }
  0x83   : > { %p3329_p2 = pneg %p3328_p5  ;;  %p3335_p4 = por %p3334_p9, %p3333_p0 }
  0x85   : > { %p3336_p10 = pnand %p3335_p4, %p3329_p2 }
  0x87   : > { %3339 = shalt.err (!%p3336_p10)
}
  0x88   : > { %3155 = dma.hbm_to_vmem [thread:$0]  (!%p3651_p1), %s3645_s1, 128, %s3647_s16, %s304_s17  }
  0x89   : > { %p3918_p7 = scmp.ne.s32.totalorder %s3906_s12, 0 }
  0x8a   : > { %s3683_s15 = sand.u32 (!%p3918_p7), 1, %s3410_s28  }
  0x8b   : > { %324 = sbr.rel (%p3918_p7) target bundleno = 1164 (0x48c), region = 52  ;;  %s2320_s10 = sshll.u32 (!%p3918_p7), %s3683_s15, 3 }
  0x8c   : > { %s327_s14 = scalar_lea.sflag (!%p3918_p7), [#allocation3], %s3683_s15  ;;  %s3687_s21 = scalar_lea.vmem (!%p3918_p7), [#allocation2], %s2320_s10 }
  0x92   : > { %3385 = dma.done.wait (%p3626_p6), %s327_s14, 128  }
  0x93   : > { %3387 = vsyncadd (%p3626_p6), %s327_s14, 4294967168  ;;  %p3919_p0 = scmp.eq.s32.totalorder %s3497_s11, 0 }
  0x95   : > { %3389 = dma.done.wait (%p3919_p0), [#allocation7], 65536   ;;  %p3920_p2 = pmov %p3919_p0 }
  0x96   : > { %p3921_p1 = pmov %p3919_p0 }
  0x97   : > { %3391 = vsyncadd (%p3920_p2), [#allocation7], 4294901760 }
  0x98   : > { %3393 = dma.done.wait (%p3921_p1), [#allocation10], 32768   ;;  %p3922_p8 = pmov %p3919_p0 }
  0x99   : > { %p3923_p11 = pmov %p3919_p0 }
  0x9a   : > { %3395 = vsyncadd (%p3922_p8), [#allocation10], 4294934528 }
  0x9b   : > { %3397 = dma.done.wait (%p3923_p11), [#allocation5], 16   ;;  %p3924_p12 = pmov %p3919_p0 }
  0x9d   : > { %3399 = vsyncadd (%p3924_p12), [#allocation5], 4294967280 }
  0x9e   : > { %351 = sfence }
  0x9f   : > { %v385_v0 = vld [vmem:[#allocation6 + $0x8] sm:$0xff]  ;;  %v387_v1 = vld [vmem:[#allocation6 + $0x18] sm:$0xff]  ;;  %v384_v5 = vld [vmem:[#allocation6] sm:$0xff]  ;;  %s381_s1 = sld [smem:[#allocation11]]  ;;  %s2326_s16 = sld [smem:[#allocation11 + $0x1]] }
  0xa0   : > { %v513_v2 = vld [vmem:[#allocation6 + $0x408] sm:$0xff]  ;;  %v2335_v3 = vpack.c.bf16 %v387_v1, %v385_v0  ;;  %v515_v4 = vld [vmem:[#allocation6 + $0x418] sm:$0xff]  ;;  %v386_v6 = vld [vmem:[#allocation6 + $0x10] sm:$0xff]  ;;  %s2327_s9 = sld [smem:[#allocation11 + $0x2]]  ;;  %s2325_s8 = sshll.u32 %s3683_s15, 1 }
  0xa1   : > { %v2463_v7 = vpack.c.bf16 %v515_v4, %v513_v2  ;;  %v2337_v8 = vpack.c.bf16 %v386_v6, %v384_v5  ;;  %v512_v9 = vld [vmem:[#allocation6 + $0x400] sm:$0xff]  ;;  %v514_v10 = vld [vmem:[#allocation6 + $0x410] sm:$0xff]  ;;  %v389_v11 = vld [vmem:[#allocation6 + $0x28] sm:$0xff]  ;;  %s2334_s19 = sshll.u32 %s3497_s11, 5  ;;  %s379_s10 = scalar_lea.vmem [#allocation12], %s2325_s8 }
  0xa2   : > { %2336 = vmatprep.subr.bf16.mxu1 %v2335_v3  ;;  %v2465_v12 = vpack.c.bf16 %v514_v10, %v512_v9  ;;  %v391_v13 = vld [vmem:[#allocation6 + $0x38] sm:$0xff]  ;;  %v517_v14 = vld [vmem:[#allocation6 + $0x428] sm:$0xff]  ;;  %v388_v18 = vld [vmem:[#allocation6 + $0x20] sm:$0xff]  ;;  %s2198_s14 = sshll.u32 %s379_s10, 4  ;;  %s3925_s22 = sld [smem:[#allocation19_spill]]  ;;  %s3847_s14 = int_to_ptr.vmem [resolvable:$true] %s2198_s14 }
  0xa3   : > { %v519_v15 = vld [vmem:[#allocation6 + $0x438] sm:$0xff]  ;;  %2464 = vmatprep.subr.bf16.mxu0 %v2463_v7  ;;  %2338 = vmatpush1.bf16.msra.mxu1 %v2337_v8  ;;  %v2339_v16 = vpack.c.bf16 %v391_v13, %v389_v11  ;;  %v390_v19 = vld [vmem:[#allocation6 + $0x30] sm:$0xff]  ;;  %v516_v20 = vld [vmem:[#allocation6 + $0x420] sm:$0xff]  ;;  %s3340_s18 = scalar_lea.vmem %s3847_s14, 32  ;;  %p3926_p13 = scmp.ne.s32.totalorder %s3915_s25, 0 }
  0xa4   : > { %v2467_v17 = vpack.c.bf16 %v519_v15, %v517_v14  ;;  %2466 = vmatpush1.bf16.msra.mxu0 %v2465_v12  ;;  %v2341_v21 = vpack.c.bf16 %v390_v19, %v388_v18  ;;  %v518_v22 = vld [vmem:[#allocation6 + $0x430] sm:$0xff]  ;;  %v393_v23 = vld [vmem:[#allocation6 + $0x48] sm:$0xff]  ;;  %v395_v24 = vld [vmem:[#allocation6 + $0x58] sm:$0xff]  ;;  %p3341_p6 = scmp.ne.s32.totalorder %s3847_s14, %s3340_s18  ;;  %s3430_s11 = smov [#allocation12]  }
  0xa5   : > { %2340 = vmatprep.subr.bf16.mxu1 %v2339_v16  ;;  %v2469_v25 = vpack.c.bf16 %v518_v22, %v516_v20  ;;  %v2343_v26 = vpack.c.bf16 %v395_v24, %v393_v23  ;;  %v521_v27 = vld [vmem:[#allocation6 + $0x448] sm:$0xff]  ;;  %v523_v28 = vld [vmem:[#allocation6 + $0x458] sm:$0xff]  ;;  %v392_v29 = vld [vmem:[#allocation6 + $0x40] sm:$0xff]  ;;  %s3344_s17 = sshll.u32 %s3430_s11, 4  ;;  %s3345_s17 = int_to_ptr.vmem [resolvable:$false] %s3344_s17 }
  0xa6   : > { %2468 = vmatprep.subr.bf16.mxu0 %v2467_v17  ;;  %v2471_v30 = vpack.c.bf16 %v523_v28, %v521_v27  ;;  %v394_v31 = vld [vmem:[#allocation6 + $0x50] sm:$0xff]  ;;  %v520_v32 = vld [vmem:[#allocation6 + $0x440] sm:$0xff]  ;;  %v397_v35 = vld [vmem:[#allocation6 + $0x68] sm:$0xff]  ;;  %p3342_p3 = pnand %p3341_p6, %p3926_p13  ;;  %p3347_p9 = scmp.lt.s32.totalorder %s3847_s14, %s3345_s17 }
  0xa7   : > { %v522_v33 = vld [vmem:[#allocation6 + $0x450] sm:$0xff]  ;;  %2342 = vmatpush1.bf16.msra.mxu1 %v2341_v21  ;;  %v2345_v34 = vpack.c.bf16 %v394_v31, %v392_v29  ;;  %v399_v36 = vld [vmem:[#allocation6 + $0x78] sm:$0xff]  ;;  %v525_v37 = vld [vmem:[#allocation6 + $0x468] sm:$0xff] }
  0xa8   : > { %2470 = vmatpush1.bf16.msra.mxu0 %v2469_v25  ;;  %2344 = vmatprep.subr.bf16.mxu1 %v2343_v26  ;;  %v2473_v38 = vpack.c.bf16 %v522_v33, %v520_v32  ;;  %v2347_v39 = vpack.c.bf16 %v399_v36, %v397_v35  ;;  %v527_v40 = vld [vmem:[#allocation6 + $0x478] sm:$0xff]  ;;  %v396_v41 = vld [vmem:[#allocation6 + $0x60] sm:$0xff]  ;;  %v398_v42 = vld [vmem:[#allocation6 + $0x70] sm:$0xff]  ;;  %p3343_p5 = pneg %p3342_p3 }
  0xa9   : > { %2472 = vmatprep.subr.bf16.mxu0 %v2471_v30  ;;  %v2475_v43 = vpack.c.bf16 %v527_v40, %v525_v37  ;;  %v524_v44 = vld [vmem:[#allocation6 + $0x460] sm:$0xff]  ;;  %v526_v45 = vld [vmem:[#allocation6 + $0x470] sm:$0xff]  ;;  %v401_v46 = vld [vmem:[#allocation6 + $0x88] sm:$0xff]  ;;  %v2349_v50 = vpack.c.bf16 %v398_v42, %v396_v41 }
  0xaa   : > { %v403_v47 = vld [vmem:[#allocation6 + $0x98] sm:$0xff]  ;;  %v529_v48 = vld [vmem:[#allocation6 + $0x488] sm:$0xff]  ;;  %v2477_v51 = vpack.c.bf16 %v526_v45, %v524_v44  ;;  %v400_v53 = vld [vmem:[#allocation6 + $0x80] sm:$0xff] }
  0xab   : > { %v531_v49 = vld [vmem:[#allocation6 + $0x498] sm:$0xff]  ;;  %2346 = vmatpush1.bf16.msra.mxu1 %v2345_v34  ;;  %v2351_v52 = vpack.c.bf16 %v403_v47, %v401_v46  ;;  %v402_v54 = vld [vmem:[#allocation6 + $0x90] sm:$0xff]  ;;  %v528_v55 = vld [vmem:[#allocation6 + $0x480] sm:$0xff]  ;;  %v642_v46 = vlaneseq }
  0xac   : > { %2474 = vmatpush1.bf16.msra.mxu0 %v2473_v38  ;;  %2348 = vmatprep.subr.bf16.mxu1 %v2347_v39  ;;  %v2479_v56 = vpack.c.bf16 %v531_v49, %v529_v48  ;;  %v530_v57 = vld [vmem:[#allocation6 + $0x490] sm:$0xff]  ;;  %v405_v58 = vld [vmem:[#allocation6 + $0xa8] sm:$0xff]  ;;  %v407_v59 = vld [vmem:[#allocation6 + $0xb8] sm:$0xff]  ;;  %v2353_v62 = vpack.c.bf16 %v402_v54, %v400_v53 }
  0xad   : > { %2476 = vmatprep.subr.bf16.mxu0 %v2475_v43  ;;  %v533_v60 = vld [vmem:[#allocation6 + $0x4a8] sm:$0xff]  ;;  %v535_v61 = vld [vmem:[#allocation6 + $0x4b8] sm:$0xff]  ;;  %v2481_v63 = vpack.c.bf16 %v530_v57, %v528_v55  ;;  %v2355_v0 = vpack.c.bf16 %v407_v59, %v405_v58  ;;  %v404_v1 = vld [vmem:[#allocation6 + $0xa0] sm:$0xff]  ;;  %v3706_v59 = vshrl.u32 %v642_v46, 7  ;;  %vm2180_vm12 = vcmp.lt.s32.totalorder %v642_v46, 256 }
  0xae   : > { %v406_v2 = vld [vmem:[#allocation6 + $0xb0] sm:$0xff]  ;;  %v532_v3 = vld [vmem:[#allocation6 + $0x4a0] sm:$0xff]  ;;  %v2483_v4 = vpack.c.bf16 %v535_v61, %v533_v60  ;;  %v409_v6 = vld [vmem:[#allocation6 + $0xc8] sm:$0xff] }
  0xaf   : > { %2350 = vmatpush1.bf16.msra.mxu1 %v2349_v50  ;;  %v534_v5 = vld [vmem:[#allocation6 + $0x4b0] sm:$0xff]  ;;  %v411_v7 = vld [vmem:[#allocation6 + $0xd8] sm:$0xff]  ;;  %v537_v8 = vld [vmem:[#allocation6 + $0x4c8] sm:$0xff]  ;;  %v2357_v10 = vpack.c.bf16 %v406_v2, %v404_v1 }
  0xb0   : > { %2478 = vmatpush1.bf16.msra.mxu0 %v2477_v51  ;;  %2352 = vmatprep.subr.bf16.mxu1 %v2351_v52  ;;  %v539_v9 = vld [vmem:[#allocation6 + $0x4d8] sm:$0xff]  ;;  %v2485_v11 = vpack.c.bf16 %v534_v5, %v532_v3  ;;  %v2359_v12 = vpack.c.bf16 %v411_v7, %v409_v6  ;;  %v408_v13 = vld [vmem:[#allocation6 + $0xc0] sm:$0xff]  ;;  %v410_v14 = vld [vmem:[#allocation6 + $0xd0] sm:$0xff] }
  0xb1   : > { %2480 = vmatprep.subr.bf16.mxu0 %v2479_v56  ;;  %v536_v15 = vld [vmem:[#allocation6 + $0x4c0] sm:$0xff]  ;;  %v2487_v16 = vpack.c.bf16 %v539_v9, %v537_v8  ;;  %v538_v17 = vld [vmem:[#allocation6 + $0x4d0] sm:$0xff]  ;;  %v413_v18 = vld [vmem:[#allocation6 + $0xe8] sm:$0xff]  ;;  %v2361_v22 = vpack.c.bf16 %v410_v14, %v408_v13  ;;  %v3709_v8 = vsub.s32 1, %v3706_v59  ;;  %v664_v9 = vsub.s32 5, %v3706_v59 }
  0xb2   : > { %v415_v19 = vld [vmem:[#allocation6 + $0xf8] sm:$0xff]  ;;  %v541_v20 = vld [vmem:[#allocation6 + $0x4e8] sm:$0xff]  ;;  %v2489_v23 = vpack.c.bf16 %v538_v17, %v536_v15  ;;  %v412_v25 = vld [vmem:[#allocation6 + $0xe0] sm:$0xff] }
  0xb3   : > { %2354 = vmatpush1.bf16.msra.mxu1 %v2353_v62  ;;  %v543_v21 = vld [vmem:[#allocation6 + $0x4f8] sm:$0xff]  ;;  %v2363_v24 = vpack.c.bf16 %v415_v19, %v413_v18  ;;  %v414_v26 = vld [vmem:[#allocation6 + $0xf0] sm:$0xff]  ;;  %v540_v27 = vld [vmem:[#allocation6 + $0x4e0] sm:$0xff] }
  0xb4   : > { %2482 = vmatpush1.bf16.msra.mxu0 %v2481_v63  ;;  %2356 = vmatprep.subr.bf16.mxu1 %v2355_v0  ;;  %v2491_v28 = vpack.c.bf16 %v543_v21, %v541_v20  ;;  %v542_v29 = vld [vmem:[#allocation6 + $0x4f0] sm:$0xff]  ;;  %v417_v30 = vld [vmem:[#allocation6 + $0x108] sm:$0xff]  ;;  %v419_v31 = vld [vmem:[#allocation6 + $0x118] sm:$0xff]  ;;  %v2365_v34 = vpack.c.bf16 %v414_v26, %v412_v25 }
  0xb5   : > { %2484 = vmatprep.subr.bf16.mxu0 %v2483_v4  ;;  %v545_v32 = vld [vmem:[#allocation6 + $0x508] sm:$0xff]  ;;  %v547_v33 = vld [vmem:[#allocation6 + $0x518] sm:$0xff]  ;;  %v2493_v35 = vpack.c.bf16 %v542_v29, %v540_v27  ;;  %v2367_v36 = vpack.c.bf16 %v419_v31, %v417_v30  ;;  %v416_v37 = vld [vmem:[#allocation6 + $0x100] sm:$0xff] }
  0xb6   : > { %v418_v38 = vld [vmem:[#allocation6 + $0x110] sm:$0xff]  ;;  %v544_v39 = vld [vmem:[#allocation6 + $0x500] sm:$0xff]  ;;  %v2495_v40 = vpack.c.bf16 %v547_v33, %v545_v32  ;;  %v421_v42 = vld [vmem:[#allocation6 + $0x128] sm:$0xff] }
  0xb7   : > { %2358 = vmatpush1.bf16.msra.mxu1 %v2357_v10  ;;  %v546_v41 = vld [vmem:[#allocation6 + $0x510] sm:$0xff]  ;;  %v423_v43 = vld [vmem:[#allocation6 + $0x138] sm:$0xff]  ;;  %v549_v44 = vld [vmem:[#allocation6 + $0x528] sm:$0xff]  ;;  %v2369_v47 = vpack.c.bf16 %v418_v38, %v416_v37 }
  0xb8   : > { %2486 = vmatpush1.bf16.msra.mxu0 %v2485_v11  ;;  %2360 = vmatprep.subr.bf16.mxu1 %v2359_v12  ;;  %v551_v45 = vld [vmem:[#allocation6 + $0x538] sm:$0xff]  ;;  %v2497_v48 = vpack.c.bf16 %v546_v41, %v544_v39  ;;  %v2371_v49 = vpack.c.bf16 %v423_v43, %v421_v42  ;;  %v420_v50 = vld [vmem:[#allocation6 + $0x120] sm:$0xff]  ;;  %v422_v51 = vld [vmem:[#allocation6 + $0x130] sm:$0xff] }
  0xb9   : > { %2488 = vmatprep.subr.bf16.mxu0 %v2487_v16  ;;  %v548_v52 = vld [vmem:[#allocation6 + $0x520] sm:$0xff]  ;;  %v2499_v53 = vpack.c.bf16 %v551_v45, %v549_v44  ;;  %v550_v54 = vld [vmem:[#allocation6 + $0x530] sm:$0xff]  ;;  %v425_v55 = vld [vmem:[#allocation6 + $0x148] sm:$0xff]  ;;  %v2373_v60 = vpack.c.bf16 %v422_v51, %v420_v50 }
  0xba   : > { %v427_v56 = vld [vmem:[#allocation6 + $0x158] sm:$0xff]  ;;  %v553_v57 = vld [vmem:[#allocation6 + $0x548] sm:$0xff]  ;;  %v2501_v61 = vpack.c.bf16 %v550_v54, %v548_v52  ;;  %v424_v63 = vld [vmem:[#allocation6 + $0x140] sm:$0xff] }
  0xbb   : > { %2362 = vmatpush1.bf16.msra.mxu1 %v2361_v22  ;;  %v555_v58 = vld [vmem:[#allocation6 + $0x558] sm:$0xff]  ;;  %v2375_v62 = vpack.c.bf16 %v427_v56, %v425_v55  ;;  %v426_v0 = vld [vmem:[#allocation6 + $0x150] sm:$0xff]  ;;  %v552_v1 = vld [vmem:[#allocation6 + $0x540] sm:$0xff] }
  0xbc   : > { %2490 = vmatpush1.bf16.msra.mxu0 %v2489_v23  ;;  %2364 = vmatprep.subr.bf16.mxu1 %v2363_v24  ;;  %v2503_v2 = vpack.c.bf16 %v555_v58, %v553_v57  ;;  %v554_v3 = vld [vmem:[#allocation6 + $0x550] sm:$0xff]  ;;  %v429_v4 = vld [vmem:[#allocation6 + $0x168] sm:$0xff]  ;;  %v431_v5 = vld [vmem:[#allocation6 + $0x178] sm:$0xff]  ;;  %v2377_v10 = vpack.c.bf16 %v426_v0, %v424_v63 }
  0xbd   : > { %2492 = vmatprep.subr.bf16.mxu0 %v2491_v28  ;;  %v557_v6 = vld [vmem:[#allocation6 + $0x568] sm:$0xff]  ;;  %v559_v7 = vld [vmem:[#allocation6 + $0x578] sm:$0xff]  ;;  %v428_v11 = vld [vmem:[#allocation6 + $0x160] sm:$0xff]  ;;  %v2505_v12 = vpack.c.bf16 %v554_v3, %v552_v1  ;;  %v2379_v13 = vpack.c.bf16 %v431_v5, %v429_v4 }
  0xbe   : > { %v430_v14 = vld [vmem:[#allocation6 + $0x170] sm:$0xff]  ;;  %v556_v15 = vld [vmem:[#allocation6 + $0x560] sm:$0xff]  ;;  %v2507_v17 = vpack.c.bf16 %v559_v7, %v557_v6  ;;  %v433_v18 = vld [vmem:[#allocation6 + $0x188] sm:$0xff] }
  0xbf   : > { %2366 = vmatpush1.bf16.msra.mxu1 %v2365_v34  ;;  %v558_v16 = vld [vmem:[#allocation6 + $0x570] sm:$0xff]  ;;  %v435_v19 = vld [vmem:[#allocation6 + $0x198] sm:$0xff]  ;;  %v561_v21 = vld [vmem:[#allocation6 + $0x588] sm:$0xff]  ;;  %v2381_v25 = vpack.c.bf16 %v430_v14, %v428_v11 }
  0xc0   : > { %2494 = vmatpush1.bf16.msra.mxu0 %v2493_v35  ;;  %2368 = vmatprep.subr.bf16.mxu1 %v2367_v36  ;;  %v3713_v20 = vld [vmem:[%s3687_s21] sm:$0xff]  ;;  %v2509_v26 = vpack.c.bf16 %v558_v16, %v556_v15  ;;  %v2383_v27 = vpack.c.bf16 %v435_v19, %v433_v18  ;;  %v432_v28 = vld [vmem:[#allocation6 + $0x180] sm:$0xff]  ;;  %v437_v33 = vld [vmem:[#allocation6 + $0x1a8] sm:$0xff]  ;;  %v660_v15 = vsub.s32 4, %v3706_v59 }
  0xc1   : > { %2496 = vmatprep.subr.bf16.mxu0 %v2495_v40  ;;  %v563_v22 = vld [vmem:[#allocation6 + $0x598] sm:$0xff]  ;;  %v3717_v23 = vrot.slane %v3713_v20, %v3709_v8  ;;  %v3722_v24 = vrot.slane %v3713_v20, %v664_v9  ;;  %v434_v29 = vld [vmem:[#allocation6 + $0x190] sm:$0xff]  ;;  %v560_v30 = vld [vmem:[#allocation6 + $0x580] sm:$0xff] }
  0xc2   : > { %v2511_v31 = vpack.c.bf16 %v563_v22, %v561_v21  ;;  %v562_v32 = vld [vmem:[#allocation6 + $0x590] sm:$0xff]  ;;  %v439_v34 = vld [vmem:[#allocation6 + $0x1b8] sm:$0xff]  ;;  %v565_v35 = vld [vmem:[#allocation6 + $0x5a8] sm:$0xff]  ;;  %v2385_v37 = vpack.c.bf16 %v434_v29, %v432_v28  ;;  %v656_v28 = vsub.s32 3, %v3706_v59 }
  0xc3   : > { %2370 = vmatpush1.bf16.msra.mxu1 %v2369_v47  ;;  %757 = vmatprep.mubr.f32.mxu1 %v3717_v23  ;;  %v567_v36 = vld [vmem:[#allocation6 + $0x5b8] sm:$0xff]  ;;  %v2513_v38 = vpack.c.bf16 %v562_v32, %v560_v30  ;;  %v2387_v39 = vpack.c.bf16 %v439_v34, %v437_v33  ;;  %v436_v40 = vld [vmem:[#allocation6 + $0x1a0] sm:$0xff]  ;;  %v438_v41 = vld [vmem:[#allocation6 + $0x1b0] sm:$0xff]  ;;  %v672_v32 = vsub.s32 7, %v3706_v59  ;;  %v3739_v34 = vrot.slane %v3713_v20, %v660_v15 }
  0xc4   : > { %2498 = vmatpush1.bf16.msra.mxu0 %v2497_v48  ;;  %2372 = vmatprep.subr.bf16.mxu1 %v2371_v49  ;;  %v564_v42 = vld [vmem:[#allocation6 + $0x5a0] sm:$0xff]  ;;  %v2515_v43 = vpack.c.bf16 %v567_v36, %v565_v35  ;;  %v566_v44 = vld [vmem:[#allocation6 + $0x5b0] sm:$0xff]  ;;  %v441_v45 = vld [vmem:[#allocation6 + $0x1c8] sm:$0xff]  ;;  %v2389_v50 = vpack.c.bf16 %v438_v41, %v436_v40 }
  0xc5   : > { %2500 = vmatprep.subr.bf16.mxu0 %v2499_v53  ;;  %899 = vmatprep.mubr.f32.mxu0 %v3722_v24  ;;  %v443_v47 = vld [vmem:[#allocation6 + $0x1d8] sm:$0xff]  ;;  %v569_v48 = vld [vmem:[#allocation6 + $0x5c8] sm:$0xff]  ;;  %v2517_v51 = vpack.c.bf16 %v566_v44, %v564_v42  ;;  %v440_v53 = vld [vmem:[#allocation6 + $0x1c0] sm:$0xff]  ;;  %v3744_v44 = vrot.slane %v3713_v20, %v656_v28 }
  0xc6   : > { %v571_v49 = vld [vmem:[#allocation6 + $0x5d8] sm:$0xff]  ;;  %v2391_v52 = vpack.c.bf16 %v443_v47, %v441_v45  ;;  %v442_v54 = vld [vmem:[#allocation6 + $0x1d0] sm:$0xff]  ;;  %v568_v55 = vld [vmem:[#allocation6 + $0x5c0] sm:$0xff] }
  0xc7   : > { %2374 = vmatpush1.bf16.msra.mxu1 %v2373_v60  ;;  %v2519_v56 = vpack.c.bf16 %v571_v49, %v569_v48  ;;  %v570_v57 = vld [vmem:[#allocation6 + $0x5d0] sm:$0xff]  ;;  %v445_v58 = vld [vmem:[#allocation6 + $0x1e8] sm:$0xff]  ;;  %v447_v60 = vld [vmem:[#allocation6 + $0x1f8] sm:$0xff]  ;;  %v2393_v63 = vpack.c.bf16 %v442_v54, %v440_v53  ;;  %v3750_v48 = vrot.slane %v3713_v20, %v672_v32 }
  0xc8   : > { %2502 = vmatpush1.bf16.msra.mxu0 %v2501_v61  ;;  %2376 = vmatprep.subr.bf16.mxu1 %v2375_v62  ;;  %v573_v61 = vld [vmem:[#allocation6 + $0x5e8] sm:$0xff]  ;;  %v575_v62 = vld [vmem:[#allocation6 + $0x5f8] sm:$0xff]  ;;  %v2521_v0 = vpack.c.bf16 %v570_v57, %v568_v55  ;;  %v2395_v1 = vpack.c.bf16 %v447_v60, %v445_v58  ;;  %v446_v3 = vld [vmem:[#allocation6 + $0x1f0] sm:$0xff] }
  0xc9   : > { %2504 = vmatprep.subr.bf16.mxu0 %v2503_v2  ;;  %v444_v2 = vld [vmem:[#allocation6 + $0x1e0] sm:$0xff]  ;;  %v2523_v5 = vpack.c.bf16 %v575_v62, %v573_v61  ;;  %v574_v6 = vld [vmem:[#allocation6 + $0x5f0] sm:$0xff]  ;;  %v449_v7 = vld [vmem:[#allocation6 + $0x208] sm:$0xff] }
  0xca   : > { %v572_v4 = vld [vmem:[#allocation6 + $0x5e0] sm:$0xff]  ;;  %v577_v11 = vld [vmem:[#allocation6 + $0x608] sm:$0xff]  ;;  %v2397_v14 = vpack.c.bf16 %v446_v3, %v444_v2  ;;  %v450_v19 = vld [vmem:[#allocation6 + $0x210] sm:$0xff] }
  0xcb   : > { %2378 = vmatpush1.bf16.msra.mxu1 %v2377_v10  ;;  %v451_v10 = vld [vmem:[#allocation6 + $0x218] sm:$0xff]  ;;  %v2525_v16 = vpack.c.bf16 %v574_v6, %v572_v4  ;;  %v448_v18 = vld [vmem:[#allocation6 + $0x200] sm:$0xff]  ;;  %v581_v30 = vld [vmem:[#allocation6 + $0x628] sm:$0xff] }
  0xcc   : > { %2506 = vmatpush1.bf16.msra.mxu0 %v2505_v12  ;;  %2380 = vmatprep.subr.bf16.mxu1 %v2379_v13  ;;  %v579_v12 = vld [vmem:[#allocation6 + $0x618] sm:$0xff]  ;;  %v3727_v13 = vsub.s32 0, %v3706_v59  ;;  %v576_v21 = vld [vmem:[#allocation6 + $0x600] sm:$0xff]  ;;  %v2401_v33 = vpack.c.bf16 %v450_v19, %v448_v18  ;;  %v582_v41 = vld [vmem:[#allocation6 + $0x630] sm:$0xff] }
  0xcd   : > { %2508 = vmatprep.subr.bf16.mxu0 %v2507_v17  ;;  %v2399_v17 = vpack.c.bf16 %v451_v10, %v449_v7  ;;  %v2527_v22 = vpack.c.bf16 %v579_v12, %v577_v11  ;;  %v457_v42 = vld [vmem:[#allocation6 + $0x248] sm:$0xff]  ;;  %v587_v47 = vld [vmem:[#allocation6 + $0x658] sm:$0xff]  ;;  %v458_v53 = vld [vmem:[#allocation6 + $0x250] sm:$0xff] }
  0xce   : > { %v3733_v29 = vrot.slane %v3713_v20, %v3727_v13  ;;  %v585_v45 = vld [vmem:[#allocation6 + $0x648] sm:$0xff]  ;;  %v584_v54 = vld [vmem:[#allocation6 + $0x640] sm:$0xff]  ;;  %v463_v58 = vld [vmem:[#allocation6 + $0x278] sm:$0xff] }
  0xcf   : > { %2382 = vmatpush1.bf16.msra.mxu1 %v2381_v25  ;;  %v578_v25 = vld [vmem:[#allocation6 + $0x610] sm:$0xff]  ;;  %v2535_v55 = vpack.c.bf16 %v587_v47, %v585_v45  ;;  %v461_v57 = vld [vmem:[#allocation6 + $0x268] sm:$0xff]  ;;  %v591_v61 = vld [vmem:[#allocation6 + $0x678] sm:$0xff] }
  0xd0   : > { %2510 = vmatpush1.bf16.msra.mxu0 %v2509_v26  ;;  %2384 = vmatprep.subr.bf16.mxu1 %v2383_v27  ;;  %v453_v26 = vld [vmem:[#allocation6 + $0x228] sm:$0xff]  ;;  %v455_v27 = vld [vmem:[#allocation6 + $0x238] sm:$0xff]  ;;  %v2529_v35 = vpack.c.bf16 %v578_v25, %v576_v21  ;;  %v462_v2 = vld [vmem:[#allocation6 + $0x270] sm:$0xff] }
  0xd1   : > { %2512 = vmatprep.subr.bf16.mxu0 %v2511_v31  ;;  %v583_v31 = vld [vmem:[#allocation6 + $0x638] sm:$0xff]  ;;  %v2403_v36 = vpack.c.bf16 %v455_v27, %v453_v26  ;;  %v589_v60 = vld [vmem:[#allocation6 + $0x668] sm:$0xff]  ;;  %v588_v3 = vld [vmem:[#allocation6 + $0x660] sm:$0xff] }
  0xd2   : > { %v2531_v40 = vpack.c.bf16 %v583_v31, %v581_v30  ;;  %v2539_v4 = vpack.c.bf16 %v591_v61, %v589_v60  ;;  %v465_v6 = vld [vmem:[#allocation6 + $0x288] sm:$0xff]  ;;  %v467_v7 = vld [vmem:[#allocation6 + $0x298] sm:$0xff]  ;;  %v466_v18 = vld [vmem:[#allocation6 + $0x290] sm:$0xff] }
  0xd3   : > { %2386 = vmatpush1.bf16.msra.mxu1 %v2385_v37  ;;  %v452_v37 = vld [vmem:[#allocation6 + $0x220] sm:$0xff]  ;;  %v593_v10 = vld [vmem:[#allocation6 + $0x688] sm:$0xff]  ;;  %v595_v11 = vld [vmem:[#allocation6 + $0x698] sm:$0xff] }
  0xd4   : > { %2514 = vmatpush1.bf16.msra.mxu0 %v2513_v38  ;;  %2388 = vmatprep.subr.bf16.mxu1 %v2387_v39  ;;  %v454_v38 = vld [vmem:[#allocation6 + $0x230] sm:$0xff]  ;;  %v580_v39 = vld [vmem:[#allocation6 + $0x620] sm:$0xff]  ;;  %v2543_v21 = vpack.c.bf16 %v595_v11, %v593_v10  ;;  %v469_v25 = vld [vmem:[#allocation6 + $0x2a8] sm:$0xff] }
  0xd5   : > { %2516 = vmatprep.subr.bf16.mxu0 %v2515_v43  ;;  %v459_v43 = vld [vmem:[#allocation6 + $0x258] sm:$0xff]  ;;  %v2405_v49 = vpack.c.bf16 %v454_v38, %v452_v37  ;;  %v592_v19 = vld [vmem:[#allocation6 + $0x680] sm:$0xff]  ;;  %v597_v27 = vld [vmem:[#allocation6 + $0x6a8] sm:$0xff] }
  0xd6   : > { %v471_v26 = vld [vmem:[#allocation6 + $0x2b8] sm:$0xff]  ;;  %v470_v37 = vld [vmem:[#allocation6 + $0x2b0] sm:$0xff]  ;;  %v596_v38 = vld [vmem:[#allocation6 + $0x6a0] sm:$0xff] }
  0xd7   : > { %2390 = vmatpush1.bf16.msra.mxu1 %v2389_v50  ;;  %v2533_v50 = vpack.c.bf16 %v582_v41, %v580_v39  ;;  %v599_v30 = vld [vmem:[#allocation6 + $0x6b8] sm:$0xff]  ;;  %v473_v41 = vld [vmem:[#allocation6 + $0x2c8] sm:$0xff] }
  0xd8   : > { %2518 = vmatpush1.bf16.msra.mxu0 %v2517_v51  ;;  %2392 = vmatprep.subr.bf16.mxu1 %v2391_v52  ;;  %v2407_v51 = vpack.c.bf16 %v459_v43, %v457_v42  ;;  %v456_v52 = vld [vmem:[#allocation6 + $0x240] sm:$0xff]  ;;  %v2547_v39 = vpack.c.bf16 %v599_v30, %v597_v27  ;;  %v475_v42 = vld [vmem:[#allocation6 + $0x2d8] sm:$0xff]  ;;  %v601_v43 = vld [vmem:[#allocation6 + $0x6c8] sm:$0xff] }
  0xd9   : > { %2520 = vmatprep.subr.bf16.mxu0 %v2519_v56  ;;  %v586_v56 = vld [vmem:[#allocation6 + $0x650] sm:$0xff]  ;;  %v2409_v62 = vpack.c.bf16 %v458_v53, %v456_v52  ;;  %v603_v45 = vld [vmem:[#allocation6 + $0x6d8] sm:$0xff]  ;;  %v600_v53 = vld [vmem:[#allocation6 + $0x6c0] sm:$0xff] }
  0xda   : > { %v474_v52 = vld [vmem:[#allocation6 + $0x2d0] sm:$0xff]  ;;  %v607_v60 = vld [vmem:[#allocation6 + $0x6f8] sm:$0xff] }
  0xdb   : > { %2394 = vmatpush1.bf16.msra.mxu1 %v2393_v63  ;;  %v2537_v63 = vpack.c.bf16 %v586_v56, %v584_v54  ;;  %v2551_v54 = vpack.c.bf16 %v603_v45, %v601_v43  ;;  %v477_v56 = vld [vmem:[#allocation6 + $0x2e8] sm:$0xff]  ;;  %v611_v10 = vld [vmem:[#allocation6 + $0x718] sm:$0xff] }
  0xdc   : > { %2522 = vmatpush1.bf16.msra.mxu0 %v2521_v0  ;;  %2396 = vmatprep.subr.bf16.mxu1 %v2395_v1  ;;  %v2411_v0 = vpack.c.bf16 %v463_v58, %v461_v57  ;;  %v460_v1 = vld [vmem:[#allocation6 + $0x260] sm:$0xff]  ;;  %v479_v57 = vld [vmem:[#allocation6 + $0x2f8] sm:$0xff]  ;;  %v605_v58 = vld [vmem:[#allocation6 + $0x6e8] sm:$0xff] }
  0xdd   : > { %2524 = vmatprep.subr.bf16.mxu0 %v2523_v5  ;;  %v590_v5 = vld [vmem:[#allocation6 + $0x670] sm:$0xff]  ;;  %v2413_v12 = vpack.c.bf16 %v462_v2, %v460_v1  ;;  %v604_v2 = vld [vmem:[#allocation6 + $0x6e0] sm:$0xff]  ;;  %v615_v27 = vld [vmem:[#allocation6 + $0x738] sm:$0xff] }
  0xde   : > { %v478_v1 = vld [vmem:[#allocation6 + $0x2f0] sm:$0xff]  ;;  %v619_v43 = vld [vmem:[#allocation6 + $0x758] sm:$0xff] }
  0xdf   : > { %2398 = vmatpush1.bf16.msra.mxu1 %v2397_v14  ;;  %v2541_v14 = vpack.c.bf16 %v590_v5, %v588_v3  ;;  %v2555_v3 = vpack.c.bf16 %v607_v60, %v605_v58  ;;  %v481_v5 = vld [vmem:[#allocation6 + $0x308] sm:$0xff]  ;;  %v623_v58 = vld [vmem:[#allocation6 + $0x778] sm:$0xff] }
  0xe0   : > { %2526 = vmatpush1.bf16.msra.mxu0 %v2525_v16  ;;  %2400 = vmatprep.subr.bf16.mxu1 %v2399_v17  ;;  %v2415_v16 = vpack.c.bf16 %v467_v7, %v465_v6  ;;  %v464_v17 = vld [vmem:[#allocation6 + $0x280] sm:$0xff]  ;;  %v483_v6 = vld [vmem:[#allocation6 + $0x318] sm:$0xff]  ;;  %v609_v7 = vld [vmem:[#allocation6 + $0x708] sm:$0xff] }
  0xe1   : > { %2528 = vmatprep.subr.bf16.mxu0 %v2527_v22  ;;  %v594_v22 = vld [vmem:[#allocation6 + $0x690] sm:$0xff]  ;;  %v2417_v31 = vpack.c.bf16 %v466_v18, %v464_v17  ;;  %v608_v18 = vld [vmem:[#allocation6 + $0x700] sm:$0xff] }
  0xe2   : > { %758 = vmatmul.mubr.f32.vlgmr.msra.gmra.mrb[0].mxu1 %v3733_v29  ;;  %v482_v17 = vld [vmem:[#allocation6 + $0x310] sm:$0xff] }
  0xe3   : > { %2402 = vmatpush1.bf16.msra.mxu1 %v2401_v33  ;;  %900 = vmatmul.mubr.f32.vlgmr.msra.gmra.mrb[0].mxu0 %v3739_v34  ;;  %v2545_v33 = vpack.c.bf16 %v594_v22, %v592_v19  ;;  %v2559_v19 = vpack.c.bf16 %v611_v10, %v609_v7  ;;  %v485_v22 = vld [vmem:[#allocation6 + $0x328] sm:$0xff]  ;;  %v627_v7 = vld [vmem:[#allocation6 + $0x798] sm:$0xff] }
  0xe4   : > { %2530 = vmatpush1.bf16.msra.mxu0 %v2529_v35  ;;  %2404 = vmatprep.subr.bf16.mxu1 %v2403_v36  ;;  %v2419_v35 = vpack.c.bf16 %v471_v26, %v469_v25  ;;  %v468_v36 = vld [vmem:[#allocation6 + $0x2a0] sm:$0xff]  ;;  %v487_v25 = vld [vmem:[#allocation6 + $0x338] sm:$0xff]  ;;  %v613_v26 = vld [vmem:[#allocation6 + $0x728] sm:$0xff] }
  0xe5   : > { %2532 = vmatprep.subr.bf16.mxu0 %v2531_v40  ;;  %828 = vmatprep.mubr.f32.mxu1 %v3744_v44  ;;  %v598_v40 = vld [vmem:[#allocation6 + $0x6b0] sm:$0xff]  ;;  %v2421_v47 = vpack.c.bf16 %v470_v37, %v468_v36  ;;  %v612_v37 = vld [vmem:[#allocation6 + $0x720] sm:$0xff] }
  0xe6   : > { %970 = vmatprep.mubr.f32.mxu0 %v3750_v48  ;;  %v486_v36 = vld [vmem:[#allocation6 + $0x330] sm:$0xff] }
  0xe7   : > { %2406 = vmatpush1.bf16.msra.mxu1 %v2405_v49  ;;  %v2549_v49 = vpack.c.bf16 %v598_v40, %v596_v38  ;;  %v2563_v38 = vpack.c.bf16 %v615_v27, %v613_v26  ;;  %v489_v40 = vld [vmem:[#allocation6 + $0x348] sm:$0xff]  ;;  %v631_v26 = vld [vmem:[#allocation6 + $0x7b8] sm:$0xff] }
  0xe8   : > { %2534 = vmatpush1.bf16.msra.mxu0 %v2533_v50  ;;  %2408 = vmatprep.subr.bf16.mxu1 %v2407_v51  ;;  %v2423_v50 = vpack.c.bf16 %v475_v42, %v473_v41  ;;  %v472_v51 = vld [vmem:[#allocation6 + $0x2c0] sm:$0xff]  ;;  %v491_v41 = vld [vmem:[#allocation6 + $0x358] sm:$0xff]  ;;  %v617_v42 = vld [vmem:[#allocation6 + $0x748] sm:$0xff] }
  0xe9   : > { %2536 = vmatprep.subr.bf16.mxu0 %v2535_v55  ;;  %v602_v55 = vld [vmem:[#allocation6 + $0x6d0] sm:$0xff]  ;;  %v2425_v61 = vpack.c.bf16 %v474_v52, %v472_v51  ;;  %v616_v52 = vld [vmem:[#allocation6 + $0x740] sm:$0xff] }
  0xea   : > { %v490_v51 = vld [vmem:[#allocation6 + $0x350] sm:$0xff] }
  0xeb   : > { %2410 = vmatpush1.bf16.msra.mxu1 %v2409_v62  ;;  %v2553_v62 = vpack.c.bf16 %v602_v55, %v600_v53  ;;  %v2567_v53 = vpack.c.bf16 %v619_v43, %v617_v42  ;;  %v493_v55 = vld [vmem:[#allocation6 + $0x368] sm:$0xff]  ;;  %v635_v42 = vld [vmem:[#allocation6 + $0x7d8] sm:$0xff] }
  0xec   : > { %2538 = vmatpush1.bf16.msra.mxu0 %v2537_v63  ;;  %2412 = vmatprep.subr.bf16.mxu1 %v2411_v0  ;;  %v2427_v63 = vpack.c.bf16 %v479_v57, %v477_v56  ;;  %v476_v0 = vld [vmem:[#allocation6 + $0x2e0] sm:$0xff]  ;;  %v495_v56 = vld [vmem:[#allocation6 + $0x378] sm:$0xff]  ;;  %v621_v57 = vld [vmem:[#allocation6 + $0x768] sm:$0xff] }
  0xed   : > { %2540 = vmatprep.subr.bf16.mxu0 %v2539_v4  ;;  %v606_v4 = vld [vmem:[#allocation6 + $0x6f0] sm:$0xff]  ;;  %v2429_v11 = vpack.c.bf16 %v478_v1, %v476_v0  ;;  %v620_v1 = vld [vmem:[#allocation6 + $0x760] sm:$0xff] }
  0xee   : > { %v494_v0 = vld [vmem:[#allocation6 + $0x370] sm:$0xff] }
  0xef   : > { %2414 = vmatpush1.bf16.msra.mxu1 %v2413_v12  ;;  %v2557_v12 = vpack.c.bf16 %v606_v4, %v604_v2  ;;  %v2571_v2 = vpack.c.bf16 %v623_v58, %v621_v57  ;;  %v497_v4 = vld [vmem:[#allocation6 + $0x388] sm:$0xff]  ;;  %v639_v57 = vld [vmem:[#allocation6 + $0x7f8] sm:$0xff] }
  0xf0   : > { %2542 = vmatpush1.bf16.msra.mxu0 %v2541_v14  ;;  %2416 = vmatprep.subr.bf16.mxu1 %v2415_v16  ;;  %v2431_v14 = vpack.c.bf16 %v483_v6, %v481_v5  ;;  %v480_v16 = vld [vmem:[#allocation6 + $0x300] sm:$0xff]  ;;  %v499_v5 = vld [vmem:[#allocation6 + $0x398] sm:$0xff]  ;;  %v625_v6 = vld [vmem:[#allocation6 + $0x788] sm:$0xff] }
  0xf1   : > { %2544 = vmatprep.subr.bf16.mxu0 %v2543_v21  ;;  %v610_v21 = vld [vmem:[#allocation6 + $0x710] sm:$0xff]  ;;  %v2433_v30 = vpack.c.bf16 %v482_v17, %v480_v16  ;;  %v624_v17 = vld [vmem:[#allocation6 + $0x780] sm:$0xff] }
  0xf2   : > { %v498_v16 = vld [vmem:[#allocation6 + $0x390] sm:$0xff] }
  0xf3   : > { %2418 = vmatpush1.bf16.msra.mxu1 %v2417_v31  ;;  %v2561_v31 = vpack.c.bf16 %v610_v21, %v608_v18  ;;  %v2575_v18 = vpack.c.bf16 %v627_v7, %v625_v6  ;;  %v501_v21 = vld [vmem:[#allocation6 + $0x3a8] sm:$0xff]  ;;  %v668_v7 = vsub.s32 6, %v3706_v59 }
  0xf4   : > { %2546 = vmatpush1.bf16.msra.mxu0 %v2545_v33  ;;  %2420 = vmatprep.subr.bf16.mxu1 %v2419_v35  ;;  %v2435_v33 = vpack.c.bf16 %v487_v25, %v485_v22  ;;  %v484_v35 = vld [vmem:[#allocation6 + $0x320] sm:$0xff]  ;;  %v503_v22 = vld [vmem:[#allocation6 + $0x3b8] sm:$0xff]  ;;  %v629_v25 = vld [vmem:[#allocation6 + $0x7a8] sm:$0xff] }
  0xf5   : > { %2548 = vmatprep.subr.bf16.mxu0 %v2547_v39  ;;  %v614_v39 = vld [vmem:[#allocation6 + $0x730] sm:$0xff]  ;;  %v2437_v45 = vpack.c.bf16 %v486_v36, %v484_v35  ;;  %v628_v36 = vld [vmem:[#allocation6 + $0x7a0] sm:$0xff] }
  0xf6   : > { %v502_v35 = vld [vmem:[#allocation6 + $0x3b0] sm:$0xff] }
  0xf7   : > { %2422 = vmatpush1.bf16.msra.mxu1 %v2421_v47  ;;  %v2565_v47 = vpack.c.bf16 %v614_v39, %v612_v37  ;;  %v2579_v37 = vpack.c.bf16 %v631_v26, %v629_v25  ;;  %v505_v39 = vld [vmem:[#allocation6 + $0x3c8] sm:$0xff]  ;;  %v1000_v25 = vld [vmem:[#allocation8 + $0x80] sm:$0xff] }
  0xf8   : > { %2550 = vmatpush1.bf16.msra.mxu0 %v2549_v49  ;;  %2424 = vmatprep.subr.bf16.mxu1 %v2423_v50  ;;  %v2439_v49 = vpack.c.bf16 %v491_v41, %v489_v40  ;;  %v488_v50 = vld [vmem:[#allocation6 + $0x340] sm:$0xff]  ;;  %v507_v40 = vld [vmem:[#allocation6 + $0x3d8] sm:$0xff]  ;;  %v633_v41 = vld [vmem:[#allocation6 + $0x7c8] sm:$0xff] }
  0xf9   : > { %2552 = vmatprep.subr.bf16.mxu0 %v2551_v54  ;;  %v618_v54 = vld [vmem:[#allocation6 + $0x750] sm:$0xff]  ;;  %v2441_v60 = vpack.c.bf16 %v490_v51, %v488_v50  ;;  %v632_v51 = vld [vmem:[#allocation6 + $0x7c0] sm:$0xff] }
  0xfa   : > { %v506_v50 = vld [vmem:[#allocation6 + $0x3d0] sm:$0xff]  ;;  %v1008_v26 = vld [vmem:[#allocation8 + $0xc0] sm:$0xff] }
  0xfb   : > { %2426 = vmatpush1.bf16.msra.mxu1 %v2425_v61  ;;  %v2569_v61 = vpack.c.bf16 %v618_v54, %v616_v52  ;;  %v2583_v52 = vpack.c.bf16 %v635_v42, %v633_v41  ;;  %v509_v54 = vld [vmem:[#allocation6 + $0x3e8] sm:$0xff]  ;;  %v1040_v41 = vld [vmem:[#allocation8 + $0x1c0] sm:$0xff] }
  0xfc   : > { %2554 = vmatpush1.bf16.msra.mxu0 %v2553_v62  ;;  %2428 = vmatprep.subr.bf16.mxu1 %v2427_v63  ;;  %v2443_v62 = vpack.c.bf16 %v495_v56, %v493_v55  ;;  %v492_v63 = vld [vmem:[#allocation6 + $0x360] sm:$0xff]  ;;  %v511_v55 = vld [vmem:[#allocation6 + $0x3f8] sm:$0xff]  ;;  %v637_v56 = vld [vmem:[#allocation6 + $0x7e8] sm:$0xff] }
  0xfd   : > { %2556 = vmatprep.subr.bf16.mxu0 %v2555_v3  ;;  %v622_v3 = vld [vmem:[#allocation6 + $0x770] sm:$0xff]  ;;  %v2445_v10 = vpack.c.bf16 %v494_v0, %v492_v63  ;;  %v636_v0 = vld [vmem:[#allocation6 + $0x7e0] sm:$0xff]  ;;  %v1049_v42 = vld [vmem:[#allocation8 + $0x208] sm:$0xff] }
  0xfe   : > { %v510_v63 = vld [vmem:[#allocation6 + $0x3f0] sm:$0xff] }
  0xff   : > { %2430 = vmatpush1.bf16.msra.mxu1 %v2429_v11  ;;  %v2573_v11 = vpack.c.bf16 %v622_v3, %v620_v1  ;;  %v2587_v1 = vpack.c.bf16 %v639_v57, %v637_v56  ;;  %v985_v3 = vld [vmem:[#allocation8 + $0x8] sm:$0xff]  ;;  %v1072_v56 = vld [vmem:[#allocation8 + $0x2c0] sm:$0xff] }
 0x100   : > { %2558 = vmatpush1.bf16.msra.mxu0 %v2557_v12  ;;  %2432 = vmatprep.subr.bf16.mxu1 %v2431_v14  ;;  %v2447_v12 = vpack.c.bf16 %v499_v5, %v497_v4  ;;  %v496_v14 = vld [vmem:[#allocation6 + $0x380] sm:$0xff]  ;;  %v993_v4 = vld [vmem:[#allocation8 + $0x48] sm:$0xff]  ;;  %v652_v5 = vsub.s32 2, %v3706_v59 }
 0x101   : > { %2560 = vmatprep.subr.bf16.mxu0 %v2559_v19  ;;  %v626_v19 = vld [vmem:[#allocation6 + $0x790] sm:$0xff]  ;;  %v2449_v27 = vpack.c.bf16 %v498_v16, %v496_v14  ;;  %v992_v14 = vld [vmem:[#allocation8 + $0x40] sm:$0xff]  ;;  %v1001_v16 = vld [vmem:[#allocation8 + $0x88] sm:$0xff] }
 0x102   : > { %v1081_v57 = vld [vmem:[#allocation8 + $0x308] sm:$0xff] }
 0x103   : > { %2434 = vmatpush1.bf16.msra.mxu1 %v2433_v30  ;;  %v2577_v30 = vpack.c.bf16 %v626_v19, %v624_v17  ;;  %v1009_v17 = vld [vmem:[#allocation8 + $0xc8] sm:$0xff]  ;;  %v3765_v19 = vrot.slane %v3713_v20, %v668_v7 }
 0x104   : > { %2562 = vmatpush1.bf16.msra.mxu0 %v2561_v31  ;;  %2436 = vmatprep.subr.bf16.mxu1 %v2435_v33  ;;  %v2451_v31 = vpack.c.bf16 %v503_v22, %v501_v21  ;;  %v500_v33 = vld [vmem:[#allocation6 + $0x3a0] sm:$0xff]  ;;  %v2595_v22 = vpack.c.bf16 %v1009_v17, %v1001_v16 }
 0x105   : > { %2564 = vmatprep.subr.bf16.mxu0 %v2563_v38  ;;  %v630_v38 = vld [vmem:[#allocation6 + $0x7b0] sm:$0xff]  ;;  %v2453_v43 = vpack.c.bf16 %v502_v35, %v500_v33  ;;  %v1016_v35 = vld [vmem:[#allocation8 + $0x100] sm:$0xff] }
 0x106   : > { %v1112_v16 = vld [vmem:[#allocation8 + $0x400] sm:$0xff] }
 0x107   : > { %2438 = vmatpush1.bf16.msra.mxu1 %v2437_v45  ;;  %v2581_v45 = vpack.c.bf16 %v630_v38, %v628_v36  ;;  %v1024_v36 = vld [vmem:[#allocation8 + $0x140] sm:$0xff] }
 0x108   : > { %2566 = vmatpush1.bf16.msra.mxu0 %v2565_v47  ;;  %2440 = vmatprep.subr.bf16.mxu1 %v2439_v49  ;;  %v2455_v47 = vpack.c.bf16 %v507_v40, %v505_v39  ;;  %v504_v49 = vld [vmem:[#allocation6 + $0x3c0] sm:$0xff]  ;;  %v2601_v38 = vpack.c.bf16 %v1024_v36, %v1016_v35 }
 0x109   : > { %2568 = vmatprep.subr.bf16.mxu0 %v2567_v53  ;;  %v634_v53 = vld [vmem:[#allocation6 + $0x7d0] sm:$0xff]  ;;  %v2457_v58 = vpack.c.bf16 %v506_v50, %v504_v49  ;;  %v1032_v40 = vld [vmem:[#allocation8 + $0x180] sm:$0xff] }
 0x10a   : > { %v1048_v49 = vld [vmem:[#allocation8 + $0x200] sm:$0xff] }
 0x10b   : > { %2442 = vmatpush1.bf16.msra.mxu1 %v2441_v60  ;;  %v2585_v60 = vpack.c.bf16 %v634_v53, %v632_v51  ;;  %v1056_v50 = vld [vmem:[#allocation8 + $0x240] sm:$0xff]  ;;  %v1065_v51 = vld [vmem:[#allocation8 + $0x288] sm:$0xff] }
 0x10c   : > { %2570 = vmatpush1.bf16.msra.mxu0 %v2569_v61  ;;  %2444 = vmatprep.subr.bf16.mxu1 %v2443_v62  ;;  %v2459_v61 = vpack.c.bf16 %v511_v55, %v509_v54  ;;  %v508_v62 = vld [vmem:[#allocation6 + $0x3e0] sm:$0xff]  ;;  %v2609_v53 = vpack.c.bf16 %v1056_v50, %v1048_v49 }
 0x10d   : > { %2572 = vmatprep.subr.bf16.mxu0 %v2571_v2  ;;  %v638_v2 = vld [vmem:[#allocation6 + $0x7f0] sm:$0xff]  ;;  %v2461_v6 = vpack.c.bf16 %v510_v63, %v508_v62  ;;  %v1064_v55 = vld [vmem:[#allocation8 + $0x280] sm:$0xff] }
 0x10e   : > { %v1080_v62 = vld [vmem:[#allocation8 + $0x300] sm:$0xff] }
 0x10f   : > { %2446 = vmatpush1.bf16.msra.mxu1 %v2445_v10  ;;  %v2589_v10 = vpack.c.bf16 %v638_v2, %v636_v0  ;;  %v1088_v63 = vld [vmem:[#allocation8 + $0x340] sm:$0xff]  ;;  %v1097_v0 = vld [vmem:[#allocation8 + $0x388] sm:$0xff] }
 0x110   : > { %2574 = vmatpush1.bf16.msra.mxu0 %v2573_v11  ;;  %2448 = vmatprep.subr.bf16.mxu1 %v2447_v12  ;;  %v2591_v11 = vpack.c.bf16 %v993_v4, %v985_v3  ;;  %v984_v12 = vld [vmem:[#allocation8] sm:$0xff]  ;;  %v2617_v2 = vpack.c.bf16 %v1088_v63, %v1080_v62  ;;  %v1217_v62 = vld [vmem:[#allocation8 + $0x748] sm:$0xff] }
 0x111   : > { %2576 = vmatprep.subr.bf16.mxu0 %v2575_v18  ;;  %v3760_v18 = vrot.slane %v3713_v20, %v652_v5  ;;  %v2593_v21 = vpack.c.bf16 %v992_v14, %v984_v12  ;;  %v1033_v20 = vld [vmem:[#allocation8 + $0x188] sm:$0xff]  ;;  %v1096_v4 = vld [vmem:[#allocation8 + $0x380] sm:$0xff] }
 0x112   : > { %v1120_v17 = vld [vmem:[#allocation8 + $0x440] sm:$0xff] }
 0x113   : > { %2450 = vmatpush1.bf16.msra.mxu1 %v2449_v27  ;;  %v1017_v27 = vld [vmem:[#allocation8 + $0x108] sm:$0xff] }
 0x114   : > { %2578 = vmatpush1.bf16.msra.mxu0 %v2577_v30  ;;  %2452 = vmatprep.subr.bf16.mxu1 %v2451_v31  ;;  %v1025_v30 = vld [vmem:[#allocation8 + $0x148] sm:$0xff]  ;;  %v2597_v31 = vpack.c.bf16 %v1008_v26, %v1000_v25  ;;  %v2625_v25 = vpack.c.bf16 %v1120_v17, %v1112_v16  ;;  %v995_v16 = vld [vmem:[#allocation8 + $0x58] sm:$0xff] }
 0x115   : > { %2580 = vmatprep.subr.bf16.mxu0 %v2579_v37  ;;  %v2599_v33 = vpack.c.bf16 %v1025_v30, %v1017_v27  ;;  %v1041_v37 = vld [vmem:[#allocation8 + $0x1c8] sm:$0xff]  ;;  %v1128_v27 = vld [vmem:[#allocation8 + $0x480] sm:$0xff] }
 0x116   : > { %v2603_v39 = vpack.c.bf16 %v1041_v37, %v1033_v20  ;;  %v1136_v30 = vld [vmem:[#allocation8 + $0x4c0] sm:$0xff] }
 0x117   : > { %2454 = vmatpush1.bf16.msra.mxu1 %v2453_v43  ;;  %v1057_v43 = vld [vmem:[#allocation8 + $0x248] sm:$0xff]  ;;  %v2629_v35 = vpack.c.bf16 %v1136_v30, %v1128_v27  ;;  %v1144_v20 = vld [vmem:[#allocation8 + $0x500] sm:$0xff] }
 0x118   : > { %2582 = vmatpush1.bf16.msra.mxu0 %v2581_v45  ;;  %2456 = vmatprep.subr.bf16.mxu1 %v2455_v47  ;;  %v2605_v45 = vpack.c.bf16 %v1040_v41, %v1032_v40  ;;  %v2607_v47 = vpack.c.bf16 %v1057_v43, %v1049_v42  ;;  %v1152_v37 = vld [vmem:[#allocation8 + $0x540] sm:$0xff] }
 0x119   : > { %2584 = vmatprep.subr.bf16.mxu0 %v2583_v52  ;;  %v1073_v52 = vld [vmem:[#allocation8 + $0x2c8] sm:$0xff]  ;;  %v2633_v40 = vpack.c.bf16 %v1152_v37, %v1144_v20  ;;  %v1160_v42 = vld [vmem:[#allocation8 + $0x580] sm:$0xff] }
 0x11a   : > { %v2611_v54 = vpack.c.bf16 %v1073_v52, %v1065_v51  ;;  %v1168_v43 = vld [vmem:[#allocation8 + $0x5c0] sm:$0xff] }
 0x11b   : > { %2458 = vmatpush1.bf16.msra.mxu1 %v2457_v58  ;;  %v1089_v58 = vld [vmem:[#allocation8 + $0x348] sm:$0xff]  ;;  %v2637_v49 = vpack.c.bf16 %v1168_v43, %v1160_v42  ;;  %v1176_v51 = vld [vmem:[#allocation8 + $0x600] sm:$0xff]  ;;  %v1011_v42 = vld [vmem:[#allocation8 + $0xd8] sm:$0xff] }
 0x11c   : > { %2586 = vmatpush1.bf16.msra.mxu0 %v2585_v60  ;;  %2460 = vmatprep.subr.bf16.mxu1 %v2459_v61  ;;  %v2613_v60 = vpack.c.bf16 %v1072_v56, %v1064_v55  ;;  %v2615_v61 = vpack.c.bf16 %v1089_v58, %v1081_v57  ;;  %v1184_v52 = vld [vmem:[#allocation8 + $0x640] sm:$0xff] }
 0x11d   : > { %2588 = vmatprep.subr.bf16.mxu0 %v2587_v1  ;;  %v1105_v1 = vld [vmem:[#allocation8 + $0x3c8] sm:$0xff]  ;;  %v2641_v55 = vpack.c.bf16 %v1184_v52, %v1176_v51  ;;  %v1192_v57 = vld [vmem:[#allocation8 + $0x680] sm:$0xff]  ;;  %v1010_v51 = vld [vmem:[#allocation8 + $0xd0] sm:$0xff] }
 0x11e   : > { %v2619_v3 = vpack.c.bf16 %v1105_v1, %v1097_v0  ;;  %v1200_v58 = vld [vmem:[#allocation8 + $0x6c0] sm:$0xff] }
 0x11f   : > { %2462 = vmatpush1.bf16.msra.mxu1 %v2461_v6  ;;  %v1104_v6 = vld [vmem:[#allocation8 + $0x3c0] sm:$0xff] }
 0x120   : > { %2590 = vmatpush1.bf16.msra.mxu0 %v2589_v10  ;;  %2592 = vmatprep.subr.bf16.mxu1 %v2591_v11  ;;  %v1113_v10 = vld [vmem:[#allocation8 + $0x408] sm:$0xff]  ;;  %v2621_v12 = vpack.c.bf16 %v1104_v6, %v1096_v4  ;;  %v1208_v0 = vld [vmem:[#allocation8 + $0x700] sm:$0xff] }
 0x121   : > { %v1121_v11 = vld [vmem:[#allocation8 + $0x448] sm:$0xff]  ;;  %v1216_v1 = vld [vmem:[#allocation8 + $0x740] sm:$0xff] }
 0x122   : > { %829 = vmatmul.mubr.f32.vlgmr.msra.gmra.mrb[0].mxu1 %v3760_v18  ;;  %v2623_v14 = vpack.c.bf16 %v1121_v11, %v1113_v10  ;;  %v1233_v4 = vld [vmem:[#allocation8 + $0x7c8] sm:$0xff]  ;;  %v1224_v10 = vld [vmem:[#allocation8 + $0x780] sm:$0xff] }
 0x123   : > { %971 = vmatmul.mubr.f32.vlgmr.msra.gmra.mrb[0].mxu0 %v3765_v19  ;;  %2594 = vmatpush1.bf16.msra.mxu1 %v2593_v21  ;;  %v1129_v21 = vld [vmem:[#allocation8 + $0x488] sm:$0xff]  ;;  %v1232_v11 = vld [vmem:[#allocation8 + $0x7c0] sm:$0xff] }
 0x124   : > { %2596 = vmatprep.subr.bf16.mxu1 %v2595_v22  ;;  %v1137_v22 = vld [vmem:[#allocation8 + $0x4c8] sm:$0xff] }
 0x125   : > { %v2627_v26 = vpack.c.bf16 %v1137_v22, %v1129_v21  ;;  %v640_v21 = vld [vmem:[%s3893_s4] sm:$0x3] }
 0x126   : > { %v686_v22 = vrot.slane %v640_v21, %v3727_v13 }
 0x127   : > { %2598 = vmatpush1.bf16.msra.mxu1 %v2597_v31  ;;  %v1145_v31 = vld [vmem:[#allocation8 + $0x508] sm:$0xff] }
 0x128   : > { %2600 = vmatprep.subr.bf16.mxu1 %v2599_v33  ;;  %v1153_v33 = vld [vmem:[#allocation8 + $0x548] sm:$0xff] }
 0x129   : > { %v2631_v36 = vpack.c.bf16 %v1153_v33, %v1145_v31  ;;  %v979_v33 = vstv %s381_s1  ;;  %s3845_s1 = scalar_lea.hbm %s3925_s22, %s2334_s19 }
 0x12b   : > { %2602 = vmatpush1.bf16.msra.mxu1 %v2601_v38  ;;  %v1161_v38 = vld [vmem:[#allocation8 + $0x588] sm:$0xff] }
 0x12c   : > { %2604 = vmatprep.subr.bf16.mxu1 %v2603_v39  ;;  %v1169_v39 = vld [vmem:[#allocation8 + $0x5c8] sm:$0xff] }
 0x12d   : > { %v2635_v41 = vpack.c.bf16 %v1169_v39, %v1161_v38  ;;  %v986_v38 = vld [vmem:[#allocation8 + $0x10] sm:$0xff] }
 0x12e   : > { %v994_v39 = vld [vmem:[#allocation8 + $0x50] sm:$0xff] }
 0x12f   : > { %2606 = vmatpush1.bf16.msra.mxu1 %v2605_v45  ;;  %v1177_v45 = vld [vmem:[#allocation8 + $0x608] sm:$0xff] }
 0x130   : > { %2608 = vmatprep.subr.bf16.mxu1 %v2607_v47  ;;  %v1185_v47 = vld [vmem:[#allocation8 + $0x648] sm:$0xff] }
 0x131   : > { %v2639_v50 = vpack.c.bf16 %v1185_v47, %v1177_v45  ;;  %v2657_v45 = vpack.c.bf16 %v994_v39, %v986_v38  ;;  %v1098_v38 = vld [vmem:[#allocation8 + $0x390] sm:$0xff] }
 0x132   : > { %v1106_v39 = vld [vmem:[#allocation8 + $0x3d0] sm:$0xff] }
 0x133   : > { %2610 = vmatpush1.bf16.msra.mxu1 %v2609_v53  ;;  %v1193_v53 = vld [vmem:[#allocation8 + $0x688] sm:$0xff] }
 0x134   : > { %2612 = vmatprep.subr.bf16.mxu1 %v2611_v54  ;;  %v1201_v54 = vld [vmem:[#allocation8 + $0x6c8] sm:$0xff] }
 0x135   : > { %v2643_v56 = vpack.c.bf16 %v1201_v54, %v1193_v53  ;;  %v1019_v53 = vld [vmem:[#allocation8 + $0x118] sm:$0xff] }
 0x136   : > { %v1027_v54 = vld [vmem:[#allocation8 + $0x158] sm:$0xff] }
 0x137   : > { %2614 = vmatpush1.bf16.msra.mxu1 %v2613_v60  ;;  %v2645_v60 = vpack.c.bf16 %v1200_v58, %v1192_v57  ;;  %v1018_v57 = vld [vmem:[#allocation8 + $0x110] sm:$0xff] }
 0x138   : > { %2616 = vmatprep.subr.bf16.mxu1 %v2615_v61  ;;  %v1209_v61 = vld [vmem:[#allocation8 + $0x708] sm:$0xff]  ;;  %v1026_v58 = vld [vmem:[#allocation8 + $0x150] sm:$0xff] }
 0x139   : > { %v2647_v63 = vpack.c.bf16 %v1217_v62, %v1209_v61  ;;  %v1043_v61 = vld [vmem:[#allocation8 + $0x1d8] sm:$0xff]  ;;  %v2665_v62 = vpack.c.bf16 %v1026_v58, %v1018_v57 }
 0x13b   : > { %2618 = vmatpush1.bf16.msra.mxu1 %v2617_v2  ;;  %v2649_v2 = vpack.c.bf16 %v1216_v1, %v1208_v0  ;;  %v1034_v0 = vld [vmem:[#allocation8 + $0x190] sm:$0xff] }
 0x13c   : > { %2620 = vmatprep.subr.bf16.mxu1 %v2619_v3  ;;  %v1225_v3 = vld [vmem:[#allocation8 + $0x788] sm:$0xff]  ;;  %v1042_v1 = vld [vmem:[#allocation8 + $0x1d0] sm:$0xff] }
 0x13d   : > { %v2651_v6 = vpack.c.bf16 %v1233_v4, %v1225_v3  ;;  %v1059_v3 = vld [vmem:[#allocation8 + $0x258] sm:$0xff]  ;;  %v2669_v4 = vpack.c.bf16 %v1042_v1, %v1034_v0 }
 0x13e   : > { %v1147_v0 = vld [vmem:[#allocation8 + $0x518] sm:$0xff] }
 0x13f   : > { %2622 = vmatpush1.bf16.msra.mxu1 %v2621_v12  ;;  %v2653_v12 = vpack.c.bf16 %v1232_v11, %v1224_v10  ;;  %v1050_v10 = vld [vmem:[#allocation8 + $0x210] sm:$0xff]  ;;  %v1155_v1 = vld [vmem:[#allocation8 + $0x558] sm:$0xff] }
 0x140   : > { %2624 = vmatprep.subr.bf16.mxu1 %v2623_v14  ;;  %v987_v14 = vld [vmem:[#allocation8 + $0x18] sm:$0xff]  ;;  %v1058_v11 = vld [vmem:[#allocation8 + $0x250] sm:$0xff] }
 0x141   : > { %v2655_v17 = vpack.c.bf16 %v995_v16, %v987_v14  ;;  %v1075_v14 = vld [vmem:[#allocation8 + $0x2d8] sm:$0xff]  ;;  %v2673_v16 = vpack.c.bf16 %v1058_v11, %v1050_v10 }
 0x143   : > { %2626 = vmatpush1.bf16.msra.mxu1 %v2625_v25  ;;  %v690_v25 = vrot.slane %v640_v21, %v3709_v8  ;;  %v1066_v21 = vld [vmem:[#allocation8 + $0x290] sm:$0xff] }
 0x144   : > { %2628 = vmatprep.subr.bf16.mxu1 %v2627_v26 }
 0x147   : > { %2630 = vmatpush1.bf16.msra.mxu1 %v2629_v35 }
 0x148   : > { %2632 = vmatprep.subr.bf16.mxu1 %v2631_v36 }
 0x14b   : > { %2634 = vmatpush1.bf16.msra.mxu1 %v2633_v40 }
 0x14c   : > { %2636 = vmatprep.subr.bf16.mxu1 %v2635_v41  ;;  %v1003_v41 = vld [vmem:[#allocation8 + $0x98] sm:$0xff] }
 0x14f   : > { %2638 = vmatpush1.bf16.msra.mxu1 %v2637_v49  ;;  %v2659_v49 = vpack.c.bf16 %v1011_v42, %v1003_v41  ;;  %v1123_v41 = vld [vmem:[#allocation8 + $0x458] sm:$0xff]  ;;  %v2685_v42 = vpack.c.bf16 %v1106_v39, %v1098_v38 }
 0x150   : > { %2640 = vmatprep.subr.bf16.mxu1 %v2639_v50  ;;  %v1002_v50 = vld [vmem:[#allocation8 + $0x90] sm:$0xff]  ;;  %v1179_v38 = vld [vmem:[#allocation8 + $0x618] sm:$0xff] }
 0x151   : > { %v1187_v39 = vld [vmem:[#allocation8 + $0x658] sm:$0xff] }
 0x153   : > { %2642 = vmatpush1.bf16.msra.mxu1 %v2641_v55  ;;  %v2661_v55 = vpack.c.bf16 %v1010_v51, %v1002_v50  ;;  %v1131_v50 = vld [vmem:[#allocation8 + $0x498] sm:$0xff] }
 0x154   : > { %2644 = vmatprep.subr.bf16.mxu1 %v2643_v56  ;;  %v2663_v56 = vpack.c.bf16 %v1027_v54, %v1019_v53  ;;  %v1139_v51 = vld [vmem:[#allocation8 + $0x4d8] sm:$0xff]  ;;  %v1600_v53 = vld [vmem:[#allocation9 + $0x8] sm:$0xff] }
 0x155   : > { %v1602_v54 = vld [vmem:[#allocation9 + $0x18] sm:$0xff] }
 0x156   : > { %v2847_v57 = vpack.c.bf16 %v1602_v54, %v1600_v53  ;;  %v1186_v53 = vld [vmem:[#allocation8 + $0x650] sm:$0xff]  ;;  %v2703_v54 = vpack.c.bf16 %v1187_v39, %v1179_v38 }
 0x157   : > { %2646 = vmatpush1.bf16.msra.mxu1 %v2645_v60  ;;  %v1035_v60 = vld [vmem:[#allocation8 + $0x198] sm:$0xff]  ;;  %v1226_v39 = vld [vmem:[#allocation8 + $0x790] sm:$0xff] }
 0x158   : > { %2648 = vmatprep.subr.bf16.mxu1 %v2647_v63  ;;  %v2667_v63 = vpack.c.bf16 %v1043_v61, %v1035_v60  ;;  %v1130_v61 = vld [vmem:[#allocation8 + $0x490] sm:$0xff]  ;;  %2848 = vmatprep.subr.bf16.mxu0 %v2847_v57  ;;  %v1616_v57 = vld [vmem:[#allocation9 + $0x88] sm:$0xff] }
 0x15b   : > { %2650 = vmatpush1.bf16.msra.mxu1 %v2649_v2  ;;  %v1051_v2 = vld [vmem:[#allocation8 + $0x218] sm:$0xff] }
 0x15c   : > { %2652 = vmatprep.subr.bf16.mxu1 %v2651_v6  ;;  %v2671_v6 = vpack.c.bf16 %v1059_v3, %v1051_v2  ;;  %v1604_v2 = vld [vmem:[#allocation9 + $0x28] sm:$0xff]  ;;  %v1606_v3 = vld [vmem:[#allocation9 + $0x38] sm:$0xff] }
 0x15d   : > { %v2851_v10 = vpack.c.bf16 %v1606_v3, %v1604_v2  ;;  %v1202_v2 = vld [vmem:[#allocation8 + $0x6d0] sm:$0xff] }
 0x15f   : > { %2654 = vmatpush1.bf16.msra.mxu1 %v2653_v12  ;;  %v1067_v12 = vld [vmem:[#allocation8 + $0x298] sm:$0xff] }
 0x160   : > { %2656 = vmatprep.subr.bf16.mxu1 %v2655_v17  ;;  %v2675_v17 = vpack.c.bf16 %v1075_v14, %v1067_v12  ;;  %v1146_v14 = vld [vmem:[#allocation8 + $0x510] sm:$0xff] }
 0x1f5   : > { %v830_v26 = vpop.f32.mrb[0].mxu1 }
 0x1f6   : > { %v3103_v27 = vadd.f32 %v830_v26, %v686_v22  ;;  %v972_v30 = vpop.f32.mrb[0].mxu0  ;;  %v832_v31 = vpop.f32.mrb[1].mxu1  ;;  %v1074_v22 = vld [vmem:[#allocation8 + $0x2d0] sm:$0xff]  ;;  %v1091_v26 = vld [vmem:[#allocation8 + $0x358] sm:$0xff] }
 0x1f7   : > { %v3105_v35 = vadd.f32 %v832_v31, %v690_v25  ;;  %v974_v36 = vpop.f32.mrb[1].mxu0  ;;  %v1083_v25 = vld [vmem:[#allocation8 + $0x318] sm:$0xff]  ;;  %v1082_v31 = vld [vmem:[#allocation8 + $0x310] sm:$0xff] }
 0x1f8   : > { %v3104_v20 = vadd.f32 %v3103_v27, %v972_v30  ;;  %v2677_v27 = vpack.c.bf16 %v1074_v22, %v1066_v21  ;;  %v2679_v30 = vpack.c.bf16 %v1091_v26, %v1083_v25  ;;  %v1163_v21 = vld [vmem:[#allocation8 + $0x598] sm:$0xff]  ;;  %v1608_v25 = vld [vmem:[#allocation9 + $0x48] sm:$0xff] }
 0x1f9   : > { %v3106_v37 = vadd.f32 %v3105_v35, %v974_v36  ;;  %v1099_v35 = vld [vmem:[#allocation8 + $0x398] sm:$0xff] }
 0x1fa   : > { %v980_v40 = vmul.f32 %v3104_v20, %v979_v33  ;;  %vm977_vm0 = vcmp.ge.f32.partialorder %v3104_v20, 0.0  ;;  %v1107_v36 = vld [vmem:[#allocation8 + $0x3d8] sm:$0xff] }
 0x1fb   : > { %vm978_vm1 = vcmp.ge.f32.partialorder %v3106_v37, 0.0  ;;  %v981_v43 = vmul.f32 %v3106_v37, %v979_v33  ;;  %v1090_v33 = vld [vmem:[#allocation8 + $0x350] sm:$0xff]  ;;  %v1171_v22 = vld [vmem:[#allocation8 + $0x5d8] sm:$0xff] }
 0x1fc   : > { %v3776_v52 = vsel %vm977_vm0, %v3104_v20, %v980_v40  ;;  %v2681_v20 = vpack.c.bf16 %v1090_v33, %v1082_v31  ;;  %v1115_v40 = vld [vmem:[#allocation8 + $0x418] sm:$0xff] }
 0x1fd   : > { %v3774_v47 = vsel %vm978_vm1, %v3106_v37, %v981_v43  ;;  %v2683_v37 = vpack.c.bf16 %v1107_v36, %v1099_v35  ;;  %v1114_v43 = vld [vmem:[#allocation8 + $0x410] sm:$0xff]  ;;  %v1610_v26 = vld [vmem:[#allocation9 + $0x58] sm:$0xff] }
 0x1fe   : > { %1346 = vmatprep.mubr.f32.mxu1 %v3774_v47  ;;  %v2855_v31 = vpack.c.bf16 %v1610_v26, %v1608_v25  ;;  %v1162_v36 = vld [vmem:[#allocation8 + $0x590] sm:$0xff] }
 0x1ff   : > { %1347 = vmatmul.mubr.f32.vlgmr.msra.gmra.mrb[2].mxu1 %v3776_v52  ;;  %v1218_v25 = vld [vmem:[#allocation8 + $0x750] sm:$0xff] }
 0x200   : > { %2658 = vmatpush1.bf16.msra.mxu1 %v2657_v45  ;;  %1417 = vmatprep.mubr.f32.mxu1 %v3774_v47  ;;  %v1122_v45 = vld [vmem:[#allocation8 + $0x450] sm:$0xff] }
 0x201   : > { %2660 = vmatprep.subr.bf16.mxu1 %v2659_v49  ;;  %v2687_v49 = vpack.c.bf16 %v1123_v41, %v1115_v40  ;;  %v2689_v60 = vpack.c.bf16 %v1122_v45, %v1114_v43  ;;  %v1612_v40 = vld [vmem:[#allocation9 + $0x68] sm:$0xff]  ;;  %v1614_v41 = vld [vmem:[#allocation9 + $0x78] sm:$0xff]  ;;  %v1613_v43 = vld [vmem:[#allocation9 + $0x70] sm:$0xff] }
 0x202   : > { %v2859_v45 = vpack.c.bf16 %v1614_v41, %v1612_v40  ;;  %v1234_v40 = vld [vmem:[#allocation8 + $0x7d0] sm:$0xff] }
 0x204   : > { %2662 = vmatpush1.bf16.msra.mxu1 %v2661_v55  ;;  %v1599_v55 = vld [vmem:[#allocation9] sm:$0xff] }
 0x205   : > { %2664 = vmatprep.subr.bf16.mxu1 %v2663_v56  ;;  %v1601_v56 = vld [vmem:[#allocation9 + $0x10] sm:$0xff] }
 0x206   : > { %v2849_v58 = vpack.c.bf16 %v1601_v56, %v1599_v55  ;;  %v1195_v55 = vld [vmem:[#allocation8 + $0x698] sm:$0xff] }
 0x207   : > { %v1203_v56 = vld [vmem:[#allocation8 + $0x6d8] sm:$0xff] }
 0x208   : > { %2666 = vmatpush1.bf16.msra.mxu1 %v2665_v62  ;;  %v1138_v62 = vld [vmem:[#allocation8 + $0x4d0] sm:$0xff]  ;;  %2850 = vmatpush1.bf16.msra.mxu0 %v2849_v58  ;;  %v1618_v58 = vld [vmem:[#allocation9 + $0x98] sm:$0xff]  ;;  %v2707_v3 = vpack.c.bf16 %v1203_v56, %v1195_v55  ;;  %v2717_v55 = vpack.c.bf16 %v1234_v40, %v1226_v39  ;;  %v988_v56 = vld [vmem:[#allocation8 + $0x20] sm:$0xff] }
 0x209   : > { %2668 = vmatprep.subr.bf16.mxu1 %v2667_v63  ;;  %v2691_v63 = vpack.c.bf16 %v1139_v51, %v1131_v50  ;;  %v2693_v12 = vpack.c.bf16 %v1138_v62, %v1130_v61  ;;  %2852 = vmatprep.subr.bf16.mxu0 %v2851_v10  ;;  %v1178_v51 = vld [vmem:[#allocation8 + $0x610] sm:$0xff]  ;;  %v2863_v62 = vpack.c.bf16 %v1618_v58, %v1616_v57  ;;  %v1620_v10 = vld [vmem:[#allocation9 + $0xa8] sm:$0xff]  ;;  %v996_v57 = vld [vmem:[#allocation8 + $0x60] sm:$0xff] }
 0x20a   : > { %v1617_v61 = vld [vmem:[#allocation9 + $0x90] sm:$0xff]  ;;  %v1020_v39 = vld [vmem:[#allocation8 + $0x120] sm:$0xff] }
 0x20b   : > { %v1028_v40 = vld [vmem:[#allocation8 + $0x160] sm:$0xff] }
 0x20c   : > { %2670 = vmatpush1.bf16.msra.mxu1 %v2669_v4  ;;  %v1603_v4 = vld [vmem:[#allocation9 + $0x20] sm:$0xff] }
 0x20d   : > { %2672 = vmatprep.subr.bf16.mxu1 %v2671_v6  ;;  %v1605_v6 = vld [vmem:[#allocation9 + $0x30] sm:$0xff] }
 0x20e   : > { %v2853_v11 = vpack.c.bf16 %v1605_v6, %v1603_v4  ;;  %v1211_v4 = vld [vmem:[#allocation8 + $0x718] sm:$0xff] }
 0x20f   : > { %v1219_v6 = vld [vmem:[#allocation8 + $0x758] sm:$0xff] }
 0x210   : > { %2674 = vmatpush1.bf16.msra.mxu1 %v2673_v16  ;;  %v1154_v16 = vld [vmem:[#allocation8 + $0x550] sm:$0xff]  ;;  %2854 = vmatpush1.bf16.msra.mxu0 %v2853_v11  ;;  %v1622_v11 = vld [vmem:[#allocation9 + $0xb8] sm:$0xff]  ;;  %v2711_v26 = vpack.c.bf16 %v1219_v6, %v1211_v4  ;;  %v2721_v4 = vpack.c.bf16 %v996_v57, %v988_v56  ;;  %v1004_v6 = vld [vmem:[#allocation8 + $0xa0] sm:$0xff] }
 0x211   : > { %2676 = vmatprep.subr.bf16.mxu1 %v2675_v17  ;;  %v2695_v17 = vpack.c.bf16 %v1155_v1, %v1147_v0  ;;  %v2697_v35 = vpack.c.bf16 %v1154_v16, %v1146_v14  ;;  %2856 = vmatprep.subr.bf16.mxu0 %v2855_v31  ;;  %v2705_v0 = vpack.c.bf16 %v1186_v53, %v1178_v51  ;;  %v1194_v1 = vld [vmem:[#allocation8 + $0x690] sm:$0xff]  ;;  %v1624_v31 = vld [vmem:[#allocation9 + $0xc8] sm:$0xff]  ;;  %v1036_v56 = vld [vmem:[#allocation8 + $0x1a0] sm:$0xff] }
 0x212   : > { %v1621_v14 = vld [vmem:[#allocation9 + $0xb0] sm:$0xff]  ;;  %v2867_v16 = vpack.c.bf16 %v1622_v11, %v1620_v10  ;;  %v1012_v10 = vld [vmem:[#allocation8 + $0xe0] sm:$0xff] }
 0x213   : > { %v1629_v51 = vld [vmem:[#allocation9 + $0xf0] sm:$0xff]  ;;  %v1044_v57 = vld [vmem:[#allocation8 + $0x1e0] sm:$0xff] }
 0x214   : > { %2678 = vmatpush1.bf16.msra.mxu1 %v2677_v27  ;;  %v1607_v27 = vld [vmem:[#allocation9 + $0x40] sm:$0xff] }
 0x215   : > { %2680 = vmatprep.subr.bf16.mxu1 %v2679_v30  ;;  %v1609_v30 = vld [vmem:[#allocation9 + $0x50] sm:$0xff] }
 0x216   : > { %v2857_v33 = vpack.c.bf16 %v1609_v30, %v1607_v27  ;;  %v1227_v27 = vld [vmem:[#allocation8 + $0x798] sm:$0xff] }
 0x217   : > { %v1235_v30 = vld [vmem:[#allocation8 + $0x7d8] sm:$0xff] }
 0x218   : > { %2682 = vmatpush1.bf16.msra.mxu1 %v2681_v20  ;;  %v1170_v20 = vld [vmem:[#allocation8 + $0x5d0] sm:$0xff]  ;;  %2858 = vmatpush1.bf16.msra.mxu0 %v2857_v33  ;;  %v1626_v33 = vld [vmem:[#allocation9 + $0xd8] sm:$0xff]  ;;  %v2715_v41 = vpack.c.bf16 %v1235_v30, %v1227_v27  ;;  %v1640_v27 = vld [vmem:[#allocation9 + $0x148] sm:$0xff] }
 0x219   : > { %2684 = vmatprep.subr.bf16.mxu1 %v2683_v37  ;;  %v2699_v37 = vpack.c.bf16 %v1171_v22, %v1163_v21  ;;  %v2701_v50 = vpack.c.bf16 %v1170_v20, %v1162_v36  ;;  %2860 = vmatprep.subr.bf16.mxu0 %v2859_v45  ;;  %v2709_v21 = vpack.c.bf16 %v1202_v2, %v1194_v1  ;;  %v1210_v22 = vld [vmem:[#allocation8 + $0x710] sm:$0xff]  ;;  %v1628_v45 = vld [vmem:[#allocation9 + $0xe8] sm:$0xff]  ;;  %v1642_v30 = vld [vmem:[#allocation9 + $0x158] sm:$0xff] }
 0x21a   : > { %v1625_v36 = vld [vmem:[#allocation9 + $0xd0] sm:$0xff]  ;;  %v2871_v20 = vpack.c.bf16 %v1626_v33, %v1624_v31  ;;  %v2713_v38 = vpack.c.bf16 %v1218_v25, %v1210_v22  ;;  %v1635_v22 = vld [vmem:[#allocation9 + $0x120] sm:$0xff]  ;;  %v2725_v33 = vpack.c.bf16 %v1012_v10, %v1004_v6 }
 0x21b   : > { %v1633_v1 = vld [vmem:[#allocation9 + $0x110] sm:$0xff]  ;;  %v1639_v31 = vld [vmem:[#allocation9 + $0x140] sm:$0xff] }
 0x21c   : > { %2686 = vmatpush1.bf16.msra.mxu1 %v2685_v42  ;;  %v1611_v42 = vld [vmem:[#allocation9 + $0x60] sm:$0xff]  ;;  %v1637_v25 = vld [vmem:[#allocation9 + $0x130] sm:$0xff] }
 0x21d   : > { %2688 = vmatprep.subr.bf16.mxu1 %v2687_v49  ;;  %v2861_v49 = vpack.c.bf16 %v1613_v43, %v1611_v42  ;;  %v989_v42 = vld [vmem:[#allocation8 + $0x28] sm:$0xff]  ;;  %v1052_v6 = vld [vmem:[#allocation8 + $0x220] sm:$0xff] }
 0x21e   : > { %v997_v43 = vld [vmem:[#allocation8 + $0x68] sm:$0xff]  ;;  %v1060_v10 = vld [vmem:[#allocation8 + $0x260] sm:$0xff] }
 0x21f   : > { %2862 = vmatpush1.bf16.msra.mxu0 %v2861_v49  ;;  %v1630_v49 = vld [vmem:[#allocation9 + $0xf8] sm:$0xff]  ;;  %v2719_v58 = vpack.c.bf16 %v997_v43, %v989_v42  ;;  %v1045_v42 = vld [vmem:[#allocation8 + $0x1e8] sm:$0xff] }
 0x220   : > { %2690 = vmatpush1.bf16.msra.mxu1 %v2689_v60  ;;  %v1615_v60 = vld [vmem:[#allocation9 + $0x80] sm:$0xff]  ;;  %2864 = vmatprep.subr.bf16.mxu0 %v2863_v62  ;;  %v2875_v53 = vpack.c.bf16 %v1630_v49, %v1628_v45  ;;  %v1632_v62 = vld [vmem:[#allocation9 + $0x108] sm:$0xff] }
 0x221   : > { %2692 = vmatprep.subr.bf16.mxu1 %v2691_v63  ;;  %v2865_v63 = vpack.c.bf16 %v1617_v61, %v1615_v60  ;;  %v1005_v60 = vld [vmem:[#allocation8 + $0xa8] sm:$0xff]  ;;  %v1643_v49 = vld [vmem:[#allocation9 + $0x160] sm:$0xff] }
 0x222   : > { %v1013_v61 = vld [vmem:[#allocation8 + $0xe8] sm:$0xff] }
 0x223   : > { %2866 = vmatpush1.bf16.msra.mxu0 %v2865_v63  ;;  %v1634_v63 = vld [vmem:[#allocation9 + $0x118] sm:$0xff]  ;;  %v2723_v11 = vpack.c.bf16 %v1013_v61, %v1005_v60  ;;  %v1061_v60 = vld [vmem:[#allocation8 + $0x268] sm:$0xff] }
 0x224   : > { %2694 = vmatpush1.bf16.msra.mxu1 %v2693_v12  ;;  %v1619_v12 = vld [vmem:[#allocation9 + $0xa0] sm:$0xff]  ;;  %2868 = vmatprep.subr.bf16.mxu0 %v2867_v16  ;;  %v2879_v2 = vpack.c.bf16 %v1634_v63, %v1632_v62  ;;  %v1638_v16 = vld [vmem:[#allocation9 + $0x138] sm:$0xff] }
 0x225   : > { %2696 = vmatprep.subr.bf16.mxu1 %v2695_v17  ;;  %v2869_v17 = vpack.c.bf16 %v1621_v14, %v1619_v12  ;;  %v1021_v12 = vld [vmem:[#allocation8 + $0x128] sm:$0xff]  ;;  %v1647_v63 = vld [vmem:[#allocation9 + $0x180] sm:$0xff] }
 0x226   : > { %v1636_v14 = vld [vmem:[#allocation9 + $0x128] sm:$0xff] }
 0x227   : > { %2870 = vmatpush1.bf16.msra.mxu0 %v2869_v17  ;;  %v1029_v17 = vld [vmem:[#allocation8 + $0x168] sm:$0xff] }
 0x228   : > { %2698 = vmatpush1.bf16.msra.mxu1 %v2697_v35  ;;  %v1623_v35 = vld [vmem:[#allocation9 + $0xc0] sm:$0xff]  ;;  %2872 = vmatprep.subr.bf16.mxu0 %v2871_v20  ;;  %v1644_v20 = vld [vmem:[#allocation9 + $0x168] sm:$0xff] }
 0x229   : > { %2700 = vmatprep.subr.bf16.mxu1 %v2699_v37  ;;  %v2873_v37 = vpack.c.bf16 %v1625_v36, %v1623_v35  ;;  %v2887_v35 = vpack.c.bf16 %v1642_v30, %v1640_v27  ;;  %v1641_v36 = vld [vmem:[#allocation9 + $0x150] sm:$0xff]  ;;  %v1076_v27 = vld [vmem:[#allocation8 + $0x2e0] sm:$0xff]  ;;  %v1085_v30 = vld [vmem:[#allocation8 + $0x328] sm:$0xff] }
 0x22a   : > { %v2889_v43 = vpack.c.bf16 %v1641_v36, %v1639_v31  ;;  %v1093_v31 = vld [vmem:[#allocation8 + $0x368] sm:$0xff]  ;;  %v1084_v36 = vld [vmem:[#allocation8 + $0x320] sm:$0xff] }
 0x22b   : > { %2874 = vmatpush1.bf16.msra.mxu0 %v2873_v37  ;;  %v1646_v37 = vld [vmem:[#allocation9 + $0x178] sm:$0xff] }
 0x22c   : > { %2702 = vmatpush1.bf16.msra.mxu1 %v2701_v50  ;;  %v1627_v50 = vld [vmem:[#allocation9 + $0xe0] sm:$0xff]  ;;  %2876 = vmatprep.subr.bf16.mxu0 %v2875_v53  ;;  %v2891_v45 = vpack.c.bf16 %v1646_v37, %v1644_v20  ;;  %v1648_v53 = vld [vmem:[#allocation9 + $0x188] sm:$0xff]  ;;  %v2743_v37 = vpack.c.bf16 %v1093_v31, %v1085_v30 }
 0x22d   : > { %2704 = vmatprep.subr.bf16.mxu1 %v2703_v54  ;;  %v2877_v54 = vpack.c.bf16 %v1629_v51, %v1627_v50  ;;  %v1645_v50 = vld [vmem:[#allocation9 + $0x170] sm:$0xff]  ;;  %v2729_v51 = vpack.c.bf16 %v1028_v40, %v1020_v39  ;;  %v1092_v20 = vld [vmem:[#allocation8 + $0x360] sm:$0xff]  ;;  %v1656_v39 = vld [vmem:[#allocation9 + $0x1c8] sm:$0xff] }
 0x22e   : > { %v2893_v61 = vpack.c.bf16 %v1645_v50, %v1643_v49  ;;  %v1658_v40 = vld [vmem:[#allocation9 + $0x1d8] sm:$0xff]  ;;  %v2745_v50 = vpack.c.bf16 %v1092_v20, %v1084_v36  ;;  %v1148_v30 = vld [vmem:[#allocation8 + $0x520] sm:$0xff] }
 0x22f   : > { %2878 = vmatpush1.bf16.msra.mxu0 %v2877_v54  ;;  %v1650_v54 = vld [vmem:[#allocation9 + $0x198] sm:$0xff]  ;;  %v1156_v31 = vld [vmem:[#allocation8 + $0x560] sm:$0xff] }
 0x230   : > { %2706 = vmatpush1.bf16.msra.mxu1 %v2705_v0  ;;  %v1631_v0 = vld [vmem:[#allocation9 + $0x100] sm:$0xff]  ;;  %2880 = vmatprep.subr.bf16.mxu0 %v2879_v2  ;;  %v2895_v62 = vpack.c.bf16 %v1650_v54, %v1648_v53  ;;  %v1652_v2 = vld [vmem:[#allocation9 + $0x1a8] sm:$0xff]  ;;  %v2761_v36 = vpack.c.bf16 %v1156_v31, %v1148_v30  ;;  %v1023_v30 = vld [vmem:[#allocation8 + $0x138] sm:$0xff] }
 0x231   : > { %2708 = vmatprep.subr.bf16.mxu1 %v2707_v3  ;;  %v2881_v3 = vpack.c.bf16 %v1633_v1, %v1631_v0  ;;  %v1649_v0 = vld [vmem:[#allocation9 + $0x190] sm:$0xff]  ;;  %v2733_v1 = vpack.c.bf16 %v1044_v57, %v1036_v56  ;;  %v1108_v53 = vld [vmem:[#allocation8 + $0x3e0] sm:$0xff]  ;;  %v1660_v56 = vld [vmem:[#allocation9 + $0x1e8] sm:$0xff] }
 0x232   : > { %v1662_v57 = vld [vmem:[#allocation9 + $0x1f8] sm:$0xff] }
 0x233   : > { %2882 = vmatpush1.bf16.msra.mxu0 %v2881_v3  ;;  %v1654_v3 = vld [vmem:[#allocation9 + $0x1b8] sm:$0xff] }
 0x234   : > { %2710 = vmatpush1.bf16.msra.mxu1 %v2709_v21  ;;  %v2883_v21 = vpack.c.bf16 %v1638_v16, %v1636_v14  ;;  %v2897_v14 = vpack.c.bf16 %v1649_v0, %v1647_v63  ;;  %v2899_v16 = vpack.c.bf16 %v1654_v3, %v1652_v2  ;;  %v1124_v3 = vld [vmem:[#allocation8 + $0x460] sm:$0xff]  ;;  %v1031_v31 = vld [vmem:[#allocation8 + $0x178] sm:$0xff] }
 0x235   : > { %2712 = vmatprep.subr.bf16.mxu1 %v2711_v26  ;;  %v2885_v26 = vpack.c.bf16 %v1637_v25, %v1635_v22  ;;  %v2737_v22 = vpack.c.bf16 %v1060_v10, %v1052_v6  ;;  %v1666_v6 = vld [vmem:[#allocation9 + $0x218] sm:$0xff]  ;;  %v1133_v10 = vld [vmem:[#allocation8 + $0x4a8] sm:$0xff] }
 0x236   : > { %2884 = vmatprep.subr.bf16.mxu0 %v2883_v21  ;;  %v1653_v21 = vld [vmem:[#allocation9 + $0x1b0] sm:$0xff] }
 0x237   : > { %2886 = vmatpush1.bf16.msra.mxu0 %v2885_v26  ;;  %v1068_v26 = vld [vmem:[#allocation8 + $0x2a0] sm:$0xff] }
 0x238   : > { %2714 = vmatpush1.bf16.msra.mxu1 %v2713_v38  ;;  %v2727_v38 = vpack.c.bf16 %v1029_v17, %v1021_v12  ;;  %2888 = vmatprep.subr.bf16.mxu0 %v2887_v35  ;;  %v1077_v12 = vld [vmem:[#allocation8 + $0x2e8] sm:$0xff]  ;;  %v1651_v17 = vld [vmem:[#allocation9 + $0x1a0] sm:$0xff]  ;;  %v2741_v35 = vpack.c.bf16 %v1076_v27, %v1068_v26 }
 0x239   : > { %2716 = vmatprep.subr.bf16.mxu1 %v2715_v41  ;;  %v1037_v41 = vld [vmem:[#allocation8 + $0x1a8] sm:$0xff] }
 0x23b   : > { %2890 = vmatpush1.bf16.msra.mxu0 %v2889_v43  ;;  %v1655_v43 = vld [vmem:[#allocation9 + $0x1c0] sm:$0xff] }
 0x23c   : > { %2718 = vmatpush1.bf16.msra.mxu1 %v2717_v55  ;;  %v2731_v55 = vpack.c.bf16 %v1045_v42, %v1037_v41  ;;  %2892 = vmatprep.subr.bf16.mxu0 %v2891_v45  ;;  %v1109_v41 = vld [vmem:[#allocation8 + $0x3e8] sm:$0xff]  ;;  %v2903_v42 = vpack.c.bf16 %v1658_v40, %v1656_v39  ;;  %v1657_v45 = vld [vmem:[#allocation9 + $0x1d0] sm:$0xff] }
 0x23d   : > { %2720 = vmatprep.subr.bf16.mxu1 %v2719_v58  ;;  %v1053_v58 = vld [vmem:[#allocation8 + $0x228] sm:$0xff]  ;;  %v2905_v49 = vpack.c.bf16 %v1657_v45, %v1655_v43  ;;  %v1180_v43 = vld [vmem:[#allocation8 + $0x620] sm:$0xff] }
 0x23e   : > { %v1181_v39 = vld [vmem:[#allocation8 + $0x628] sm:$0xff]  ;;  %v1188_v45 = vld [vmem:[#allocation8 + $0x660] sm:$0xff] }
 0x23f   : > { %1418 = vmatmul.mubr.f32.vlgmr.msra.gmra.mrb[4].mxu1 %v3776_v52  ;;  %2894 = vmatpush1.bf16.msra.mxu0 %v2893_v61  ;;  %v1659_v61 = vld [vmem:[#allocation9 + $0x1e0] sm:$0xff]  ;;  %v1189_v40 = vld [vmem:[#allocation8 + $0x668] sm:$0xff] }
 0x240   : > { %2722 = vmatpush1.bf16.msra.mxu1 %v2721_v4  ;;  %1488 = vmatprep.mubr.f32.mxu1 %v3774_v47  ;;  %v2735_v4 = vpack.c.bf16 %v1061_v60, %v1053_v58  ;;  %v1125_v58 = vld [vmem:[#allocation8 + $0x468] sm:$0xff]  ;;  %v2907_v60 = vpack.c.bf16 %v1662_v57, %v1660_v56 }
 0x241   : > { %2724 = vmatprep.subr.bf16.mxu1 %v2723_v11  ;;  %v1069_v11 = vld [vmem:[#allocation8 + $0x2a8] sm:$0xff]  ;;  %2896 = vmatprep.subr.bf16.mxu0 %v2895_v62  ;;  %v1661_v62 = vld [vmem:[#allocation9 + $0x1f0] sm:$0xff] }
 0x242   : > { %v2739_v25 = vpack.c.bf16 %v1077_v12, %v1069_v11  ;;  %v2909_v63 = vpack.c.bf16 %v1661_v62, %v1659_v61  ;;  %v1141_v11 = vld [vmem:[#allocation8 + $0x4e8] sm:$0xff]  ;;  %v1212_v61 = vld [vmem:[#allocation8 + $0x720] sm:$0xff] }
 0x243   : > { %2898 = vmatpush1.bf16.msra.mxu0 %v2897_v14  ;;  %v1213_v56 = vld [vmem:[#allocation8 + $0x728] sm:$0xff]  ;;  %v1220_v62 = vld [vmem:[#allocation8 + $0x760] sm:$0xff] }
 0x244   : > { %2726 = vmatpush1.bf16.msra.mxu1 %v2725_v33  ;;  %v2901_v33 = vpack.c.bf16 %v1653_v21, %v1651_v17  ;;  %2900 = vmatprep.subr.bf16.mxu0 %v2899_v16  ;;  %v2755_v16 = vpack.c.bf16 %v1141_v11, %v1133_v10  ;;  %v1132_v17 = vld [vmem:[#allocation8 + $0x4a0] sm:$0xff]  ;;  %v1221_v57 = vld [vmem:[#allocation8 + $0x768] sm:$0xff]  ;;  %v999_v10 = vld [vmem:[#allocation8 + $0x78] sm:$0xff] }
 0x245   : > { %2728 = vmatprep.subr.bf16.mxu1 %v2727_v38  ;;  %v1101_v38 = vld [vmem:[#allocation8 + $0x3a8] sm:$0xff]  ;;  %v1140_v21 = vld [vmem:[#allocation8 + $0x4e0] sm:$0xff] }
 0x246   : > { %v2747_v54 = vpack.c.bf16 %v1109_v41, %v1101_v38  ;;  %v2757_v26 = vpack.c.bf16 %v1140_v21, %v1132_v17  ;;  %v1172_v38 = vld [vmem:[#allocation8 + $0x5e0] sm:$0xff]  ;;  %v1007_v17 = vld [vmem:[#allocation8 + $0xb8] sm:$0xff] }
 0x247   : > { %2902 = vmatpush1.bf16.msra.mxu0 %v2901_v33  ;;  %v1165_v33 = vld [vmem:[#allocation8 + $0x5a8] sm:$0xff]  ;;  %v1015_v21 = vld [vmem:[#allocation8 + $0xf8] sm:$0xff] }
 0x248   : > { %2730 = vmatpush1.bf16.msra.mxu1 %v2729_v51  ;;  %v1100_v51 = vld [vmem:[#allocation8 + $0x3a0] sm:$0xff]  ;;  %2904 = vmatprep.subr.bf16.mxu0 %v2903_v42  ;;  %v2767_v42 = vpack.c.bf16 %v1189_v40, %v1181_v39 }
 0x249   : > { %2732 = vmatprep.subr.bf16.mxu1 %v2731_v55  ;;  %v1117_v55 = vld [vmem:[#allocation8 + $0x428] sm:$0xff]  ;;  %v2749_v0 = vpack.c.bf16 %v1108_v53, %v1100_v51  ;;  %v2769_v51 = vpack.c.bf16 %v1188_v45, %v1180_v43  ;;  %v1055_v43 = vld [vmem:[#allocation8 + $0x238] sm:$0xff] }
 0x24a   : > { %v2751_v2 = vpack.c.bf16 %v1125_v58, %v1117_v55  ;;  %v1204_v55 = vld [vmem:[#allocation8 + $0x6e0] sm:$0xff]  ;;  %v1063_v45 = vld [vmem:[#allocation8 + $0x278] sm:$0xff] }
 0x24b   : > { %2906 = vmatpush1.bf16.msra.mxu0 %v2905_v49  ;;  %v1197_v49 = vld [vmem:[#allocation8 + $0x6a8] sm:$0xff] }
 0x24c   : > { %2734 = vmatpush1.bf16.msra.mxu1 %v2733_v1  ;;  %v1116_v1 = vld [vmem:[#allocation8 + $0x420] sm:$0xff]  ;;  %2908 = vmatprep.subr.bf16.mxu0 %v2907_v60  ;;  %v2775_v60 = vpack.c.bf16 %v1221_v57, %v1213_v56 }
 0x24d   : > { %2736 = vmatprep.subr.bf16.mxu1 %v2735_v4  ;;  %v1664_v4 = vld [vmem:[#allocation9 + $0x208] sm:$0xff]  ;;  %v2753_v14 = vpack.c.bf16 %v1124_v3, %v1116_v1  ;;  %v2777_v1 = vpack.c.bf16 %v1220_v62, %v1212_v61  ;;  %v1228_v3 = vld [vmem:[#allocation8 + $0x7a0] sm:$0xff]  ;;  %v1087_v61 = vld [vmem:[#allocation8 + $0x338] sm:$0xff] }
 0x24e   : > { %v2911_v12 = vpack.c.bf16 %v1666_v6, %v1664_v4  ;;  %v1236_v4 = vld [vmem:[#allocation8 + $0x7e0] sm:$0xff]  ;;  %v991_v6 = vld [vmem:[#allocation8 + $0x38] sm:$0xff] }
 0x24f   : > { %2910 = vmatpush1.bf16.msra.mxu0 %v2909_v63  ;;  %v1229_v63 = vld [vmem:[#allocation8 + $0x7a8] sm:$0xff]  ;;  %v2781_v11 = vpack.c.bf16 %v1236_v4, %v1228_v3  ;;  %v1095_v62 = vld [vmem:[#allocation8 + $0x378] sm:$0xff] }
 0x250   : > { %2738 = vmatpush1.bf16.msra.mxu1 %v2737_v22  ;;  %2912 = vmatprep.subr.bf16.mxu0 %v2911_v12  ;;  %v1149_v22 = vld [vmem:[#allocation8 + $0x528] sm:$0xff]  ;;  %v2783_v12 = vpack.c.bf16 %v999_v10, %v991_v6  ;;  %v1103_v3 = vld [vmem:[#allocation8 + $0x3b8] sm:$0xff] }
 0x251   : > { %2740 = vmatprep.subr.bf16.mxu1 %v2739_v25  ;;  %v1157_v25 = vld [vmem:[#allocation8 + $0x568] sm:$0xff]  ;;  %v1111_v4 = vld [vmem:[#allocation8 + $0x3f8] sm:$0xff] }
 0x252   : > { %v2759_v27 = vpack.c.bf16 %v1157_v25, %v1149_v22  ;;  %v2787_v25 = vpack.c.bf16 %v1015_v21, %v1007_v17  ;;  %v2811_v10 = vpack.c.bf16 %v1111_v4, %v1103_v3 }
 0x254   : > { %2742 = vmatpush1.bf16.msra.mxu1 %v2741_v35  ;;  %v1173_v35 = vld [vmem:[#allocation8 + $0x5e8] sm:$0xff] }
 0x255   : > { %2744 = vmatprep.subr.bf16.mxu1 %v2743_v37  ;;  %v2763_v20 = vpack.c.bf16 %v1173_v35, %v1165_v33  ;;  %v1164_v37 = vld [vmem:[#allocation8 + $0x5a0] sm:$0xff]  ;;  %v2791_v35 = vpack.c.bf16 %v1031_v31, %v1023_v30 }
 0x256   : > { %v2765_v41 = vpack.c.bf16 %v1172_v38, %v1164_v37  ;;  %v1039_v37 = vld [vmem:[#allocation8 + $0x1b8] sm:$0xff] }
 0x257   : > { %v1047_v38 = vld [vmem:[#allocation8 + $0x1f8] sm:$0xff] }
 0x258   : > { %2746 = vmatpush1.bf16.msra.mxu1 %v2745_v50  ;;  %v1205_v50 = vld [vmem:[#allocation8 + $0x6e8] sm:$0xff]  ;;  %v2795_v40 = vpack.c.bf16 %v1047_v38, %v1039_v37 }
 0x259   : > { %2748 = vmatprep.subr.bf16.mxu1 %v2747_v54  ;;  %v2771_v53 = vpack.c.bf16 %v1205_v50, %v1197_v49  ;;  %v1196_v54 = vld [vmem:[#allocation8 + $0x6a0] sm:$0xff]  ;;  %v2799_v50 = vpack.c.bf16 %v1063_v45, %v1055_v43 }
 0x25a   : > { %v2773_v58 = vpack.c.bf16 %v1204_v55, %v1196_v54  ;;  %v1071_v54 = vld [vmem:[#allocation8 + $0x2b8] sm:$0xff] }
 0x25b   : > { %v1079_v55 = vld [vmem:[#allocation8 + $0x2f8] sm:$0xff] }
 0x25c   : > { %2750 = vmatpush1.bf16.msra.mxu1 %v2749_v0  ;;  %v1237_v0 = vld [vmem:[#allocation8 + $0x7e8] sm:$0xff]  ;;  %v2803_v57 = vpack.c.bf16 %v1079_v55, %v1071_v54 }
 0x25d   : > { %2752 = vmatprep.subr.bf16.mxu1 %v2751_v2  ;;  %v2779_v2 = vpack.c.bf16 %v1237_v0, %v1229_v63  ;;  %v2807_v0 = vpack.c.bf16 %v1095_v62, %v1087_v61 }
 0x260   : > { %2754 = vmatpush1.bf16.msra.mxu1 %v2753_v14  ;;  %v990_v14 = vld [vmem:[#allocation8 + $0x30] sm:$0xff] }
 0x261   : > { %2756 = vmatprep.subr.bf16.mxu1 %v2755_v16  ;;  %v998_v16 = vld [vmem:[#allocation8 + $0x70] sm:$0xff] }
 0x262   : > { %v2785_v22 = vpack.c.bf16 %v998_v16, %v990_v14  ;;  %v1119_v14 = vld [vmem:[#allocation8 + $0x438] sm:$0xff] }
 0x263   : > { %v1127_v16 = vld [vmem:[#allocation8 + $0x478] sm:$0xff] }
 0x264   : > { %2758 = vmatpush1.bf16.msra.mxu1 %v2757_v26  ;;  %v1006_v26 = vld [vmem:[#allocation8 + $0xb0] sm:$0xff]  ;;  %v2815_v21 = vpack.c.bf16 %v1127_v16, %v1119_v14 }
 0x265   : > { %2760 = vmatprep.subr.bf16.mxu1 %v2759_v27  ;;  %v1014_v27 = vld [vmem:[#allocation8 + $0xf0] sm:$0xff] }
 0x266   : > { %v2789_v33 = vpack.c.bf16 %v1014_v27, %v1006_v26  ;;  %v1135_v26 = vld [vmem:[#allocation8 + $0x4b8] sm:$0xff] }
 0x267   : > { %v1143_v27 = vld [vmem:[#allocation8 + $0x4f8] sm:$0xff] }
 0x268   : > { %2762 = vmatpush1.bf16.msra.mxu1 %v2761_v36  ;;  %v1022_v36 = vld [vmem:[#allocation8 + $0x130] sm:$0xff]  ;;  %v2819_v31 = vpack.c.bf16 %v1143_v27, %v1135_v26 }
 0x269   : > { %2764 = vmatprep.subr.bf16.mxu1 %v2763_v20  ;;  %v1030_v20 = vld [vmem:[#allocation8 + $0x170] sm:$0xff] }
 0x26a   : > { %v2793_v39 = vpack.c.bf16 %v1030_v20, %v1022_v36  ;;  %v1151_v36 = vld [vmem:[#allocation8 + $0x538] sm:$0xff] }
 0x26b   : > { %v1159_v20 = vld [vmem:[#allocation8 + $0x578] sm:$0xff] }
 0x26c   : > { %2766 = vmatpush1.bf16.msra.mxu1 %v2765_v41  ;;  %v1038_v41 = vld [vmem:[#allocation8 + $0x1b0] sm:$0xff]  ;;  %v2823_v38 = vpack.c.bf16 %v1159_v20, %v1151_v36 }
 0x26d   : > { %2768 = vmatprep.subr.bf16.mxu1 %v2767_v42  ;;  %v1046_v42 = vld [vmem:[#allocation8 + $0x1f0] sm:$0xff] }
 0x26e   : > { %v2797_v49 = vpack.c.bf16 %v1046_v42, %v1038_v41  ;;  %v1167_v41 = vld [vmem:[#allocation8 + $0x5b8] sm:$0xff] }
 0x26f   : > { %v1175_v42 = vld [vmem:[#allocation8 + $0x5f8] sm:$0xff] }
 0x270   : > { %2770 = vmatpush1.bf16.msra.mxu1 %v2769_v51  ;;  %v1054_v51 = vld [vmem:[#allocation8 + $0x230] sm:$0xff]  ;;  %v2827_v45 = vpack.c.bf16 %v1175_v42, %v1167_v41  ;;  %v1668_v41 = vld [vmem:[#allocation9 + $0x228] sm:$0xff]  ;;  %v1670_v42 = vld [vmem:[#allocation9 + $0x238] sm:$0xff] }
 0x271   : > { %2772 = vmatprep.subr.bf16.mxu1 %v2771_v53  ;;  %v1062_v53 = vld [vmem:[#allocation8 + $0x270] sm:$0xff] }
 0x272   : > { %v2801_v56 = vpack.c.bf16 %v1062_v53, %v1054_v51  ;;  %v1183_v51 = vld [vmem:[#allocation8 + $0x638] sm:$0xff] }
 0x273   : > { %v1191_v53 = vld [vmem:[#allocation8 + $0x678] sm:$0xff] }
 0x274   : > { %2774 = vmatpush1.bf16.msra.mxu1 %v2773_v58  ;;  %v1070_v58 = vld [vmem:[#allocation8 + $0x2b0] sm:$0xff]  ;;  %v2831_v55 = vpack.c.bf16 %v1191_v53, %v1183_v51  ;;  %v2915_v51 = vpack.c.bf16 %v1670_v42, %v1668_v41  ;;  %v1667_v53 = vld [vmem:[#allocation9 + $0x220] sm:$0xff]  ;;  %v1696_v42 = vld [vmem:[#allocation9 + $0x308] sm:$0xff] }
 0x275   : > { %2776 = vmatprep.subr.bf16.mxu1 %v2775_v60  ;;  %v1078_v60 = vld [vmem:[#allocation8 + $0x2f0] sm:$0xff] }
 0x276   : > { %v2805_v63 = vpack.c.bf16 %v1078_v60, %v1070_v58  ;;  %v1199_v58 = vld [vmem:[#allocation8 + $0x6b8] sm:$0xff]  ;;  %v1693_v41 = vld [vmem:[#allocation9 + $0x2f0] sm:$0xff] }
 0x277   : > { %v1207_v60 = vld [vmem:[#allocation8 + $0x6f8] sm:$0xff] }
 0x278   : > { %2778 = vmatpush1.bf16.msra.mxu1 %v2777_v1  ;;  %v1086_v1 = vld [vmem:[#allocation8 + $0x330] sm:$0xff]  ;;  %v2835_v62 = vpack.c.bf16 %v1207_v60, %v1199_v58  ;;  %v1671_v60 = vld [vmem:[#allocation9 + $0x240] sm:$0xff] }
 0x279   : > { %2780 = vmatprep.subr.bf16.mxu1 %v2779_v2  ;;  %v1094_v2 = vld [vmem:[#allocation8 + $0x370] sm:$0xff] }
 0x27a   : > { %v2809_v6 = vpack.c.bf16 %v1094_v2, %v1086_v1  ;;  %v1215_v1 = vld [vmem:[#allocation8 + $0x738] sm:$0xff] }
 0x27b   : > { %v1223_v2 = vld [vmem:[#allocation8 + $0x778] sm:$0xff] }
 0x27c   : > { %2782 = vmatpush1.bf16.msra.mxu1 %v2781_v11  ;;  %v1102_v11 = vld [vmem:[#allocation8 + $0x3b0] sm:$0xff]  ;;  %v2839_v4 = vpack.c.bf16 %v1223_v2, %v1215_v1  ;;  %v1680_v2 = vld [vmem:[#allocation9 + $0x288] sm:$0xff] }
 0x27d   : > { %2784 = vmatprep.subr.bf16.mxu1 %v2783_v12  ;;  %v1110_v12 = vld [vmem:[#allocation8 + $0x3f0] sm:$0xff] }
 0x27e   : > { %v2813_v17 = vpack.c.bf16 %v1110_v12, %v1102_v11  ;;  %v1231_v11 = vld [vmem:[#allocation8 + $0x7b8] sm:$0xff]  ;;  %v1677_v1 = vld [vmem:[#allocation9 + $0x270] sm:$0xff] }
 0x27f   : > { %1489 = vmatmul.mubr.f32.vlgmr.msra.gmra.mrb[6].mxu1 %v3776_v52  ;;  %v1239_v12 = vld [vmem:[#allocation8 + $0x7f8] sm:$0xff] }
 0x280   : > { %2786 = vmatpush1.bf16.msra.mxu1 %v2785_v22  ;;  %1559 = vmatprep.mubr.f32.mxu1 %v3774_v47  ;;  %v1118_v22 = vld [vmem:[#allocation8 + $0x430] sm:$0xff]  ;;  %v2843_v16 = vpack.c.bf16 %v1239_v12, %v1231_v11  ;;  %v1684_v12 = vld [vmem:[#allocation9 + $0x2a8] sm:$0xff] }
 0x281   : > { %2788 = vmatprep.subr.bf16.mxu1 %v2787_v25  ;;  %v1126_v25 = vld [vmem:[#allocation8 + $0x470] sm:$0xff] }
 0x282   : > { %v2817_v30 = vpack.c.bf16 %v1126_v25, %v1118_v22  ;;  %v3789_v25 = vld [vmem:[%s3894_s5] sm:$0xff] }
 0x283   : > { %v1245_v26 = vrot.slane %v3789_v25, %v3727_v13  ;;  %v1249_v27 = vrot.slane %v3789_v25, %v3709_v8  ;;  %v1681_v11 = vld [vmem:[#allocation9 + $0x290] sm:$0xff] }
 0x284   : > { %2790 = vmatpush1.bf16.msra.mxu1 %v2789_v33  ;;  %v1134_v33 = vld [vmem:[#allocation8 + $0x4b0] sm:$0xff] }
 0x285   : > { %2792 = vmatprep.subr.bf16.mxu1 %v2791_v35  ;;  %v1142_v35 = vld [vmem:[#allocation8 + $0x4f0] sm:$0xff] }
 0x286   : > { %v2821_v37 = vpack.c.bf16 %v1142_v35, %v1134_v33 }
 0x288   : > { %2794 = vmatpush1.bf16.msra.mxu1 %v2793_v39  ;;  %v1150_v39 = vld [vmem:[#allocation8 + $0x530] sm:$0xff] }
 0x289   : > { %2796 = vmatprep.subr.bf16.mxu1 %v2795_v40  ;;  %v1158_v40 = vld [vmem:[#allocation8 + $0x570] sm:$0xff] }
 0x28a   : > { %v2825_v43 = vpack.c.bf16 %v1158_v40, %v1150_v39  ;;  %v1665_v39 = vld [vmem:[#allocation9 + $0x210] sm:$0xff] }
 0x28c   : > { %2798 = vmatpush1.bf16.msra.mxu1 %v2797_v49  ;;  %v1166_v49 = vld [vmem:[#allocation8 + $0x5b0] sm:$0xff] }
 0x28d   : > { %2800 = vmatprep.subr.bf16.mxu1 %v2799_v50  ;;  %v1174_v50 = vld [vmem:[#allocation8 + $0x5f0] sm:$0xff] }
 0x28e   : > { %v2829_v54 = vpack.c.bf16 %v1174_v50, %v1166_v49 }
 0x290   : > { %2802 = vmatpush1.bf16.msra.mxu1 %v2801_v56  ;;  %v1182_v56 = vld [vmem:[#allocation8 + $0x630] sm:$0xff] }
 0x291   : > { %2804 = vmatprep.subr.bf16.mxu1 %v2803_v57  ;;  %v1190_v57 = vld [vmem:[#allocation8 + $0x670] sm:$0xff] }
 0x292   : > { %v2833_v61 = vpack.c.bf16 %v1190_v57, %v1182_v56  ;;  %v1674_v56 = vld [vmem:[#allocation9 + $0x258] sm:$0xff] }
 0x294   : > { %2806 = vmatpush1.bf16.msra.mxu1 %v2805_v63  ;;  %v1198_v63 = vld [vmem:[#allocation8 + $0x6b0] sm:$0xff] }
 0x295   : > { %2808 = vmatprep.subr.bf16.mxu1 %v2807_v0  ;;  %v1206_v0 = vld [vmem:[#allocation8 + $0x6f0] sm:$0xff] }
 0x296   : > { %v2837_v3 = vpack.c.bf16 %v1206_v0, %v1198_v63  ;;  %v1678_v63 = vld [vmem:[#allocation9 + $0x278] sm:$0xff] }
 0x298   : > { %2810 = vmatpush1.bf16.msra.mxu1 %v2809_v6  ;;  %v1214_v6 = vld [vmem:[#allocation8 + $0x730] sm:$0xff] }
 0x299   : > { %2812 = vmatprep.subr.bf16.mxu1 %v2811_v10  ;;  %v1222_v10 = vld [vmem:[#allocation8 + $0x770] sm:$0xff] }
 0x29a   : > { %v2841_v14 = vpack.c.bf16 %v1222_v10, %v1214_v6  ;;  %v1679_v10 = vld [vmem:[#allocation9 + $0x280] sm:$0xff] }
 0x29c   : > { %2814 = vmatpush1.bf16.msra.mxu1 %v2813_v17  ;;  %v1230_v17 = vld [vmem:[#allocation8 + $0x7b0] sm:$0xff] }
 0x29d   : > { %2816 = vmatprep.subr.bf16.mxu1 %v2815_v21  ;;  %v1238_v21 = vld [vmem:[#allocation8 + $0x7f0] sm:$0xff] }
 0x29e   : > { %v2845_v22 = vpack.c.bf16 %v1238_v21, %v1230_v17  ;;  %v1683_v21 = vld [vmem:[#allocation9 + $0x2a0] sm:$0xff] }
 0x2a0   : > { %2818 = vmatpush1.bf16.msra.mxu1 %v2817_v30 }
 0x2a1   : > { %2820 = vmatprep.subr.bf16.mxu1 %v2819_v31  ;;  %v3795_v31 = vstv %s2326_s16  ;;  %s2184_s16 = scalar_lea.sflag [#allocation4], %s3683_s15 }
 0x2a4   : > { %2822 = vmatpush1.bf16.msra.mxu1 %v2821_v37 }
 0x2a5   : > { %2824 = vmatprep.subr.bf16.mxu1 %v2823_v38  ;;  %v1663_v38 = vld [vmem:[#allocation9 + $0x200] sm:$0xff] }
 0x2a6   : > { %v2913_v49 = vpack.c.bf16 %v1665_v39, %v1663_v38 }
 0x2a8   : > { %2826 = vmatpush1.bf16.msra.mxu1 %v2825_v43 }
 0x2a9   : > { %2828 = vmatprep.subr.bf16.mxu1 %v2827_v45 }
 0x2ac   : > { %2830 = vmatpush1.bf16.msra.mxu1 %v2829_v54  ;;  %v1669_v54 = vld [vmem:[#allocation9 + $0x230] sm:$0xff] }
 0x2ad   : > { %2832 = vmatprep.subr.bf16.mxu1 %v2831_v55  ;;  %v1672_v55 = vld [vmem:[#allocation9 + $0x248] sm:$0xff]  ;;  %v2917_v57 = vpack.c.bf16 %v1669_v54, %v1667_v53  ;;  %v1702_v54 = vld [vmem:[#allocation9 + $0x338] sm:$0xff] }
 0x2ae   : > { %v2919_v58 = vpack.c.bf16 %v1674_v56, %v1672_v55  ;;  %v1700_v53 = vld [vmem:[#allocation9 + $0x328] sm:$0xff] }
 0x2af   : > { %v2947_v56 = vpack.c.bf16 %v1702_v54, %v1700_v53  ;;  %v1725_v53 = vld [vmem:[#allocation9 + $0x3f0] sm:$0xff] }
 0x2b0   : > { %2834 = vmatpush1.bf16.msra.mxu1 %v2833_v61  ;;  %v1673_v61 = vld [vmem:[#allocation9 + $0x250] sm:$0xff] }
 0x2b1   : > { %2836 = vmatprep.subr.bf16.mxu1 %v2835_v62  ;;  %v1676_v62 = vld [vmem:[#allocation9 + $0x268] sm:$0xff] }
 0x2b2   : > { %v2923_v0 = vpack.c.bf16 %v1678_v63, %v1676_v62 }
 0x2b4   : > { %2838 = vmatpush1.bf16.msra.mxu1 %v2837_v3  ;;  %v1682_v3 = vld [vmem:[#allocation9 + $0x298] sm:$0xff] }
 0x2b5   : > { %2840 = vmatprep.subr.bf16.mxu1 %v2839_v4  ;;  %v2927_v6 = vpack.c.bf16 %v1682_v3, %v1680_v2 }
 0x2b8   : > { %2842 = vmatpush1.bf16.msra.mxu1 %v2841_v14  ;;  %v1686_v14 = vld [vmem:[#allocation9 + $0x2b8] sm:$0xff] }
 0x2b9   : > { %2844 = vmatprep.subr.bf16.mxu1 %v2843_v16  ;;  %v2929_v16 = vpack.c.bf16 %v1681_v11, %v1679_v10  ;;  %v2931_v17 = vpack.c.bf16 %v1686_v14, %v1684_v12  ;;  %v1712_v10 = vld [vmem:[#allocation9 + $0x388] sm:$0xff]  ;;  %v1714_v11 = vld [vmem:[#allocation9 + $0x398] sm:$0xff] }
 0x2ba   : > { %v2959_v14 = vpack.c.bf16 %v1714_v11, %v1712_v10  ;;  %v1731_v10 = vld [vmem:[#allocation9 + $0x420] sm:$0xff]  ;;  %v1733_v11 = vld [vmem:[#allocation9 + $0x430] sm:$0xff] }
 0x2bc   : > { %2846 = vmatpush1.bf16.msra.mxu1 %v2845_v22  ;;  %v1685_v22 = vld [vmem:[#allocation9 + $0x2b0] sm:$0xff] }
 0x2bf   : > { %1560 = vmatmul.mubr.f32.vlgmr.msra.gmra.mrb[8].mxu1 %v3776_v52 }
 0x2d2   : > { %v1348_v30 = vpop.f32.mrb[2].mxu1 }
 0x2d3   : > { %v1349_v33 = vadd.f32 %v1348_v30, %v1245_v26  ;;  %v1350_v35 = vpop.f32.mrb[3].mxu1  ;;  %v1688_v26 = vld [vmem:[#allocation9 + $0x2c8] sm:$0xff]  ;;  %v2933_v30 = vpack.c.bf16 %v1685_v22, %v1683_v21  ;;  %v1718_v22 = vld [vmem:[#allocation9 + $0x3b8] sm:$0xff] }
 0x2d4   : > { %v1351_v36 = vadd.f32 %v1350_v35, %v1249_v27  ;;  %v1690_v27 = vld [vmem:[#allocation9 + $0x2d8] sm:$0xff]  ;;  %v1687_v35 = vld [vmem:[#allocation9 + $0x2c0] sm:$0xff]  ;;  %v1716_v21 = vld [vmem:[#allocation9 + $0x3a8] sm:$0xff] }
 0x2d5   : > { %vm1566_vm2 = vcmp.ge.f32.partialorder %v1349_v33, 0.0  ;;  %v1575_v20 = vmul.f32 %v3795_v31, %v1349_v33 }
 0x2d6   : > { %vm1567_vm3 = vcmp.ge.f32.partialorder %v1351_v36, 0.0  ;;  %v1576_v37 = vmul.f32 %v3795_v31, %v1351_v36 }
 0x2d7   : > { %v1583_v40 = vsel %vm1566_vm2, %v1349_v33, %v1575_v20  ;;  %v2935_v33 = vpack.c.bf16 %v1690_v27, %v1688_v26  ;;  %v1692_v20 = vld [vmem:[#allocation9 + $0x2e8] sm:$0xff]  ;;  %v2963_v27 = vpack.c.bf16 %v1718_v22, %v1716_v21  ;;  %v1735_v21 = vld [vmem:[#allocation9 + $0x440] sm:$0xff]  ;;  %v1737_v22 = vld [vmem:[#allocation9 + $0x450] sm:$0xff] }
 0x2d8   : > { %v1584_v43 = vsel %vm1567_vm3, %v1351_v36, %v1576_v37  ;;  %v1591_v50 = vsub.f32 %v1583_v40, %v3733_v29  ;;  %v1675_v29 = vld [vmem:[#allocation9 + $0x260] sm:$0xff]  ;;  %v1689_v36 = vld [vmem:[#allocation9 + $0x2d0] sm:$0xff]  ;;  %v1694_v37 = vld [vmem:[#allocation9 + $0x2f8] sm:$0xff] }
 0x2d9   : > { %v1592_v45 = vsub.f32 %v1584_v43, %v3717_v23  ;;  %v2921_v23 = vpack.c.bf16 %v1673_v61, %v1671_v60  ;;  %v2925_v4 = vpack.c.bf16 %v1677_v1, %v1675_v29  ;;  %v2937_v38 = vpack.c.bf16 %v1689_v36, %v1687_v35  ;;  %v1691_v40 = vld [vmem:[#allocation9 + $0x2e0] sm:$0xff]  ;;  %v1698_v43 = vld [vmem:[#allocation9 + $0x318] sm:$0xff]  ;;  %v1704_v60 = vld [vmem:[#allocation9 + $0x348] sm:$0xff] }
 0x2da   : > { %v2939_v39 = vpack.c.bf16 %v1694_v37, %v1692_v20  ;;  %v1706_v61 = vld [vmem:[#allocation9 + $0x358] sm:$0xff]  ;;  %v1708_v29 = vld [vmem:[#allocation9 + $0x368] sm:$0xff] }
 0x2db   : > { %1931 = vmatprep.mubr.f32.mxu0 %v1592_v45  ;;  %v2941_v45 = vpack.c.bf16 %v1693_v41, %v1691_v40  ;;  %v2951_v63 = vpack.c.bf16 %v1706_v61, %v1704_v60  ;;  %v1710_v1 = vld [vmem:[#allocation9 + $0x378] sm:$0xff]  ;;  %v1720_v35 = vld [vmem:[#allocation9 + $0x3c8] sm:$0xff]  ;;  %v1253_v40 = vrot.slane %v3789_v25, %v652_v5 }
 0x2dc   : > { %1932 = vmatmul.mubr.f32.vlgmr.msra.gmra.mrb[2].mxu0 %v1591_v50  ;;  %v1695_v50 = vld [vmem:[#allocation9 + $0x300] sm:$0xff]  ;;  %v2955_v3 = vpack.c.bf16 %v1710_v1, %v1708_v29  ;;  %v1722_v36 = vld [vmem:[#allocation9 + $0x3d8] sm:$0xff]  ;;  %v1724_v41 = vld [vmem:[#allocation9 + $0x3e8] sm:$0xff] }
 0x2dd   : > { %2914 = vmatpush1.bf16.msra.mxu0 %v2913_v49  ;;  %v2943_v49 = vpack.c.bf16 %v1698_v43, %v1696_v42  ;;  %v2967_v37 = vpack.c.bf16 %v1722_v36, %v1720_v35  ;;  %v1726_v42 = vld [vmem:[#allocation9 + $0x3f8] sm:$0xff]  ;;  %v1257_v43 = vrot.slane %v3789_v25, %v656_v28  ;;  %v1744_v35 = vld [vmem:[#allocation9 + $0x488] sm:$0xff] }
 0x2de   : > { %2916 = vmatprep.subr.bf16.mxu0 %v2915_v51  ;;  %v1697_v51 = vld [vmem:[#allocation9 + $0x310] sm:$0xff]  ;;  %v1734_v29 = vld [vmem:[#allocation9 + $0x438] sm:$0xff] }
 0x2df   : > { %v2945_v55 = vpack.c.bf16 %v1697_v51, %v1695_v50  ;;  %v2971_v50 = vpack.c.bf16 %v1726_v42, %v1724_v41  ;;  %v1723_v51 = vld [vmem:[#allocation9 + $0x3e0] sm:$0xff]  ;;  %v1746_v36 = vld [vmem:[#allocation9 + $0x498] sm:$0xff] }
 0x2e0   : > { %v2973_v60 = vpack.c.bf16 %v1725_v53, %v1723_v51  ;;  %v1750_v41 = vld [vmem:[#allocation9 + $0x4b8] sm:$0xff] }
 0x2e1   : > { %2918 = vmatpush1.bf16.msra.mxu0 %v2917_v57  ;;  %v1699_v57 = vld [vmem:[#allocation9 + $0x320] sm:$0xff]  ;;  %v1754_v51 = vld [vmem:[#allocation9 + $0x4d8] sm:$0xff] }
 0x2e2   : > { %2920 = vmatprep.subr.bf16.mxu0 %v2919_v58  ;;  %v1701_v58 = vld [vmem:[#allocation9 + $0x330] sm:$0xff] }
 0x2e3   : > { %v2949_v62 = vpack.c.bf16 %v1701_v58, %v1699_v57  ;;  %v1730_v57 = vld [vmem:[#allocation9 + $0x418] sm:$0xff] }
 0x2e5   : > { %2922 = vmatpush1.bf16.msra.mxu0 %v2921_v23  ;;  %v1703_v23 = vld [vmem:[#allocation9 + $0x340] sm:$0xff] }
 0x2e6   : > { %2924 = vmatprep.subr.bf16.mxu0 %v2923_v0  ;;  %v1705_v0 = vld [vmem:[#allocation9 + $0x350] sm:$0xff] }
 0x2e7   : > { %v2953_v2 = vpack.c.bf16 %v1705_v0, %v1703_v23  ;;  %v1732_v0 = vld [vmem:[#allocation9 + $0x428] sm:$0xff] }
 0x2e9   : > { %2926 = vmatpush1.bf16.msra.mxu0 %v2925_v4  ;;  %v1707_v4 = vld [vmem:[#allocation9 + $0x360] sm:$0xff] }
 0x2ea   : > { %2928 = vmatprep.subr.bf16.mxu0 %v2927_v6  ;;  %v1709_v6 = vld [vmem:[#allocation9 + $0x370] sm:$0xff] }
 0x2eb   : > { %v2957_v12 = vpack.c.bf16 %v1709_v6, %v1707_v4  ;;  %v2979_v6 = vpack.c.bf16 %v1734_v29, %v1732_v0  ;;  %v1759_v29 = vld [vmem:[#allocation9 + $0x500] sm:$0xff] }
 0x2ed   : > { %2930 = vmatpush1.bf16.msra.mxu0 %v2929_v16  ;;  %v1711_v16 = vld [vmem:[#allocation9 + $0x380] sm:$0xff] }
 0x2ee   : > { %2932 = vmatprep.subr.bf16.mxu0 %v2931_v17  ;;  %v1713_v17 = vld [vmem:[#allocation9 + $0x390] sm:$0xff] }
 0x2ef   : > { %v2961_v26 = vpack.c.bf16 %v1713_v17, %v1711_v16  ;;  %v2981_v16 = vpack.c.bf16 %v1733_v11, %v1731_v10  ;;  %v1763_v10 = vld [vmem:[#allocation9 + $0x520] sm:$0xff]  ;;  %v1765_v11 = vld [vmem:[#allocation9 + $0x530] sm:$0xff] }
 0x2f1   : > { %2934 = vmatpush1.bf16.msra.mxu0 %v2933_v30  ;;  %v1715_v30 = vld [vmem:[#allocation9 + $0x3a0] sm:$0xff] }
 0x2f2   : > { %2936 = vmatprep.subr.bf16.mxu0 %v2935_v33  ;;  %v1717_v33 = vld [vmem:[#allocation9 + $0x3b0] sm:$0xff] }
 0x2f3   : > { %v2965_v20 = vpack.c.bf16 %v1717_v33, %v1715_v30  ;;  %v1739_v30 = vld [vmem:[#allocation9 + $0x460] sm:$0xff]  ;;  %v1741_v33 = vld [vmem:[#allocation9 + $0x470] sm:$0xff] }
 0x2f5   : > { %2938 = vmatpush1.bf16.msra.mxu0 %v2937_v38  ;;  %v1719_v38 = vld [vmem:[#allocation9 + $0x3c0] sm:$0xff] }
 0x2f6   : > { %2940 = vmatprep.subr.bf16.mxu0 %v2939_v39  ;;  %v1721_v39 = vld [vmem:[#allocation9 + $0x3d0] sm:$0xff] }
 0x2f9   : > { %2942 = vmatpush1.bf16.msra.mxu0 %v2941_v45  ;;  %v2969_v45 = vpack.c.bf16 %v1721_v39, %v1719_v38  ;;  %v1743_v38 = vld [vmem:[#allocation9 + $0x480] sm:$0xff]  ;;  %v1745_v39 = vld [vmem:[#allocation9 + $0x490] sm:$0xff] }
 0x2fa   : > { %2944 = vmatprep.subr.bf16.mxu0 %v2943_v49  ;;  %v2993_v42 = vpack.c.bf16 %v1745_v39, %v1743_v38  ;;  %v1775_v38 = vld [vmem:[#allocation9 + $0x580] sm:$0xff]  ;;  %v1777_v39 = vld [vmem:[#allocation9 + $0x590] sm:$0xff] }
 0x2fd   : > { %2946 = vmatpush1.bf16.msra.mxu0 %v2945_v55 }
 0x2fe   : > { %2948 = vmatprep.subr.bf16.mxu0 %v2947_v56  ;;  %v1728_v56 = vld [vmem:[#allocation9 + $0x408] sm:$0xff] }
 0x2ff   : > { %v2975_v61 = vpack.c.bf16 %v1730_v57, %v1728_v56  ;;  %v1753_v56 = vld [vmem:[#allocation9 + $0x4d0] sm:$0xff]  ;;  %v1756_v57 = vld [vmem:[#allocation9 + $0x4e8] sm:$0xff] }
 0x301   : > { %2950 = vmatpush1.bf16.msra.mxu0 %v2949_v62  ;;  %v1727_v62 = vld [vmem:[#allocation9 + $0x400] sm:$0xff] }
 0x302   : > { %2952 = vmatprep.subr.bf16.mxu0 %v2951_v63  ;;  %v1729_v63 = vld [vmem:[#allocation9 + $0x410] sm:$0xff] }
 0x305   : > { %2954 = vmatpush1.bf16.msra.mxu0 %v2953_v2 }
 0x306   : > { %2956 = vmatprep.subr.bf16.mxu0 %v2955_v3  ;;  %v2977_v3 = vpack.c.bf16 %v1729_v63, %v1727_v62  ;;  %v1760_v62 = vld [vmem:[#allocation9 + $0x508] sm:$0xff]  ;;  %v1762_v63 = vld [vmem:[#allocation9 + $0x518] sm:$0xff] }
 0x307   : > { %v3007_v0 = vpack.c.bf16 %v1762_v63, %v1760_v62  ;;  %v1787_v63 = vld [vmem:[#allocation9 + $0x5e0] sm:$0xff] }
 0x309   : > { %2958 = vmatpush1.bf16.msra.mxu0 %v2957_v12  ;;  %v1736_v12 = vld [vmem:[#allocation9 + $0x448] sm:$0xff] }
 0x30a   : > { %2960 = vmatprep.subr.bf16.mxu0 %v2959_v14  ;;  %v1738_v14 = vld [vmem:[#allocation9 + $0x458] sm:$0xff] }
 0x30b   : > { %v2983_v17 = vpack.c.bf16 %v1738_v14, %v1736_v12  ;;  %v1768_v12 = vld [vmem:[#allocation9 + $0x548] sm:$0xff]  ;;  %v1770_v14 = vld [vmem:[#allocation9 + $0x558] sm:$0xff] }
 0x30d   : > { %2962 = vmatpush1.bf16.msra.mxu0 %v2961_v26  ;;  %v1740_v26 = vld [vmem:[#allocation9 + $0x468] sm:$0xff] }
 0x30e   : > { %2964 = vmatprep.subr.bf16.mxu0 %v2963_v27  ;;  %v1742_v27 = vld [vmem:[#allocation9 + $0x478] sm:$0xff] }
 0x311   : > { %2966 = vmatpush1.bf16.msra.mxu0 %v2965_v20  ;;  %v2989_v20 = vpack.c.bf16 %v1741_v33, %v1739_v30  ;;  %v1771_v30 = vld [vmem:[#allocation9 + $0x560] sm:$0xff]  ;;  %v1773_v33 = vld [vmem:[#allocation9 + $0x570] sm:$0xff] }
 0x312   : > { %v1419_v49 = vpop.f32.mrb[4].mxu1  ;;  %2968 = vmatprep.subr.bf16.mxu0 %v2967_v37  ;;  %v2991_v37 = vpack.c.bf16 %v1746_v36, %v1744_v35  ;;  %v1776_v35 = vld [vmem:[#allocation9 + $0x588] sm:$0xff]  ;;  %v1778_v36 = vld [vmem:[#allocation9 + $0x598] sm:$0xff] }
 0x313   : > { %v1420_v54 = vadd.f32 %v1419_v49, %v1253_v40  ;;  %v1421_v55 = vpop.f32.mrb[5].mxu1  ;;  %v1748_v40 = vld [vmem:[#allocation9 + $0x4a8] sm:$0xff]  ;;  %v1749_v49 = vld [vmem:[#allocation9 + $0x4b0] sm:$0xff] }
 0x314   : > { %v1422_v58 = vadd.f32 %v1421_v55, %v1257_v43  ;;  %v2995_v43 = vpack.c.bf16 %v1750_v41, %v1748_v40  ;;  %v1751_v55 = vld [vmem:[#allocation9 + $0x4c0] sm:$0xff]  ;;  %v1780_v40 = vld [vmem:[#allocation9 + $0x5a8] sm:$0xff]  ;;  %v1782_v41 = vld [vmem:[#allocation9 + $0x5b8] sm:$0xff] }
 0x315   : > { %vm1568_vm4 = vcmp.ge.f32.partialorder %v1420_v54, 0.0  ;;  %v1577_v5 = vmul.f32 %v3795_v31, %v1420_v54  ;;  %2970 = vmatpush1.bf16.msra.mxu0 %v2969_v45  ;;  %v1747_v45 = vld [vmem:[#allocation9 + $0x4a0] sm:$0xff] }
 0x316   : > { %vm1569_vm5 = vcmp.ge.f32.partialorder %v1422_v58, 0.0  ;;  %v1578_v28 = vmul.f32 %v3795_v31, %v1422_v58  ;;  %2972 = vmatprep.subr.bf16.mxu0 %v2971_v50  ;;  %v1752_v50 = vld [vmem:[#allocation9 + $0x4c8] sm:$0xff]  ;;  %v2997_v53 = vpack.c.bf16 %v1749_v49, %v1747_v45  ;;  %v1779_v45 = vld [vmem:[#allocation9 + $0x5a0] sm:$0xff]  ;;  %v1781_v49 = vld [vmem:[#allocation9 + $0x5b0] sm:$0xff] }
 0x317   : > { %v1585_v23 = vsel %vm1568_vm4, %v1420_v54, %v1577_v5  ;;  %v2999_v54 = vpack.c.bf16 %v1754_v51, %v1752_v50  ;;  %v3001_v5 = vpack.c.bf16 %v1753_v56, %v1751_v55  ;;  %v1784_v50 = vld [vmem:[#allocation9 + $0x5c8] sm:$0xff]  ;;  %v1786_v51 = vld [vmem:[#allocation9 + $0x5d8] sm:$0xff]  ;;  %v1783_v55 = vld [vmem:[#allocation9 + $0x5c0] sm:$0xff] }
 0x318   : > { %v1586_v1 = vsel %vm1569_vm5, %v1422_v58, %v1578_v28  ;;  %v1593_v4 = vsub.f32 %v1585_v23, %v3760_v18  ;;  %v2987_v18 = vpack.c.bf16 %v1742_v27, %v1740_v26  ;;  %v1758_v58 = vld [vmem:[#allocation9 + $0x4f8] sm:$0xff]  ;;  %v1755_v28 = vld [vmem:[#allocation9 + $0x4e0] sm:$0xff]  ;;  %v1772_v26 = vld [vmem:[#allocation9 + $0x568] sm:$0xff] }
 0x319   : > { %2974 = vmatpush1.bf16.msra.mxu0 %v2973_v60  ;;  %v1594_v2 = vsub.f32 %v1586_v1, %v3744_v44  ;;  %v2985_v44 = vpack.c.bf16 %v1737_v22, %v1735_v21  ;;  %v3003_v60 = vpack.c.bf16 %v1758_v58, %v1756_v57  ;;  %v1761_v1 = vld [vmem:[#allocation9 + $0x510] sm:$0xff]  ;;  %v1767_v21 = vld [vmem:[#allocation9 + $0x540] sm:$0xff]  ;;  %v1774_v27 = vld [vmem:[#allocation9 + $0x578] sm:$0xff]  ;;  %v1261_v57 = vrot.slane %v3789_v25, %v660_v15 }
 0x31a   : > { %2976 = vmatprep.subr.bf16.mxu0 %v2975_v61  ;;  %v1757_v61 = vld [vmem:[#allocation9 + $0x4f0] sm:$0xff]  ;;  %v1788_v58 = vld [vmem:[#allocation9 + $0x5e8] sm:$0xff] }
 0x31b   : > { %2002 = vmatprep.mubr.f32.mxu0 %v1594_v2  ;;  %v3005_v23 = vpack.c.bf16 %v1757_v61, %v1755_v28  ;;  %v1764_v2 = vld [vmem:[#allocation9 + $0x528] sm:$0xff]  ;;  %v1769_v22 = vld [vmem:[#allocation9 + $0x550] sm:$0xff] }
 0x31c   : > { %2003 = vmatmul.mubr.f32.vlgmr.msra.gmra.mrb[2].mxu0 %v1593_v4  ;;  %v3009_v4 = vpack.c.bf16 %v1761_v1, %v1759_v29  ;;  %v1785_v56 = vld [vmem:[#allocation9 + $0x5d0] sm:$0xff]  ;;  %v1792_v1 = vld [vmem:[#allocation9 + $0x608] sm:$0xff] }
 0x31d   : > { %2978 = vmatpush1.bf16.msra.mxu0 %v2977_v3  ;;  %v1766_v3 = vld [vmem:[#allocation9 + $0x538] sm:$0xff]  ;;  %v3033_v28 = vpack.c.bf16 %v1785_v56, %v1783_v55 }
 0x31e   : > { %2980 = vmatprep.subr.bf16.mxu0 %v2979_v6  ;;  %v3011_v6 = vpack.c.bf16 %v1766_v3, %v1764_v2  ;;  %v1794_v2 = vld [vmem:[#allocation9 + $0x618] sm:$0xff] }
 0x321   : > { %2982 = vmatpush1.bf16.msra.mxu0 %v2981_v16  ;;  %v3013_v16 = vpack.c.bf16 %v1765_v11, %v1763_v10  ;;  %v1791_v10 = vld [vmem:[#allocation9 + $0x600] sm:$0xff]  ;;  %v1793_v11 = vld [vmem:[#allocation9 + $0x610] sm:$0xff] }
 0x322   : > { %2984 = vmatprep.subr.bf16.mxu0 %v2983_v17  ;;  %v3015_v17 = vpack.c.bf16 %v1770_v14, %v1768_v12  ;;  %v1796_v14 = vld [vmem:[#allocation9 + $0x628] sm:$0xff] }
 0x325   : > { %2986 = vmatpush1.bf16.msra.mxu0 %v2985_v44  ;;  %v3017_v44 = vpack.c.bf16 %v1769_v22, %v1767_v21  ;;  %v3041_v22 = vpack.c.bf16 %v1793_v11, %v1791_v10  ;;  %v1823_v10 = vld [vmem:[#allocation9 + $0x700] sm:$0xff]  ;;  %v1825_v11 = vld [vmem:[#allocation9 + $0x710] sm:$0xff] }
 0x326   : > { %2988 = vmatprep.subr.bf16.mxu0 %v2987_v18  ;;  %v3019_v18 = vpack.c.bf16 %v1774_v27, %v1772_v26 }
 0x329   : > { %2990 = vmatpush1.bf16.msra.mxu0 %v2989_v20  ;;  %v3021_v20 = vpack.c.bf16 %v1773_v33, %v1771_v30  ;;  %v1800_v30 = vld [vmem:[#allocation9 + $0x648] sm:$0xff]  ;;  %v1802_v33 = vld [vmem:[#allocation9 + $0x658] sm:$0xff] }
 0x32a   : > { %2992 = vmatprep.subr.bf16.mxu0 %v2991_v37  ;;  %v3023_v37 = vpack.c.bf16 %v1778_v36, %v1776_v35  ;;  %v3047_v36 = vpack.c.bf16 %v1802_v33, %v1800_v30  ;;  %v1831_v30 = vld [vmem:[#allocation9 + $0x740] sm:$0xff]  ;;  %v1833_v33 = vld [vmem:[#allocation9 + $0x750] sm:$0xff] }
 0x32d   : > { %2994 = vmatpush1.bf16.msra.mxu0 %v2993_v42  ;;  %v3025_v42 = vpack.c.bf16 %v1777_v39, %v1775_v38  ;;  %v1804_v38 = vld [vmem:[#allocation9 + $0x668] sm:$0xff]  ;;  %v1806_v39 = vld [vmem:[#allocation9 + $0x678] sm:$0xff] }
 0x32e   : > { %2996 = vmatprep.subr.bf16.mxu0 %v2995_v43  ;;  %v3027_v43 = vpack.c.bf16 %v1782_v41, %v1780_v40  ;;  %v1803_v40 = vld [vmem:[#allocation9 + $0x660] sm:$0xff]  ;;  %v1805_v41 = vld [vmem:[#allocation9 + $0x670] sm:$0xff] }
 0x331   : > { %2998 = vmatpush1.bf16.msra.mxu0 %v2997_v53  ;;  %v3029_v53 = vpack.c.bf16 %v1781_v49, %v1779_v45  ;;  %v3053_v45 = vpack.c.bf16 %v1805_v41, %v1803_v40 }
 0x332   : > { %3000 = vmatprep.subr.bf16.mxu0 %v2999_v54  ;;  %v3031_v54 = vpack.c.bf16 %v1786_v51, %v1784_v50  ;;  %v1807_v50 = vld [vmem:[#allocation9 + $0x680] sm:$0xff]  ;;  %v1809_v51 = vld [vmem:[#allocation9 + $0x690] sm:$0xff] }
 0x333   : > { %v3057_v55 = vpack.c.bf16 %v1809_v51, %v1807_v50 }
 0x335   : > { %3002 = vmatpush1.bf16.msra.mxu0 %v3001_v5  ;;  %v1790_v5 = vld [vmem:[#allocation9 + $0x5f8] sm:$0xff] }
 0x336   : > { %3004 = vmatprep.subr.bf16.mxu0 %v3003_v60  ;;  %v1265_v60 = vrot.slane %v3789_v25, %v664_v9  ;;  %v3035_v62 = vpack.c.bf16 %v1790_v5, %v1788_v58  ;;  %v1813_v58 = vld [vmem:[#allocation9 + $0x6b0] sm:$0xff]  ;;  %v1816_v5 = vld [vmem:[#allocation9 + $0x6c8] sm:$0xff] }
 0x339   : > { %3006 = vmatpush1.bf16.msra.mxu0 %v3005_v23  ;;  %v1789_v23 = vld [vmem:[#allocation9 + $0x5f0] sm:$0xff] }
 0x33a   : > { %3008 = vmatprep.subr.bf16.mxu0 %v3007_v0 }
 0x33d   : > { %3010 = vmatpush1.bf16.msra.mxu0 %v3009_v4  ;;  %v3037_v4 = vpack.c.bf16 %v1789_v23, %v1787_v63  ;;  %v1817_v63 = vld [vmem:[#allocation9 + $0x6d0] sm:$0xff]  ;;  %v1820_v23 = vld [vmem:[#allocation9 + $0x6e8] sm:$0xff] }
 0x33e   : > { %3012 = vmatprep.subr.bf16.mxu0 %v3011_v6  ;;  %v3039_v6 = vpack.c.bf16 %v1794_v2, %v1792_v1  ;;  %v1819_v2 = vld [vmem:[#allocation9 + $0x6e0] sm:$0xff] }
 0x341   : > { %3014 = vmatpush1.bf16.msra.mxu0 %v3013_v16  ;;  %v1798_v16 = vld [vmem:[#allocation9 + $0x638] sm:$0xff] }
 0x342   : > { %3016 = vmatprep.subr.bf16.mxu0 %v3015_v17  ;;  %v3043_v27 = vpack.c.bf16 %v1798_v16, %v1796_v14  ;;  %v1830_v14 = vld [vmem:[#allocation9 + $0x738] sm:$0xff]  ;;  %v3073_v16 = vpack.c.bf16 %v1825_v11, %v1823_v10 }
 0x345   : > { %3018 = vmatpush1.bf16.msra.mxu0 %v3017_v44  ;;  %v1795_v44 = vld [vmem:[#allocation9 + $0x620] sm:$0xff] }
 0x346   : > { %3020 = vmatprep.subr.bf16.mxu0 %v3019_v18  ;;  %v1797_v18 = vld [vmem:[#allocation9 + $0x630] sm:$0xff] }
 0x347   : > { %v3045_v35 = vpack.c.bf16 %v1797_v18, %v1795_v44 }
 0x349   : > { %3022 = vmatpush1.bf16.msra.mxu0 %v3021_v20  ;;  %v1799_v20 = vld [vmem:[#allocation9 + $0x640] sm:$0xff] }
 0x34a   : > { %3024 = vmatprep.subr.bf16.mxu0 %v3023_v37  ;;  %v1801_v37 = vld [vmem:[#allocation9 + $0x650] sm:$0xff] }
 0x34d   : > { %3026 = vmatpush1.bf16.msra.mxu0 %v3025_v42  ;;  %v1808_v42 = vld [vmem:[#allocation9 + $0x688] sm:$0xff] }
 0x34e   : > { %3028 = vmatprep.subr.bf16.mxu0 %v3027_v43  ;;  %v1810_v43 = vld [vmem:[#allocation9 + $0x698] sm:$0xff] }
 0x34f   : > { %v3055_v49 = vpack.c.bf16 %v1810_v43, %v1808_v42  ;;  %v1839_v42 = vld [vmem:[#allocation9 + $0x780] sm:$0xff]  ;;  %v1841_v43 = vld [vmem:[#allocation9 + $0x790] sm:$0xff] }
 0x350   : > { %v3089_v50 = vpack.c.bf16 %v1841_v43, %v1839_v42 }
 0x351   : > { %3030 = vmatpush1.bf16.msra.mxu0 %v3029_v53  ;;  %v1812_v53 = vld [vmem:[#allocation9 + $0x6a8] sm:$0xff] }
 0x352   : > { %v1490_v61 = vpop.f32.mrb[6].mxu1  ;;  %3032 = vmatprep.subr.bf16.mxu0 %v3031_v54  ;;  %v1814_v54 = vld [vmem:[#allocation9 + $0x6b8] sm:$0xff] }
 0x353   : > { %v1491_v0 = vadd.f32 %v1490_v61, %v1261_v57  ;;  %v1492_v29 = vpop.f32.mrb[7].mxu1  ;;  %v3059_v56 = vpack.c.bf16 %v1814_v54, %v1812_v53  ;;  %v1811_v57 = vld [vmem:[#allocation9 + $0x6a0] sm:$0xff]  ;;  %v1845_v54 = vld [vmem:[#allocation9 + $0x7b0] sm:$0xff] }
 0x354   : > { %v1493_v3 = vadd.f32 %v1492_v29, %v1265_v60  ;;  %v1818_v60 = vld [vmem:[#allocation9 + $0x6d8] sm:$0xff]  ;;  %v1843_v53 = vld [vmem:[#allocation9 + $0x7a0] sm:$0xff] }
 0x355   : > { %vm1570_vm6 = vcmp.ge.f32.partialorder %v1491_v0, 0.0  ;;  %v1579_v15 = vmul.f32 %v3795_v31, %v1491_v0  ;;  %3034 = vmatpush1.bf16.msra.mxu0 %v3033_v28  ;;  %v3061_v28 = vpack.c.bf16 %v1813_v58, %v1811_v57  ;;  %v3063_v61 = vpack.c.bf16 %v1818_v60, %v1816_v5  ;;  %v1847_v5 = vld [vmem:[#allocation9 + $0x7c0] sm:$0xff]  ;;  %v1849_v60 = vld [vmem:[#allocation9 + $0x7d0] sm:$0xff] }
 0x356   : > { %vm1571_vm7 = vcmp.ge.f32.partialorder %v1493_v3, 0.0  ;;  %v1580_v9 = vmul.f32 %v3795_v31, %v1493_v3  ;;  %3036 = vmatprep.subr.bf16.mxu0 %v3035_v62  ;;  %v1815_v62 = vld [vmem:[#allocation9 + $0x6c0] sm:$0xff]  ;;  %v3093_v57 = vpack.c.bf16 %v1845_v54, %v1843_v53 }
 0x357   : > { %v1587_v12 = vsel %vm1570_vm6, %v1491_v0, %v1579_v15  ;;  %v1822_v0 = vld [vmem:[#allocation9 + $0x6f8] sm:$0xff]  ;;  %v3065_v29 = vpack.c.bf16 %v1817_v63, %v1815_v62  ;;  %v1824_v15 = vld [vmem:[#allocation9 + $0x708] sm:$0xff]  ;;  %v1273_v63 = vrot.slane %v3789_v25, %v672_v32 }
 0x358   : > { %v1588_v17 = vsel %vm1571_vm7, %v1493_v3, %v1580_v9  ;;  %v1595_v26 = vsub.f32 %v1587_v12, %v3739_v34  ;;  %v3051_v34 = vpack.c.bf16 %v1806_v39, %v1804_v38  ;;  %v3067_v1 = vpack.c.bf16 %v1822_v0, %v1820_v23  ;;  %v1821_v3 = vld [vmem:[#allocation9 + $0x6f0] sm:$0xff]  ;;  %v1828_v12 = vld [vmem:[#allocation9 + $0x728] sm:$0xff]  ;;  %v1835_v38 = vld [vmem:[#allocation9 + $0x760] sm:$0xff] }
 0x359   : > { %3038 = vmatpush1.bf16.msra.mxu0 %v3037_v4  ;;  %v1596_v21 = vsub.f32 %v1588_v17, %v3722_v24  ;;  %v3049_v24 = vpack.c.bf16 %v1801_v37, %v1799_v20  ;;  %v1826_v4 = vld [vmem:[#allocation9 + $0x718] sm:$0xff]  ;;  %v3069_v9 = vpack.c.bf16 %v1821_v3, %v1819_v2  ;;  %v3075_v17 = vpack.c.bf16 %v1830_v14, %v1828_v12  ;;  %v1837_v39 = vld [vmem:[#allocation9 + $0x770] sm:$0xff] }
 0x35a   : > { %3040 = vmatprep.subr.bf16.mxu0 %v3039_v6  ;;  %v3071_v6 = vpack.c.bf16 %v1826_v4, %v1824_v15  ;;  %v3081_v20 = vpack.c.bf16 %v1833_v33, %v1831_v30  ;;  %v3085_v40 = vpack.c.bf16 %v1837_v39, %v1835_v38  ;;  %v1854_v62 = vld [vmem:[#allocation9 + $0x7f8] sm:$0xff]  ;;  %v3097_v23 = vpack.c.bf16 %v1849_v60, %v1847_v5  ;;  %v1853_v2 = vld [vmem:[#allocation9 + $0x7f0] sm:$0xff] }
 0x35b   : > { %2073 = vmatprep.mubr.f32.mxu0 %v1596_v21  ;;  %v1827_v21 = vld [vmem:[#allocation9 + $0x720] sm:$0xff]  ;;  %v1855_v12 = vld [vmem:[%s3895_s6] sm:$0x3] }
 0x35c   : > { %2074 = vmatmul.mubr.f32.vlgmr.msra.gmra.mrb[2].mxu0 %v1595_v26  ;;  %v1832_v26 = vld [vmem:[#allocation9 + $0x748] sm:$0xff]  ;;  %v1860_v14 = vrot.slane %v1855_v12, %v3727_v13 }
 0x35d   : > { %3042 = vmatpush1.bf16.msra.mxu0 %v3041_v22  ;;  %v1829_v22 = vld [vmem:[#allocation9 + $0x730] sm:$0xff] }
 0x35e   : > { %3044 = vmatprep.subr.bf16.mxu0 %v3043_v27  ;;  %v1834_v27 = vld [vmem:[#allocation9 + $0x758] sm:$0xff]  ;;  %v3077_v44 = vpack.c.bf16 %v1829_v22, %v1827_v21  ;;  %v2153_v22 = vstv %s2327_s9  ;;  %s3346_s9 = scalar_lea.vmem %s3345_s17, 64 }
 0x35f   : > { %v3079_v18 = vpack.c.bf16 %v1834_v27, %v1832_v26  ;;  %p3348_p4 = scmp.lt.s32.totalorder %s3346_s9, %s3340_s18 }
 0x361   : > { %3046 = vmatpush1.bf16.msra.mxu0 %v3045_v35  ;;  %v1836_v35 = vld [vmem:[#allocation9 + $0x768] sm:$0xff]  ;;  %p3349_p10 = por %p3348_p4, %p3347_p9 }
 0x362   : > { %3048 = vmatprep.subr.bf16.mxu0 %v3047_v36  ;;  %v1838_v36 = vld [vmem:[#allocation9 + $0x778] sm:$0xff] }
 0x363   : > { %v3083_v37 = vpack.c.bf16 %v1838_v36, %v1836_v35  ;;  %p3350_p7 = pnand %p3349_p10, %p3343_p5 }
 0x365   : > { %3050 = vmatpush1.bf16.msra.mxu0 %v3049_v24  ;;  %v1840_v24 = vld [vmem:[#allocation9 + $0x788] sm:$0xff] }
 0x366   : > { %3052 = vmatprep.subr.bf16.mxu0 %v3051_v34  ;;  %v1842_v34 = vld [vmem:[#allocation9 + $0x798] sm:$0xff] }
 0x367   : > { %v3087_v41 = vpack.c.bf16 %v1842_v34, %v1840_v24 }
 0x369   : > { %3054 = vmatpush1.bf16.msra.mxu0 %v3053_v45  ;;  %v1844_v45 = vld [vmem:[#allocation9 + $0x7a8] sm:$0xff] }
 0x36a   : > { %3056 = vmatprep.subr.bf16.mxu0 %v3055_v49  ;;  %v1846_v49 = vld [vmem:[#allocation9 + $0x7b8] sm:$0xff] }
 0x36b   : > { %v3091_v51 = vpack.c.bf16 %v1846_v49, %v1844_v45 }
 0x36d   : > { %3058 = vmatpush1.bf16.msra.mxu0 %v3057_v55  ;;  %v1848_v55 = vld [vmem:[#allocation9 + $0x7c8] sm:$0xff] }
 0x36e   : > { %3060 = vmatprep.subr.bf16.mxu0 %v3059_v56  ;;  %v1850_v56 = vld [vmem:[#allocation9 + $0x7d8] sm:$0xff] }
 0x36f   : > { %v3095_v58 = vpack.c.bf16 %v1850_v56, %v1848_v55 }
 0x371   : > { %3062 = vmatpush1.bf16.msra.mxu0 %v3061_v28  ;;  %v1269_v28 = vrot.slane %v3789_v25, %v668_v7 }
 0x372   : > { %3064 = vmatprep.subr.bf16.mxu0 %v3063_v61  ;;  %v1852_v61 = vld [vmem:[#allocation9 + $0x7e8] sm:$0xff] }
 0x375   : > { %3066 = vmatpush1.bf16.msra.mxu0 %v3065_v29  ;;  %v3099_v29 = vpack.c.bf16 %v1854_v62, %v1852_v61 }
 0x376   : > { %3068 = vmatprep.subr.bf16.mxu0 %v3067_v1  ;;  %v1851_v1 = vld [vmem:[#allocation9 + $0x7e0] sm:$0xff] }
 0x377   : > { %v3101_v7 = vpack.c.bf16 %v1853_v2, %v1851_v1 }
 0x379   : > { %3070 = vmatpush1.bf16.msra.mxu0 %v3069_v9 }
 0x37a   : > { %3072 = vmatprep.subr.bf16.mxu0 %v3071_v6 }
 0x37d   : > { %3074 = vmatpush1.bf16.msra.mxu0 %v3073_v16  ;;  %v3429_v16 = vmov 1966171168  }
 0x37e   : > { %3076 = vmatprep.subr.bf16.mxu0 %v3075_v17  ;;  %v2164_v17 = vunpack.c.l.s4 %v3429_v16 }
 0x381   : > { %3078 = vmatpush1.bf16.msra.mxu0 %v3077_v44  ;;  %v2165_v44 = vunpack.c.0.s8 %v2164_v17 }
 0x382   : > { %3080 = vmatprep.subr.bf16.mxu0 %v3079_v18 }
 0x383   : > { %v2168_v35 = vsub.s32 %v2165_v44, %v3706_v59 }
 0x385   : > { %3082 = vmatpush1.bf16.msra.mxu0 %v3081_v20 }
 0x386   : > { %3084 = vmatprep.subr.bf16.mxu0 %v3083_v37 }
 0x389   : > { %3086 = vmatpush1.bf16.msra.mxu0 %v3085_v40 }
 0x38a   : > { %3088 = vmatprep.subr.bf16.mxu0 %v3087_v41 }
 0x38d   : > { %3090 = vmatpush1.bf16.msra.mxu0 %v3089_v50 }
 0x38e   : > { %3092 = vmatprep.subr.bf16.mxu0 %v3091_v51 }
 0x391   : > { %3094 = vmatpush1.bf16.msra.mxu0 %v3093_v57 }
 0x392   : > { %v1561_v0 = vpop.f32.mrb[8].mxu1  ;;  %3096 = vmatprep.subr.bf16.mxu0 %v3095_v58 }
 0x393   : > { %v1562_v3 = vadd.f32 %v1561_v0, %v1269_v28  ;;  %v1563_v15 = vpop.f32.mrb[9].mxu1 }
 0x394   : > { %v1564_v4 = vadd.f32 %v1563_v15, %v1273_v63 }
 0x395   : > { %vm1572_vm8 = vcmp.ge.f32.partialorder %v1562_v3, 0.0  ;;  %v1581_v9 = vmul.f32 %v3795_v31, %v1562_v3  ;;  %3098 = vmatpush1.bf16.msra.mxu0 %v3097_v23 }
 0x396   : > { %vm1573_vm9 = vcmp.ge.f32.partialorder %v1564_v4, 0.0  ;;  %v1582_v6 = vmul.f32 %v3795_v31, %v1564_v4  ;;  %3100 = vmatprep.subr.bf16.mxu0 %v3099_v29  ;;  %v1864_v31 = vrot.slane %v1855_v12, %v3709_v8 }
 0x397   : > { %v1589_v32 = vsel %vm1572_vm8, %v1562_v3, %v1581_v9 }
 0x398   : > { %v1590_v25 = vsel %vm1573_vm9, %v1564_v4, %v1582_v6  ;;  %v1597_v11 = vsub.f32 %v1589_v32, %v3765_v19 }
 0x399   : > { %3102 = vmatpush1.bf16.msra.mxu0 %v3101_v7  ;;  %v1598_v10 = vsub.f32 %v1590_v25, %v3750_v48 }
 0x39b   : > { %2144 = vmatprep.mubr.f32.mxu0 %v1598_v10 }
 0x39c   : > { %2145 = vmatmul.mubr.f32.vlgmr.msra.gmra.mrb[2].mxu0 %v1597_v11 }
 0x46f   : > { %v2146_v21 = vpop.f32.mrb[2].mxu0 }
 0x470   : > { %v3107_v48 = vadd.f32 %v2146_v21, %v1860_v14  ;;  %v2148_v26 = vpop.f32.mrb[3].mxu0 }
 0x471   : > { %v3108_v19 = vadd.f32 %v2148_v26, %v1864_v31 }
 0x472   : > { %vm2151_vm10 = vcmp.ge.f32.partialorder %v3107_v48, 0.0  ;;  %v2154_v27 = vmul.f32 %v3107_v48, %v2153_v22 }
 0x473   : > { %vm2152_vm11 = vcmp.ge.f32.partialorder %v3108_v19, 0.0  ;;  %v2155_v18 = vmul.f32 %v3108_v19, %v2153_v22 }
 0x474   : > { %v2156_v30 = vsel %vm2151_vm10, %v3107_v48, %v2154_v27 }
 0x475   : > { %v2158_v13 = vadd.f32 %v2156_v30, %v3776_v52  ;;  %v2157_v33 = vsel %vm2152_vm11, %v3108_v19, %v2155_v18 }
 0x476   : > { %v2159_v8 = vadd.f32 %v2157_v33, %v3774_v47 }
 0x478   : > { %v2162_v36 = vcombine.low %v2158_v13, %v2159_v8 }
 0x47a   : > { %v2169_v20 = vrot.slane %v2162_v36, %v2168_v35 }
 0x47c   : > { %v2176_v37 = vrot.slane %v2169_v20, %v2168_v35 }
 0x47e   : > { %2182 = vst.msk [vmem:[%s379_s10] sm:$0x3] %vm2180_vm12, %v2176_v37 }
 0x47f   : > { %3353 = shalt.err (!%p3350_p7)
}
 0x480   : > { %s3354_s15 = scalar_lea.hbm %s3845_s1, 32  ;;  %s3358_s8 = scalar_lea.hbm %s3925_s22, 64 }
 0x481   : > { %p3355_p0 = scmp.ne.s32.totalorder %s3845_s1, %s3354_s15  ;;  %p3359_p8 = scmp.lt.u32.totalorder %s3845_s1, %s3925_s22 }
 0x482   : > { %p3360_p11 = scmp.lt.u32.totalorder %s3358_s8, %s3354_s15  ;;  %p3362_p6 = scmp.lt.u32.totalorder %s3354_s15, %s3845_s1 }
 0x483   : > { %p3356_p2 = pnand %p3355_p0, %p3926_p13 }
 0x484   : > { %p3361_p12 = por %p3360_p11, %p3359_p8 }
 0x485   : > { %p3357_p1 = pneg %p3356_p2 }
 0x486   : > { %p3363_p3 = por %p3362_p6, %p3361_p12 }
 0x488   : > { %p3364_p5 = pnand %p3363_p3, %p3357_p1 }
 0x48a   : > { %3367 = shalt.err (!%p3364_p5)
}
 0x48b   : > { %3137 = dma.vmem_to_hbm [thread:$0]  (%p3926_p13), %s3847_s14, 32, %s3845_s1, %s2184_s16  }
 0x48c PF: > { %s2210_s21 = sand.u32 1, %s3406_s27   ;;  %p3927_p9 = scmp.ne.s32.totalorder %s3916_s26, 0 }
 0x48d   : > { %p3928_p4 = scmp.ge.s32.totalorder %s3418_s30, 2  ;;  %s2211_s12 = scalar_lea.sflag [#allocation4], %s2210_s21 }
 0x48f   : > { %p3157_p10 = pnand %p3928_p4, %p3927_p9 }
 0x491   : > { %3401 = dma.done.wait (!%p3157_p10), %s2211_s12, 32  }
 0x492   : > { %3403 = vsyncadd (!%p3157_p10), %s2211_s12, 4294967264  ;;  %p24_p7 = scmp.ge.s32.totalorder %s3607_s23, 4   ;;  %s3929_s27 = smov %s3410_s28 }
 0x493   : > { %s3930_s28 = smov %s3414_s29  ;;  %s3931_s29 = smov %s3618_s20 }
 0x494   : > { %s3932_s30 = smov %s3607_s23  ;;  %26 = sbr.rel (!%p24_p7) target bundleno = 11 (0xb), region = 114 }
 0x49b   :  { %2216 = vsyncpa [#allocation3], 1 }
 0x49c   :  { %2218 = vsyncpa [#allocation3 + $0x1], 1 }
 0x49d   :  { %2219 = vsyncpa [#allocation7], 1 }
 0x49e   :  { %2220 = vsyncpa [#allocation10], 1 }
 0x49f   :  { %2221 = vsyncpa [#allocation4], 1 }
 0x4a0   :  { %2223 = vsyncpa [#allocation4 + $0x1], 1 }
 0x4a1   :  { %2224 = vsyncpa [#allocation5], 1 }
 0x4a2   :  { %2226 = vsyncpa [#allocation5 + $0x1], 1 }

</bundles_post_ra>
